<compile_context>
chip_gen: v6e
topology: v6e:2x2x1
jax: 0.10.0
libtpu: 0.0.40
codegen_flags: <defaults>
</compile_context>

<pallas_src>
import functools

import numpy as np
import jax
import jax.numpy as jnp
from jax import lax
from jax.experimental import pallas as pl
from jax.experimental.pallas import tpu as pltpu

EPS = 1e-5


# ----------------------------------------------------------------------------
# Static helpers (weight packing, tap masks, in-kernel conv, block sizing)
# ----------------------------------------------------------------------------
def _round8(c):
    return ((c + 7) // 8) * 8


def _tap_masks_np(H, W):
    """(9, H*W) f32 validity masks for the 9 taps of a 3x3 'same' conv:
    mask[k, p] == 1 iff pixel p's neighbour at offset (kh-1, kw-1) is inside
    the image."""
    hh, ww = np.meshgrid(np.arange(H), np.arange(W), indexing="ij")
    m = np.zeros((9, H * W), np.float32)
    for k in range(9):
        kh, kw = divmod(k, 3)
        sh, sw = kh - 1, kw - 1
        valid = (hh + sh >= 0) & (hh + sh < H) & (ww + sw >= 0) & (ww + sw < W)
        m[k] = valid.reshape(-1).astype(np.float32)
    return m


def _fwd_wmat(Wc, cin_p, cout_p):
    """torch conv2d weight (Co, Ci, 3, 3) -> (cout_p, 9*cin_p) matmul matrix.
    mat[co, (kh*3+kw)*cin_p + ci] = Wc[co, ci, kh, kw]; padded rows/cols are 0."""
    Co, Ci = Wc.shape[0], Wc.shape[1]
    w = jnp.transpose(Wc, (0, 2, 3, 1))                      # (Co, 3, 3, Ci)
    w = jnp.pad(w, ((0, cout_p - Co), (0, 0), (0, 0), (0, cin_p - Ci)))
    return w.reshape(cout_p, 9 * cin_p).astype(jnp.float32)


def _adj_wmat(Wc, cin_p, cout_p):
    """torch conv_transpose2d (stride=1, pad=1) with weight (Co, Ci, 3, 3)
    expressed as a same-padding correlation with the flipped kernel."""
    Co, Ci = Wc.shape[0], Wc.shape[1]
    wf = Wc[:, :, ::-1, ::-1]                                # spatial flip
    w = jnp.transpose(wf, (1, 2, 3, 0))                      # (Ci, 3, 3, Co)
    w = jnp.pad(w, ((0, cout_p - Ci), (0, 0), (0, 0), (0, cin_p - Co)))
    return w.reshape(cout_p, 9 * cin_p).astype(jnp.float32)


def _make_conv(Wd, L, op_dtype):
    """Returns conv(x, wmat, tap_masks): (Cin_p, L) -> (Cout_p, L), one matmul.

    tap_masks: 9-tuple; entry k is a (1, L) or (Cmax, L) validity mask for tap
    k (entry 4, the centre tap, may be None).  Taps are built with pltpu.roll
    (XLU), masked (VPU), cast to the MXU operand dtype, and stacked into the
    im2col operand of a single jnp.dot with f32 accumulation.
    """

    def conv(x, wmat, tap_masks):
        cin = x.shape[0]
        rows = []
        for k in range(9):
            kh, kw = divmod(k, 3)
            s = (kh - 1) * Wd + (kw - 1)            # neighbour offset in lanes
            t = x if s == 0 else pltpu.roll(x, shift=(-s) % L, axis=1)
            if k != 4:
                m = tap_masks[k]
                if m.shape[0] != 1:
                    m = m[:cin]
                t = t * m
            rows.append(t)
        im = jnp.concatenate(rows, axis=0).astype(op_dtype)   # (9*Cin_p, L)
        return jnp.dot(wmat, im, preferred_element_type=jnp.float32)

    return conv


def _pick_bblk(N, HW, cmax, use_bf16):
    """Images per grid step: largest B that (a) divides N, (b) keeps the fused
    ISTA working set around ~20 MiB (fits every generation incl. v7x's 64 MiB
    VMEM), (c) keeps the lane block a multiple of 128."""
    if HW % 128 != 0:
        return N                                    # single full-extent block
    opb = 2 if use_bf16 else 4
    per_img = HW * cmax * (9 * 4 + 9 * opb + 8 * 4 + 12 * 4)
    b = int(max(1, min(N, (20 * 2 ** 20) // max(per_img, 1))))
    while N % b:
        b -= 1
    return b


# ----------------------------------------------------------------------------
# Full ML_ISTA_block forward (3 fused Pallas kernels)
# ----------------------------------------------------------------------------
@functools.partial(jax.jit, static_argnames=("T", "use_bf16"))
def ml_ista_block_forward(x_nchw, W1, W2, c1, c2, b1, b2,
                          bn1_w, bn1_b, bn2_w, bn2_b, *, T, use_bf16=True):
    f32 = jnp.float32
    op_dt = jnp.bfloat16 if use_bf16 else f32   # MXU operand dtype (f32 accumulate)
    act_dt = jnp.bfloat16 if use_bf16 else f32  # inter-kernel (HBM) activation dtype

    N, C1, H, Wd = x_nchw.shape
    C2, C3 = W1.shape[0], W2.shape[0]
    HW = H * Wd
    NT = N * HW
    C1p, C2p, C3p = _round8(C1), _round8(C2), _round8(C3)
    cmax = max(C1p, C2p, C3p)

    B_blk = _pick_bblk(N, HW, cmax, use_bf16)
    G = N // B_blk
    Lb = B_blk * HW                              # lane extent per grid step
    vmem_limit = int(min(96 * 2 ** 20,
                         max(32 * 2 ** 20,
                             2 * Lb * cmax * (9 * 4 + 9 * (2 if use_bf16 else 4)
                                              + 8 * 4 + 12 * 4))))
    cparams = pltpu.CompilerParams(dimension_semantics=("parallel",),
                                   vmem_limit_bytes=vmem_limit)

    # ---- host-side prep (tiny, one-time) -----------------------------------
    # batched lane layout: (C_p, N*HW); image i occupies lanes [i*HW, (i+1)*HW)
    x2d = jnp.transpose(x_nchw.astype(f32), (1, 0, 2, 3)).reshape(C1, NT)
    x2d = jnp.pad(x2d, ((0, C1p - C1), (0, 0)))

    c1s = jnp.asarray(c1, f32).reshape(())
    c2s = jnp.asarray(c2, f32).reshape(())

    def padv(v, cp):
        v = jnp.asarray(v, f32).reshape(-1)
        return jnp.pad(v, (0, cp - v.shape[0]))

    b1p, b2p = padv(b1, C2p), padv(b2, C3p)
    g1w, g1b = padv(bn1_w, C2p), padv(bn1_b, C2p)
    g2w, g2b = padv(bn2_w, C3p), padv(bn2_b, C3p)

    w1f = _fwd_wmat(W1, C1p, C2p)           # conv   x   -> mid
    w2f = _fwd_wmat(W2, C2p, C3p)           # conv  mid  -> out
    w1t = _adj_wmat(W1, C2p, C1p)           # convT mid  -> in
    w2t = _adj_wmat(W2, C3p, C2p)           # convT out  -> mid
    w1fc = c1s * w1f                        # fold learned scalars into ISTA convs
    w2fc = c2s * w2f
    w1f_o, w2f_o = w1f.astype(op_dt), w2f.astype(op_dt)
    w1t_o, w2t_o = w1t.astype(op_dt), w2t.astype(op_dt)
    w1c_o, w2c_o = w1fc.astype(op_dt), w2fc.astype(op_dt)

    # full 9-tap masks, tiled over the B_blk images sharing the lane axis
    masks = jnp.asarray(np.tile(_tap_masks_np(H, Wd), (1, B_blk)))   # (9, Lb)

    conv = _make_conv(Wd, Lb, op_dt)
    inv_cnt = 1.0 / float(Lb)

    # ---- kernel 1: y1 = conv(x, W1) + per-block BN1 partial stats ----------
    def head1_kernel(x_ref, w_ref, m_ref, y_ref, s_ref, q_ref):
        mv = m_ref[...]
        mrows = tuple(None if k == 4 else mv[k:k + 1, :] for k in range(9))
        y = conv(x_ref[...], w_ref[...], mrows)               # (C2p, Lb) f32
        y_ref[...] = y.astype(y_ref.dtype)
        s = jnp.sum(y, axis=1, keepdims=True)
        s_ref[...] = s
        q_ref[...] = jnp.sum(jnp.square(y - s * inv_cnt), axis=1, keepdims=True)

    y1, s1, q1 = pl.pallas_call(
        head1_kernel,
        out_shape=(jax.ShapeDtypeStruct((C2p, NT), act_dt),
                   jax.ShapeDtypeStruct((G, C2p, 1), f32),
                   jax.ShapeDtypeStruct((G, C2p, 1), f32)),
        grid=(G,),
        in_specs=[pl.BlockSpec((C1p, Lb), lambda g: (0, g)),
                  pl.BlockSpec((C2p, 9 * C1p), lambda g: (0, 0)),
                  pl.BlockSpec((9, Lb), lambda g: (0, 0))],
        out_specs=(pl.BlockSpec((C2p, Lb), lambda g: (0, g)),
                   pl.BlockSpec((None, C2p, 1), lambda g: (g, 0, 0)),
                   pl.BlockSpec((None, C2p, 1), lambda g: (g, 0, 0))),
        compiler_params=cparams,
    )(x2d, w1f_o, masks)

    total = jnp.float32(N * HW)
    cnt_b = jnp.float32(Lb)

    def bn_fold(s, q, c, gw, gb):
        # z = c*y + b; BN(z) in training mode folds to scale*y + shift.
        # Per-block (sum, centred ssq) partials combined with Chan's formula
        # (no E[y^2]-E[y]^2 cancellation); stats are race-free per grid step.
        sB = s[..., 0]                                   # (G, C)
        mean_b = sB * (1.0 / cnt_b)
        mean = jnp.sum(sB, axis=0) / total               # (C,)
        m2 = jnp.sum(q[..., 0], axis=0) + cnt_b * jnp.sum((mean_b - mean) ** 2, axis=0)
        var = m2 / total                                 # biased, as torch BN uses
        inv = gw / jnp.sqrt(c * c * var + EPS)
        scale = c * inv
        shift = gb - scale * mean
        return scale[:, None], shift[:, None]            # (C, 1)

    sc1, sh1 = bn_fold(s1, q1, c1s, g1w, g1b)

    # ---- kernel 2: gamma1 = relu(BN1), y2 = conv(gamma1, W2) + stats -------
    def head2_kernel(y1_ref, sc_ref, shf_ref, w_ref, m_ref, y2_ref, s_ref, q_ref):
        mv = m_ref[...]
        mrows = tuple(None if k == 4 else mv[k:k + 1, :] for k in range(9))
        g1 = jnp.maximum(y1_ref[...].astype(jnp.float32) * sc_ref[...] + shf_ref[...], 0.0)
        y2 = conv(g1, w_ref[...], mrows)                      # (C3p, Lb) f32
        y2_ref[...] = y2.astype(y2_ref.dtype)
        s = jnp.sum(y2, axis=1, keepdims=True)
        s_ref[...] = s
        q_ref[...] = jnp.sum(jnp.square(y2 - s * inv_cnt), axis=1, keepdims=True)

    y2, s2, q2 = pl.pallas_call(
        head2_kernel,
        out_shape=(jax.ShapeDtypeStruct((C3p, NT), act_dt),
                   jax.ShapeDtypeStruct((G, C3p, 1), f32),
                   jax.ShapeDtypeStruct((G, C3p, 1), f32)),
        grid=(G,),
        in_specs=[pl.BlockSpec((C2p, Lb), lambda g: (0, g)),
                  pl.BlockSpec((C2p, 1), lambda g: (0, 0)),
                  pl.BlockSpec((C2p, 1), lambda g: (0, 0)),
                  pl.BlockSpec((C3p, 9 * C2p), lambda g: (0, 0)),
                  pl.BlockSpec((9, Lb), lambda g: (0, 0))],
        out_specs=(pl.BlockSpec((C3p, Lb), lambda g: (0, g)),
                   pl.BlockSpec((None, C3p, 1), lambda g: (g, 0, 0)),
                   pl.BlockSpec((None, C3p, 1), lambda g: (g, 0, 0))),
        compiler_params=cparams,
    )(y1, sc1, sh1, w2f_o, masks)

    sc2, sh2 = bn_fold(s2, q2, c2s, g2w, g2b)

    # ---- kernel 3: gamma2 = relu(BN2), then the whole fused ISTA T-loop ----
    b1c = b1p[:, None]                      # (C2p, 1)
    b2c = b2p[:, None]                      # (C3p, 1)
    unroll = True if T <= 4 else 2          # cap unroll -> bounded vreg pressure

    def ista_kernel(x_ref, y2_ref, sc_ref, shf_ref, w1t_ref, w2t_ref,
                    w1c_ref, w2c_ref, b1_ref, b2_ref, m_ref, o_ref):
        mv = m_ref[...]
        # Hoist loop-invariant broadcasts out of the unrolled T-loop
        # (JAX does not CSE broadcast_in_dim).
        mb = tuple(None if k == 4 else jnp.broadcast_to(mv[k:k + 1, :], (cmax, Lb))
                   for k in range(9))
        b1b = jnp.broadcast_to(b1_ref[...], (C2p, Lb))
        b2b = jnp.broadcast_to(b2_ref[...], (C3p, Lb))
        xv = x_ref[...]
        w1tv, w2tv = w1t_ref[...], w2t_ref[...]
        w1cv, w2cv = w1c_ref[...], w2c_ref[...]

        g2 = jnp.maximum(y2_ref[...].astype(jnp.float32) * sc_ref[...] + shf_ref[...], 0.0)

        def body(_, g2):
            g1t = conv(g2, w2tv, mb)             # conv_transpose(gamma2, W2)
            a = conv(g1t, w1tv, mb)              # conv_transpose(g1t, W1)
            d = conv(a - xv, w1cv, mb)           # c1 * conv(. - x, W1)
            g1 = jnp.maximum(g1t - d + b1b, 0.0)
            e = conv(g1t - g1, w2cv, mb)         # c2 * conv(g1t - gamma1, W2)
            return jnp.maximum(g2 - e + b2b, 0.0)

        g2 = lax.fori_loop(0, T, body, g2, unroll=unroll)
        o_ref[...] = g2.astype(o_ref.dtype)

    out2d = pl.pallas_call(
        ista_kernel,
        out_shape=jax.ShapeDtypeStruct((C3p, NT), act_dt),
        grid=(G,),
        in_specs=[pl.BlockSpec((C1p, Lb), lambda g: (0, g)),
                  pl.BlockSpec((C3p, Lb), lambda g: (0, g)),
                  pl.BlockSpec((C3p, 1), lambda g: (0, 0)),
                  pl.BlockSpec((C3p, 1), lambda g: (0, 0)),
                  pl.BlockSpec((C1p, 9 * C2p), lambda g: (0, 0)),
                  pl.BlockSpec((C2p, 9 * C3p), lambda g: (0, 0)),
                  pl.BlockSpec((C2p, 9 * C1p), lambda g: (0, 0)),
                  pl.BlockSpec((C3p, 9 * C2p), lambda g: (0, 0)),
                  pl.BlockSpec((C2p, 1), lambda g: (0, 0)),
                  pl.BlockSpec((C3p, 1), lambda g: (0, 0)),
                  pl.BlockSpec((9, Lb), lambda g: (0, 0))],
        out_specs=pl.BlockSpec((C3p, Lb), lambda g: (0, g)),
        input_output_aliases={1: 0},   # write gamma2 over y2's HBM buffer
        compiler_params=cparams,
    )(x2d, y2, sc2, sh2, w1t_o, w2t_o, w1c_o, w2c_o, b1c, b2c, masks)

    out = out2d[:C3, :].reshape(C3, N, H, Wd)                 # free reshape
    return jnp.transpose(out, (1, 0, 2, 3)).astype(f32)       # back to NCHW


# ----------------------------------------------------------------------------
# Pure-JAX reference (torch semantics) for validation
# ----------------------------------------------------------------------------
def _ref_conv(x, W):
    return jax.lax.conv_general_dilated(
        x, W, window_strides=(1, 1), padding=((1, 1), (1, 1)),
        dimension_numbers=("NCHW", "OIHW", "NCHW"))


def _ref_convT(y, W, cin):
    # conv_transpose2d(stride=1, pad=1) == adjoint of conv2d(stride=1, pad=1)
    N, _, H, Wd = y.shape
    x0 = jnp.zeros((N, cin, H, Wd), y.dtype)
    _, vjp = jax.vjp(lambda x: _ref_conv(x, W), x0)
    return vjp(y)[0]


def _ref_bn(z, w, b):
    mean = jnp.mean(z, axis=(0, 2, 3), keepdims=True)
    var = jnp.var(z, axis=(0, 2, 3), keepdims=True)
    return (z - mean) / jnp.sqrt(var + EPS) * w.reshape(1, -1, 1, 1) + b.reshape(1, -1, 1, 1)


def ref_forward(x, W1, W2, c1, c2, b1, b2, bn1_w, bn1_b, bn2_w, bn2_b, T):
    cin, cmid = W1.shape[1], W1.shape[0]
    b1r = b1.reshape(1, -1, 1, 1)
    b2r = b2.reshape(1, -1, 1, 1)
    g1 = jax.nn.relu(_ref_bn(c1 * _ref_conv(x, W1) + b1r, bn1_w, bn1_b))
    g2 = jax.nn.relu(_ref_bn(c2 * _ref_conv(g1, W2) + b2r, bn2_w, bn2_b))
    for _ in range(T):
        g1 = _ref_convT(g2, W2, cmid)
        g1 = jax.nn.relu(g1 - c1 * _ref_conv(_ref_convT(g1, W1, cin) - x, W1) + b1r)
        g2 = jax.nn.relu(g2 - c2 * _ref_conv(_ref_convT(g2, W2, cmid) - g1, W2) + b2r)
    return g2


# ----------------------------------------------------------------------------
if __name__ == "__main__":
    T = 2
    Cin, Cmid, Cout = 4, 8, 16
    N, H, W = 2, 16, 16

    key = jax.random.PRNGKey(0)
    k1, k2, kx, kb1, kb2, kg1, kg2, kh1, kh2 = jax.random.split(key, 9)

    # Deterministic parameter init (same scaling as the torch __init__, with
    # non-trivial c/b/BN values so the folding paths are actually exercised).
    W1 = (0.1 / np.sqrt(Cin * 9)) * jax.random.normal(k1, (Cmid, Cin, 3, 3), jnp.float32)
    W2 = (0.1 / np.sqrt(Cmid * 9)) * jax.random.normal(k2, (Cout, Cmid, 3, 3), jnp.float32)
    c1 = jnp.float32(1.2)
    c2 = jnp.float32(0.8)
    b1 = 0.05 * jax.random.normal(kb1, (Cmid,), jnp.float32)
    b2 = 0.05 * jax.random.normal(kb2, (Cout,), jnp.float32)
    bn1_w = 1.0 + 0.1 * jax.random.normal(kg1, (Cmid,), jnp.float32)
    bn1_b = 0.05 * jax.random.normal(kh1, (Cmid,), jnp.float32)
    bn2_w = 1.0 + 0.1 * jax.random.normal(kg2, (Cout,), jnp.float32)
    bn2_b = 0.05 * jax.random.normal(kh2, (Cout,), jnp.float32)

    x = jax.random.normal(kx, (N, Cin, H, W), jnp.float32)

    ref = ref_forward(x, W1, W2, c1, c2, b1, b2, bn1_w, bn1_b, bn2_w, bn2_b, T)

    # exact path: f32 MXU operands + f32 inter-kernel activations
    out_f32 = jax.block_until_ready(ml_ista_block_forward(
        x, W1, W2, c1, c2, b1, b2, bn1_w, bn1_b, bn2_w, bn2_b, T=T, use_bf16=False))
    np.testing.assert_allclose(np.asarray(out_f32), np.asarray(ref), rtol=2e-3, atol=2e-3)

    # fast path: bf16 MXU operands + bf16 inter-kernel activations (f32 accumulate/stats)
    out_bf16 = jax.block_until_ready(ml_ista_block_forward(
        x, W1, W2, c1, c2, b1, b2, bn1_w, bn1_b, bn2_w, bn2_b, T=T, use_bf16=True))
    np.testing.assert_allclose(np.asarray(out_bf16), np.asarray(ref), rtol=2e-2, atol=2e-2)

    print("KERNEL_OK")
</pallas_src>

<mosaic_0001>
module attributes {stable_mosaic.version = 11 : i64} {
  func.func @head1_kernel(%arg0: i32, %arg1: memref<8x512xf32, #tpu.memory_space<vmem>>, %arg2: memref<8x72xf32, #tpu.memory_space<vmem>>, %arg3: memref<9x512xf32, #tpu.memory_space<vmem>>, %arg4: memref<8x512xf32, #tpu.memory_space<vmem>>, %arg5: memref<1x8x1xf32, #tpu.memory_space<vmem>>, %arg6: memref<1x8x1xf32, #tpu.memory_space<vmem>>) attributes {dimension_semantics = [#tpu.dimension_semantics<parallel>], iteration_bounds = array<i64: 1>, scalar_prefetch = 0 : i64, scratch_operands = 0 : i64, tpu.core_type = #tpu.core_type<tc>, window_params = [{transform_indices = @transform_0, window_bounds = array<i64: 8, 512>}, {pipeline_mode = #tpu.pipeline_mode<synchronous>, transform_indices = @transform_1, window_bounds = array<i64: 8, 72>}, {pipeline_mode = #tpu.pipeline_mode<synchronous>, transform_indices = @transform_2, window_bounds = array<i64: 9, 512>}, {transform_indices = @transform_3, window_bounds = array<i64: 8, 512>}, {transform_indices = @transform_4, window_bounds = array<i64: 1, 8, 1>}, {transform_indices = @transform_5, window_bounds = array<i64: 1, 8, 1>}]} {
    %c0 = arith.constant 0 : index
    %c0_0 = arith.constant 0 : index
    %0 = vector.load %arg3[%c0, %c0_0] : memref<9x512xf32, #tpu.memory_space<vmem>>, vector<9x512xf32>
    %1 = vector.extract_strided_slice %0 {offsets = [0, 0], sizes = [1, 512], strides = [1, 1]} : vector<9x512xf32> to vector<1x512xf32>
    %2 = vector.extract_strided_slice %0 {offsets = [1, 0], sizes = [1, 512], strides = [1, 1]} : vector<9x512xf32> to vector<1x512xf32>
    %3 = vector.extract_strided_slice %0 {offsets = [2, 0], sizes = [1, 512], strides = [1, 1]} : vector<9x512xf32> to vector<1x512xf32>
    %4 = vector.extract_strided_slice %0 {offsets = [3, 0], sizes = [1, 512], strides = [1, 1]} : vector<9x512xf32> to vector<1x512xf32>
    %5 = vector.extract_strided_slice %0 {offsets = [5, 0], sizes = [1, 512], strides = [1, 1]} : vector<9x512xf32> to vector<1x512xf32>
    %6 = vector.extract_strided_slice %0 {offsets = [6, 0], sizes = [1, 512], strides = [1, 1]} : vector<9x512xf32> to vector<1x512xf32>
    %7 = vector.extract_strided_slice %0 {offsets = [7, 0], sizes = [1, 512], strides = [1, 1]} : vector<9x512xf32> to vector<1x512xf32>
    %8 = vector.extract_strided_slice %0 {offsets = [8, 0], sizes = [1, 512], strides = [1, 1]} : vector<9x512xf32> to vector<1x512xf32>
    %c0_1 = arith.constant 0 : index
    %c0_2 = arith.constant 0 : index
    %9 = vector.load %arg1[%c0_1, %c0_2] : memref<8x512xf32, #tpu.memory_space<vmem>>, vector<8x512xf32>
    %c0_3 = arith.constant 0 : index
    %c0_4 = arith.constant 0 : index
    %10 = vector.load %arg2[%c0_3, %c0_4] : memref<8x72xf32, #tpu.memory_space<vmem>>, vector<8x72xf32>
    %c17_i32 = arith.constant 17 : i32
    %11 = tpu.dynamic_rotate %9 by %c17_i32 dim 1 : vector<8x512xf32>, i32 -> vector<8x512xf32>
    %12 = vector.broadcast %1 : vector<1x512xf32> to vector<8x512xf32>
    %13 = arith.mulf %11, %12 : vector<8x512xf32>
    %c16_i32 = arith.constant 16 : i32
    %14 = tpu.dynamic_rotate %9 by %c16_i32 dim 1 : vector<8x512xf32>, i32 -> vector<8x512xf32>
    %15 = vector.broadcast %2 : vector<1x512xf32> to vector<8x512xf32>
    %16 = arith.mulf %14, %15 : vector<8x512xf32>
    %c15_i32 = arith.constant 15 : i32
    %17 = tpu.dynamic_rotate %9 by %c15_i32 dim 1 : vector<8x512xf32>, i32 -> vector<8x512xf32>
    %18 = vector.broadcast %3 : vector<1x512xf32> to vector<8x512xf32>
    %19 = arith.mulf %17, %18 : vector<8x512xf32>
    %c1_i32 = arith.constant 1 : i32
    %20 = tpu.dynamic_rotate %9 by %c1_i32 dim 1 : vector<8x512xf32>, i32 -> vector<8x512xf32>
    %21 = vector.broadcast %4 : vector<1x512xf32> to vector<8x512xf32>
    %22 = arith.mulf %20, %21 : vector<8x512xf32>
    %c511_i32 = arith.constant 511 : i32
    %23 = tpu.dynamic_rotate %9 by %c511_i32 dim 1 : vector<8x512xf32>, i32 -> vector<8x512xf32>
    %24 = vector.broadcast %5 : vector<1x512xf32> to vector<8x512xf32>
    %25 = arith.mulf %23, %24 : vector<8x512xf32>
    %c497_i32 = arith.constant 497 : i32
    %26 = tpu.dynamic_rotate %9 by %c497_i32 dim 1 : vector<8x512xf32>, i32 -> vector<8x512xf32>
    %27 = vector.broadcast %6 : vector<1x512xf32> to vector<8x512xf32>
    %28 = arith.mulf %26, %27 : vector<8x512xf32>
    %c496_i32 = arith.constant 496 : i32
    %29 = tpu.dynamic_rotate %9 by %c496_i32 dim 1 : vector<8x512xf32>, i32 -> vector<8x512xf32>
    %30 = vector.broadcast %7 : vector<1x512xf32> to vector<8x512xf32>
    %31 = arith.mulf %29, %30 : vector<8x512xf32>
    %c495_i32 = arith.constant 495 : i32
    %32 = tpu.dynamic_rotate %9 by %c495_i32 dim 1 : vector<8x512xf32>, i32 -> vector<8x512xf32>
    %33 = vector.broadcast %8 : vector<1x512xf32> to vector<8x512xf32>
    %34 = arith.mulf %32, %33 : vector<8x512xf32>
    %35 = tpu.concatenate %13, %16, %19, %22, %9, %25, %28, %31, %34 in 0 : vector<8x512xf32>, vector<8x512xf32>, vector<8x512xf32>, vector<8x512xf32>, vector<8x512xf32>, vector<8x512xf32>, vector<8x512xf32>, vector<8x512xf32>, vector<8x512xf32> -> vector<72x512xf32>
    %cst = arith.constant dense<0.000000e+00> : vector<8x512xf32>
    %36 = tpu.matmul %10, %35, %cst {dimension_numbers = #tpu.dot_dimension_numbers<[1], [0], [0], [1], [0, 0, 1, 1], [], []>} : vector<8x72xf32>, vector<72x512xf32>, vector<8x512xf32> -> vector<8x512xf32>
    %c0_5 = arith.constant 0 : index
    %c0_6 = arith.constant 0 : index
    %37 = vector.load %arg4[%c0_5, %c0_6] : memref<8x512xf32, #tpu.memory_space<vmem>>, vector<8x512xf32>
    tpu.vector_store %arg4[%c0_5, %c0_6], %36 {strides = array<i32>} : memref<8x512xf32, #tpu.memory_space<vmem>>, vector<8x512xf32>,
    %cst_7 = arith.constant dense<0.000000e+00> : vector<8xf32>
    %38 = vector.multi_reduction <add>, %36, %cst_7 [1] : vector<8x512xf32> to vector<8xf32>
    %39 = vector.shape_cast %38 : vector<8xf32> to vector<8x1xf32>
    %c0_8 = arith.constant 0 : index
    %c0_9 = arith.constant 0 : index
    %c0_10 = arith.constant 0 : index
    %40 = vector.load %arg5[%c0_8, %c0_9, %c0_10] : memref<1x8x1xf32, #tpu.memory_space<vmem>>, vector<1x8x1xf32>
    %41 = vector.shape_cast %40 : vector<1x8x1xf32> to vector<8x1xf32>
    %42 = vector.shape_cast %39 : vector<8x1xf32> to vector<1x8x1xf32>
    tpu.vector_store %arg5[%c0_8, %c0_9, %c0_10], %42 {strides = array<i32>} : memref<1x8x1xf32, #tpu.memory_space<vmem>>, vector<1x8x1xf32>,
    %cst_11 = arith.constant 0.001953125 : f32
    %43 = vector.broadcast %cst_11 : f32 to vector<8x1xf32>
    %44 = arith.mulf %39, %43 : vector<8x1xf32>
    %45 = vector.broadcast %44 : vector<8x1xf32> to vector<8x512xf32>
    %46 = arith.subf %36, %45 : vector<8x512xf32>
    %47 = arith.mulf %46, %46 : vector<8x512xf32>
    %cst_12 = arith.constant dense<0.000000e+00> : vector<8xf32>
    %48 = vector.multi_reduction <add>, %47, %cst_12 [1] : vector<8x512xf32> to vector<8xf32>
    %49 = vector.shape_cast %48 : vector<8xf32> to vector<8x1xf32>
    %c0_13 = arith.constant 0 : index
    %c0_14 = arith.constant 0 : index
    %c0_15 = arith.constant 0 : index
    %50 = vector.load %arg6[%c0_13, %c0_14, %c0_15] : memref<1x8x1xf32, #tpu.memory_space<vmem>>, vector<1x8x1xf32>
    %51 = vector.shape_cast %50 : vector<1x8x1xf32> to vector<8x1xf32>
    %52 = vector.shape_cast %49 : vector<8x1xf32> to vector<1x8x1xf32>
    tpu.vector_store %arg6[%c0_13, %c0_14, %c0_15], %52 {strides = array<i32>} : memref<1x8x1xf32, #tpu.memory_space<vmem>>, vector<1x8x1xf32>,
    return
  }
  func.func @transform_0(%arg0: i32) -> (i32, i32) {
    %c0_i32 = arith.constant 0 : i32
    %c0_i32_0 = arith.constant 0 : i32
    return %c0_i32, %arg0 : i32, i32
  }
  func.func @transform_1(%arg0: i32) -> (i32, i32) {
    %c0_i32 = arith.constant 0 : i32
    %c0_i32_0 = arith.constant 0 : i32
    %c0_i32_1 = arith.constant 0 : i32
    return %c0_i32, %c0_i32_0 : i32, i32
  }
  func.func @transform_2(%arg0: i32) -> (i32, i32) {
    %c0_i32 = arith.constant 0 : i32
    %c0_i32_0 = arith.constant 0 : i32
    %c0_i32_1 = arith.constant 0 : i32
    return %c0_i32, %c0_i32_0 : i32, i32
  }
  func.func @transform_3(%arg0: i32) -> (i32, i32) {
    %c0_i32 = arith.constant 0 : i32
    %c0_i32_0 = arith.constant 0 : i32
    return %c0_i32, %arg0 : i32, i32
  }
  func.func @transform_4(%arg0: i32) -> (i32, i32, i32) {
    %c0_i32 = arith.constant 0 : i32
    %c0_i32_0 = arith.constant 0 : i32
    %c0_i32_1 = arith.constant 0 : i32
    return %arg0, %c0_i32, %c0_i32_0 : i32, i32, i32
  }
  func.func @transform_5(%arg0: i32) -> (i32, i32, i32) {
    %c0_i32 = arith.constant 0 : i32
    %c0_i32_0 = arith.constant 0 : i32
    %c0_i32_1 = arith.constant 0 : i32
    return %arg0, %c0_i32, %c0_i32_0 : i32, i32, i32
  }
}

module attributes {stable_mosaic.version = 11 : i64} {
  func.func @head2_kernel(%arg0: i32, %arg1: memref<8x512xf32, #tpu.memory_space<vmem>>, %arg2: memref<8x1xf32, #tpu.memory_space<vmem>>, %arg3: memref<8x1xf32, #tpu.memory_space<vmem>>, %arg4: memref<16x72xf32, #tpu.memory_space<vmem>>, %arg5: memref<9x512xf32, #tpu.memory_space<vmem>>, %arg6: memref<16x512xf32, #tpu.memory_space<vmem>>, %arg7: memref<1x16x1xf32, #tpu.memory_space<vmem>>, %arg8: memref<1x16x1xf32, #tpu.memory_space<vmem>>) attributes {dimension_semantics = [#tpu.dimension_semantics<parallel>], iteration_bounds = array<i64: 1>, scalar_prefetch = 0 : i64, scratch_operands = 0 : i64, tpu.core_type = #tpu.core_type<tc>, window_params = [{transform_indices = @transform_0, window_bounds = array<i64: 8, 512>}, {pipeline_mode = #tpu.pipeline_mode<synchronous>, transform_indices = @transform_1, window_bounds = array<i64: 8, 1>}, {pipeline_mode = #tpu.pipeline_mode<synchronous>, transform_indices = @transform_2, window_bounds = array<i64: 8, 1>}, {pipeline_mode = #tpu.pipeline_mode<synchronous>, transform_indices = @transform_3, window_bounds = array<i64: 16, 72>}, {pipeline_mode = #tpu.pipeline_mode<synchronous>, transform_indices = @transform_4, window_bounds = array<i64: 9, 512>}, {transform_indices = @transform_5, window_bounds = array<i64: 16, 512>}, {transform_indices = @transform_6, window_bounds = array<i64: 1, 16, 1>}, {transform_indices = @transform_7, window_bounds = array<i64: 1, 16, 1>}]} {
    %c0 = arith.constant 0 : index
    %c0_0 = arith.constant 0 : index
    %0 = vector.load %arg5[%c0, %c0_0] : memref<9x512xf32, #tpu.memory_space<vmem>>, vector<9x512xf32>
    %1 = vector.extract_strided_slice %0 {offsets = [0, 0], sizes = [1, 512], strides = [1, 1]} : vector<9x512xf32> to vector<1x512xf32>
    %2 = vector.extract_strided_slice %0 {offsets = [1, 0], sizes = [1, 512], strides = [1, 1]} : vector<9x512xf32> to vector<1x512xf32>
    %3 = vector.extract_strided_slice %0 {offsets = [2, 0], sizes = [1, 512], strides = [1, 1]} : vector<9x512xf32> to vector<1x512xf32>
    %4 = vector.extract_strided_slice %0 {offsets = [3, 0], sizes = [1, 512], strides = [1, 1]} : vector<9x512xf32> to vector<1x512xf32>
    %5 = vector.extract_strided_slice %0 {offsets = [5, 0], sizes = [1, 512], strides = [1, 1]} : vector<9x512xf32> to vector<1x512xf32>
    %6 = vector.extract_strided_slice %0 {offsets = [6, 0], sizes = [1, 512], strides = [1, 1]} : vector<9x512xf32> to vector<1x512xf32>
    %7 = vector.extract_strided_slice %0 {offsets = [7, 0], sizes = [1, 512], strides = [1, 1]} : vector<9x512xf32> to vector<1x512xf32>
    %8 = vector.extract_strided_slice %0 {offsets = [8, 0], sizes = [1, 512], strides = [1, 1]} : vector<9x512xf32> to vector<1x512xf32>
    %c0_1 = arith.constant 0 : index
    %c0_2 = arith.constant 0 : index
    %9 = vector.load %arg1[%c0_1, %c0_2] : memref<8x512xf32, #tpu.memory_space<vmem>>, vector<8x512xf32>
    %c0_3 = arith.constant 0 : index
    %c0_4 = arith.constant 0 : index
    %10 = vector.load %arg2[%c0_3, %c0_4] : memref<8x1xf32, #tpu.memory_space<vmem>>, vector<8x1xf32>
    %11 = vector.broadcast %10 : vector<8x1xf32> to vector<8x512xf32>
    %12 = arith.mulf %9, %11 : vector<8x512xf32>
    %c0_5 = arith.constant 0 : index
    %c0_6 = arith.constant 0 : index
    %13 = vector.load %arg3[%c0_5, %c0_6] : memref<8x1xf32, #tpu.memory_space<vmem>>, vector<8x1xf32>
    %14 = vector.broadcast %13 : vector<8x1xf32> to vector<8x512xf32>
    %15 = arith.addf %12, %14 : vector<8x512xf32>
    %cst = arith.constant 0.000000e+00 : f32
    %16 = vector.broadcast %cst : f32 to vector<8x512xf32>
    %17 = arith.maximumf %15, %16 : vector<8x512xf32>
    %c0_7 = arith.constant 0 : index
    %c0_8 = arith.constant 0 : index
    %18 = vector.load %arg4[%c0_7, %c0_8] : memref<16x72xf32, #tpu.memory_space<vmem>>, vector<16x72xf32>
    %c17_i32 = arith.constant 17 : i32
    %19 = tpu.dynamic_rotate %17 by %c17_i32 dim 1 : vector<8x512xf32>, i32 -> vector<8x512xf32>
    %20 = vector.broadcast %1 : vector<1x512xf32> to vector<8x512xf32>
    %21 = arith.mulf %19, %20 : vector<8x512xf32>
    %c16_i32 = arith.constant 16 : i32
    %22 = tpu.dynamic_rotate %17 by %c16_i32 dim 1 : vector<8x512xf32>, i32 -> vector<8x512xf32>
    %23 = vector.broadcast %2 : vector<1x512xf32> to vector<8x512xf32>
    %24 = arith.mulf %22, %23 : vector<8x512xf32>
    %c15_i32 = arith.constant 15 : i32
    %25 = tpu.dynamic_rotate %17 by %c15_i32 dim 1 : vector<8x512xf32>, i32 -> vector<8x512xf32>
    %26 = vector.broadcast %3 : vector<1x512xf32> to vector<8x512xf32>
    %27 = arith.mulf %25, %26 : vector<8x512xf32>
    %c1_i32 = arith.constant 1 : i32
    %28 = tpu.dynamic_rotate %17 by %c1_i32 dim 1 : vector<8x512xf32>, i32 -> vector<8x512xf32>
    %29 = vector.broadcast %4 : vector<1x512xf32> to vector<8x512xf32>
    %30 = arith.mulf %28, %29 : vector<8x512xf32>
    %c511_i32 = arith.constant 511 : i32
    %31 = tpu.dynamic_rotate %17 by %c511_i32 dim 1 : vector<8x512xf32>, i32 -> vector<8x512xf32>
    %32 = vector.broadcast %5 : vector<1x512xf32> to vector<8x512xf32>
    %33 = arith.mulf %31, %32 : vector<8x512xf32>
    %c497_i32 = arith.constant 497 : i32
    %34 = tpu.dynamic_rotate %17 by %c497_i32 dim 1 : vector<8x512xf32>, i32 -> vector<8x512xf32>
    %35 = vector.broadcast %6 : vector<1x512xf32> to vector<8x512xf32>
    %36 = arith.mulf %34, %35 : vector<8x512xf32>
    %c496_i32 = arith.constant 496 : i32
    %37 = tpu.dynamic_rotate %17 by %c496_i32 dim 1 : vector<8x512xf32>, i32 -> vector<8x512xf32>
    %38 = vector.broadcast %7 : vector<1x512xf32> to vector<8x512xf32>
    %39 = arith.mulf %37, %38 : vector<8x512xf32>
    %c495_i32 = arith.constant 495 : i32
    %40 = tpu.dynamic_rotate %17 by %c495_i32 dim 1 : vector<8x512xf32>, i32 -> vector<8x512xf32>
    %41 = vector.broadcast %8 : vector<1x512xf32> to vector<8x512xf32>
    %42 = arith.mulf %40, %41 : vector<8x512xf32>
    %43 = tpu.concatenate %21, %24, %27, %30, %17, %33, %36, %39, %42 in 0 : vector<8x512xf32>, vector<8x512xf32>, vector<8x512xf32>, vector<8x512xf32>, vector<8x512xf32>, vector<8x512xf32>, vector<8x512xf32>, vector<8x512xf32>, vector<8x512xf32> -> vector<72x512xf32>
    %cst_9 = arith.constant dense<0.000000e+00> : vector<16x512xf32>
    %44 = tpu.matmul %18, %43, %cst_9 {dimension_numbers = #tpu.dot_dimension_numbers<[1], [0], [0], [1], [0, 0, 1, 1], [], []>} : vector<16x72xf32>, vector<72x512xf32>, vector<16x512xf32> -> vector<16x512xf32>
    %c0_10 = arith.constant 0 : index
    %c0_11 = arith.constant 0 : index
    %45 = vector.load %arg6[%c0_10, %c0_11] : memref<16x512xf32, #tpu.memory_space<vmem>>, vector<16x512xf32>
    tpu.vector_store %arg6[%c0_10, %c0_11], %44 {strides = array<i32>} : memref<16x512xf32, #tpu.memory_space<vmem>>, vector<16x512xf32>,
    %cst_12 = arith.constant dense<0.000000e+00> : vector<16xf32>
    %46 = vector.multi_reduction <add>, %44, %cst_12 [1] : vector<16x512xf32> to vector<16xf32>
    %47 = vector.shape_cast %46 : vector<16xf32> to vector<16x1xf32>
    %c0_13 = arith.constant 0 : index
    %c0_14 = arith.constant 0 : index
    %c0_15 = arith.constant 0 : index
    %48 = vector.load %arg7[%c0_13, %c0_14, %c0_15] : memref<1x16x1xf32, #tpu.memory_space<vmem>>, vector<1x16x1xf32>
    %49 = vector.shape_cast %48 : vector<1x16x1xf32> to vector<16x1xf32>
    %50 = vector.shape_cast %47 : vector<16x1xf32> to vector<1x16x1xf32>
    tpu.vector_store %arg7[%c0_13, %c0_14, %c0_15], %50 {strides = array<i32>} : memref<1x16x1xf32, #tpu.memory_space<vmem>>, vector<1x16x1xf32>,
    %cst_16 = arith.constant 0.001953125 : f32
    %51 = vector.broadcast %cst_16 : f32 to vector<16x1xf32>
    %52 = arith.mulf %47, %51 : vector<16x1xf32>
    %53 = vector.broadcast %52 : vector<16x1xf32> to vector<16x512xf32>
    %54 = arith.subf %44, %53 : vector<16x512xf32>
    %55 = arith.mulf %54, %54 : vector<16x512xf32>
    %cst_17 = arith.constant dense<0.000000e+00> : vector<16xf32>
    %56 = vector.multi_reduction <add>, %55, %cst_17 [1] : vector<16x512xf32> to vector<16xf32>
    %57 = vector.shape_cast %56 : vector<16xf32> to vector<16x1xf32>
    %c0_18 = arith.constant 0 : index
    %c0_19 = arith.constant 0 : index
    %c0_20 = arith.constant 0 : index
    %58 = vector.load %arg8[%c0_18, %c0_19, %c0_20] : memref<1x16x1xf32, #tpu.memory_space<vmem>>, vector<1x16x1xf32>
    %59 = vector.shape_cast %58 : vector<1x16x1xf32> to vector<16x1xf32>
    %60 = vector.shape_cast %57 : vector<16x1xf32> to vector<1x16x1xf32>
    tpu.vector_store %arg8[%c0_18, %c0_19, %c0_20], %60 {strides = array<i32>} : memref<1x16x1xf32, #tpu.memory_space<vmem>>, vector<1x16x1xf32>,
    return
  }
  func.func @transform_0(%arg0: i32) -> (i32, i32) {
    %c0_i32 = arith.constant 0 : i32
    %c0_i32_0 = arith.constant 0 : i32
    return %c0_i32, %arg0 : i32, i32
  }
  func.func @transform_1(%arg0: i32) -> (i32, i32) {
    %c0_i32 = arith.constant 0 : i32
    %c0_i32_0 = arith.constant 0 : i32
    %c0_i32_1 = arith.constant 0 : i32
    return %c0_i32, %c0_i32_0 : i32, i32
  }
  func.func @transform_2(%arg0: i32) -> (i32, i32) {
    %c0_i32 = arith.constant 0 : i32
    %c0_i32_0 = arith.constant 0 : i32
    %c0_i32_1 = arith.constant 0 : i32
    return %c0_i32, %c0_i32_0 : i32, i32
  }
  func.func @transform_3(%arg0: i32) -> (i32, i32) {
    %c0_i32 = arith.constant 0 : i32
    %c0_i32_0 = arith.constant 0 : i32
    %c0_i32_1 = arith.constant 0 : i32
    return %c0_i32, %c0_i32_0 : i32, i32
  }
  func.func @transform_4(%arg0: i32) -> (i32, i32) {
    %c0_i32 = arith.constant 0 : i32
    %c0_i32_0 = arith.constant 0 : i32
    %c0_i32_1 = arith.constant 0 : i32
    return %c0_i32, %c0_i32_0 : i32, i32
  }
  func.func @transform_5(%arg0: i32) -> (i32, i32) {
    %c0_i32 = arith.constant 0 : i32
    %c0_i32_0 = arith.constant 0 : i32
    return %c0_i32, %arg0 : i32, i32
  }
  func.func @transform_6(%arg0: i32) -> (i32, i32, i32) {
    %c0_i32 = arith.constant 0 : i32
    %c0_i32_0 = arith.constant 0 : i32
    %c0_i32_1 = arith.constant 0 : i32
    return %arg0, %c0_i32, %c0_i32_0 : i32, i32, i32
  }
  func.func @transform_7(%arg0: i32) -> (i32, i32, i32) {
    %c0_i32 = arith.constant 0 : i32
    %c0_i32_0 = arith.constant 0 : i32
    %c0_i32_1 = arith.constant 0 : i32
    return %arg0, %c0_i32, %c0_i32_0 : i32, i32, i32
  }
}

module attributes {stable_mosaic.version = 11 : i64} {
  func.func @ista_kernel(%arg0: i32, %arg1: memref<8x512xf32, #tpu.memory_space<vmem>>, %arg2: memref<16x512xf32, #tpu.memory_space<vmem>>, %arg3: memref<16x1xf32, #tpu.memory_space<vmem>>, %arg4: memref<16x1xf32, #tpu.memory_space<vmem>>, %arg5: memref<8x72xf32, #tpu.memory_space<vmem>>, %arg6: memref<8x144xf32, #tpu.memory_space<vmem>>, %arg7: memref<8x72xf32, #tpu.memory_space<vmem>>, %arg8: memref<16x72xf32, #tpu.memory_space<vmem>>, %arg9: memref<8x1xf32, #tpu.memory_space<vmem>>, %arg10: memref<16x1xf32, #tpu.memory_space<vmem>>, %arg11: memref<9x512xf32, #tpu.memory_space<vmem>>, %arg12: memref<16x512xf32, #tpu.memory_space<vmem>>) attributes {dimension_semantics = [#tpu.dimension_semantics<parallel>], iteration_bounds = array<i64: 1>, scalar_prefetch = 0 : i64, scratch_operands = 0 : i64, tpu.core_type = #tpu.core_type<tc>, window_params = [{transform_indices = @transform_0, window_bounds = array<i64: 8, 512>}, {transform_indices = @transform_1, window_bounds = array<i64: 16, 512>}, {pipeline_mode = #tpu.pipeline_mode<synchronous>, transform_indices = @transform_2, window_bounds = array<i64: 16, 1>}, {pipeline_mode = #tpu.pipeline_mode<synchronous>, transform_indices = @transform_3, window_bounds = array<i64: 16, 1>}, {pipeline_mode = #tpu.pipeline_mode<synchronous>, transform_indices = @transform_4, window_bounds = array<i64: 8, 72>}, {pipeline_mode = #tpu.pipeline_mode<synchronous>, transform_indices = @transform_5, window_bounds = array<i64: 8, 144>}, {pipeline_mode = #tpu.pipeline_mode<synchronous>, transform_indices = @transform_6, window_bounds = array<i64: 8, 72>}, {pipeline_mode = #tpu.pipeline_mode<synchronous>, transform_indices = @transform_7, window_bounds = array<i64: 16, 72>}, {pipeline_mode = #tpu.pipeline_mode<synchronous>, transform_indices = @transform_8, window_bounds = array<i64: 8, 1>}, {pipeline_mode = #tpu.pipeline_mode<synchronous>, transform_indices = @transform_9, window_bounds = array<i64: 16, 1>}, {pipeline_mode = #tpu.pipeline_mode<synchronous>, transform_indices = @transform_10, window_bounds = array<i64: 9, 512>}, {transform_indices = @transform_11, window_bounds = array<i64: 16, 512>}]} {
    %c0 = arith.constant 0 : index
    %c0_0 = arith.constant 0 : index
    %0 = vector.load %arg11[%c0, %c0_0] : memref<9x512xf32, #tpu.memory_space<vmem>>, vector<9x512xf32>
    %1 = vector.extract_strided_slice %0 {offsets = [0, 0], sizes = [1, 512], strides = [1, 1]} : vector<9x512xf32> to vector<1x512xf32>
    %2 = vector.shape_cast %1 : vector<1x512xf32> to vector<1x512xf32>
    %3 = vector.broadcast %2 : vector<1x512xf32> to vector<16x512xf32>
    %4 = vector.extract_strided_slice %0 {offsets = [1, 0], sizes = [1, 512], strides = [1, 1]} : vector<9x512xf32> to vector<1x512xf32>
    %5 = vector.shape_cast %4 : vector<1x512xf32> to vector<1x512xf32>
    %6 = vector.broadcast %5 : vector<1x512xf32> to vector<16x512xf32>
    %7 = vector.extract_strided_slice %0 {offsets = [2, 0], sizes = [1, 512], strides = [1, 1]} : vector<9x512xf32> to vector<1x512xf32>
    %8 = vector.shape_cast %7 : vector<1x512xf32> to vector<1x512xf32>
    %9 = vector.broadcast %8 : vector<1x512xf32> to vector<16x512xf32>
    %10 = vector.extract_strided_slice %0 {offsets = [3, 0], sizes = [1, 512], strides = [1, 1]} : vector<9x512xf32> to vector<1x512xf32>
    %11 = vector.shape_cast %10 : vector<1x512xf32> to vector<1x512xf32>
    %12 = vector.broadcast %11 : vector<1x512xf32> to vector<16x512xf32>
    %13 = vector.extract_strided_slice %0 {offsets = [5, 0], sizes = [1, 512], strides = [1, 1]} : vector<9x512xf32> to vector<1x512xf32>
    %14 = vector.shape_cast %13 : vector<1x512xf32> to vector<1x512xf32>
    %15 = vector.broadcast %14 : vector<1x512xf32> to vector<16x512xf32>
    %16 = vector.extract_strided_slice %0 {offsets = [6, 0], sizes = [1, 512], strides = [1, 1]} : vector<9x512xf32> to vector<1x512xf32>
    %17 = vector.shape_cast %16 : vector<1x512xf32> to vector<1x512xf32>
    %18 = vector.broadcast %17 : vector<1x512xf32> to vector<16x512xf32>
    %19 = vector.extract_strided_slice %0 {offsets = [7, 0], sizes = [1, 512], strides = [1, 1]} : vector<9x512xf32> to vector<1x512xf32>
    %20 = vector.shape_cast %19 : vector<1x512xf32> to vector<1x512xf32>
    %21 = vector.broadcast %20 : vector<1x512xf32> to vector<16x512xf32>
    %22 = vector.extract_strided_slice %0 {offsets = [8, 0], sizes = [1, 512], strides = [1, 1]} : vector<9x512xf32> to vector<1x512xf32>
    %23 = vector.shape_cast %22 : vector<1x512xf32> to vector<1x512xf32>
    %24 = vector.broadcast %23 : vector<1x512xf32> to vector<16x512xf32>
    %c0_1 = arith.constant 0 : index
    %c0_2 = arith.constant 0 : index
    %25 = vector.load %arg9[%c0_1, %c0_2] : memref<8x1xf32, #tpu.memory_space<vmem>>, vector<8x1xf32>
    %26 = vector.shape_cast %25 : vector<8x1xf32> to vector<8x1xf32>
    %27 = vector.broadcast %26 : vector<8x1xf32> to vector<8x512xf32>
    %c0_3 = arith.constant 0 : index
    %c0_4 = arith.constant 0 : index
    %28 = vector.load %arg10[%c0_3, %c0_4] : memref<16x1xf32, #tpu.memory_space<vmem>>, vector<16x1xf32>
    %29 = vector.shape_cast %28 : vector<16x1xf32> to vector<16x1xf32>
    %30 = vector.broadcast %29 : vector<16x1xf32> to vector<16x512xf32>
    %c0_5 = arith.constant 0 : index
    %c0_6 = arith.constant 0 : index
    %31 = vector.load %arg1[%c0_5, %c0_6] : memref<8x512xf32, #tpu.memory_space<vmem>>, vector<8x512xf32>
    %c0_7 = arith.constant 0 : index
    %c0_8 = arith.constant 0 : index
    %32 = vector.load %arg5[%c0_7, %c0_8] : memref<8x72xf32, #tpu.memory_space<vmem>>, vector<8x72xf32>
    %c0_9 = arith.constant 0 : index
    %c0_10 = arith.constant 0 : index
    %33 = vector.load %arg6[%c0_9, %c0_10] : memref<8x144xf32, #tpu.memory_space<vmem>>, vector<8x144xf32>
    %c0_11 = arith.constant 0 : index
    %c0_12 = arith.constant 0 : index
    %34 = vector.load %arg7[%c0_11, %c0_12] : memref<8x72xf32, #tpu.memory_space<vmem>>, vector<8x72xf32>
    %c0_13 = arith.constant 0 : index
    %c0_14 = arith.constant 0 : index
    %35 = vector.load %arg8[%c0_13, %c0_14] : memref<16x72xf32, #tpu.memory_space<vmem>>, vector<16x72xf32>
    %c0_15 = arith.constant 0 : index
    %c0_16 = arith.constant 0 : index
    %36 = vector.load %arg2[%c0_15, %c0_16] : memref<16x512xf32, #tpu.memory_space<vmem>>, vector<16x512xf32>
    %c0_17 = arith.constant 0 : index
    %c0_18 = arith.constant 0 : index
    %37 = vector.load %arg3[%c0_17, %c0_18] : memref<16x1xf32, #tpu.memory_space<vmem>>, vector<16x1xf32>
    %38 = vector.broadcast %37 : vector<16x1xf32> to vector<16x512xf32>
    %39 = arith.mulf %36, %38 : vector<16x512xf32>
    %c0_19 = arith.constant 0 : index
    %c0_20 = arith.constant 0 : index
    %40 = vector.load %arg4[%c0_19, %c0_20] : memref<16x1xf32, #tpu.memory_space<vmem>>, vector<16x1xf32>
    %41 = vector.broadcast %40 : vector<16x1xf32> to vector<16x512xf32>
    %42 = arith.addf %39, %41 : vector<16x512xf32>
    %cst = arith.constant 0.000000e+00 : f32
    %43 = vector.broadcast %cst : f32 to vector<16x512xf32>
    %44 = arith.maximumf %42, %43 : vector<16x512xf32>
    %c0_i32 = arith.constant 0 : i32
    %c17_i32 = arith.constant 17 : i32
    %45 = tpu.dynamic_rotate %44 by %c17_i32 dim 1 : vector<16x512xf32>, i32 -> vector<16x512xf32>
    %46 = arith.mulf %45, %3 : vector<16x512xf32>
    %c16_i32 = arith.constant 16 : i32
    %47 = tpu.dynamic_rotate %44 by %c16_i32 dim 1 : vector<16x512xf32>, i32 -> vector<16x512xf32>
    %48 = arith.mulf %47, %6 : vector<16x512xf32>
    %c15_i32 = arith.constant 15 : i32
    %49 = tpu.dynamic_rotate %44 by %c15_i32 dim 1 : vector<16x512xf32>, i32 -> vector<16x512xf32>
    %50 = arith.mulf %49, %9 : vector<16x512xf32>
    %c1_i32 = arith.constant 1 : i32
    %51 = tpu.dynamic_rotate %44 by %c1_i32 dim 1 : vector<16x512xf32>, i32 -> vector<16x512xf32>
    %52 = arith.mulf %51, %12 : vector<16x512xf32>
    %c511_i32 = arith.constant 511 : i32
    %53 = tpu.dynamic_rotate %44 by %c511_i32 dim 1 : vector<16x512xf32>, i32 -> vector<16x512xf32>
    %54 = arith.mulf %53, %15 : vector<16x512xf32>
    %c497_i32 = arith.constant 497 : i32
    %55 = tpu.dynamic_rotate %44 by %c497_i32 dim 1 : vector<16x512xf32>, i32 -> vector<16x512xf32>
    %56 = arith.mulf %55, %18 : vector<16x512xf32>
    %c496_i32 = arith.constant 496 : i32
    %57 = tpu.dynamic_rotate %44 by %c496_i32 dim 1 : vector<16x512xf32>, i32 -> vector<16x512xf32>
    %58 = arith.mulf %57, %21 : vector<16x512xf32>
    %c495_i32 = arith.constant 495 : i32
    %59 = tpu.dynamic_rotate %44 by %c495_i32 dim 1 : vector<16x512xf32>, i32 -> vector<16x512xf32>
    %60 = arith.mulf %59, %24 : vector<16x512xf32>
    %61 = tpu.concatenate %46, %48, %50, %52, %44, %54, %56, %58, %60 in 0 : vector<16x512xf32>, vector<16x512xf32>, vector<16x512xf32>, vector<16x512xf32>, vector<16x512xf32>, vector<16x512xf32>, vector<16x512xf32>, vector<16x512xf32>, vector<16x512xf32> -> vector<144x512xf32>
    %cst_21 = arith.constant dense<0.000000e+00> : vector<8x512xf32>
    %62 = tpu.matmul %33, %61, %cst_21 {dimension_numbers = #tpu.dot_dimension_numbers<[1], [0], [0], [1], [0, 0, 1, 1], [], []>} : vector<8x144xf32>, vector<144x512xf32>, vector<8x512xf32> -> vector<8x512xf32>
    %c17_i32_22 = arith.constant 17 : i32
    %63 = tpu.dynamic_rotate %62 by %c17_i32_22 dim 1 : vector<8x512xf32>, i32 -> vector<8x512xf32>
    %64 = vector.extract_strided_slice %3 {offsets = [0, 0], sizes = [8, 512], strides = [1, 1]} : vector<16x512xf32> to vector<8x512xf32>
    %65 = arith.mulf %63, %64 : vector<8x512xf32>
    %c16_i32_23 = arith.constant 16 : i32
    %66 = tpu.dynamic_rotate %62 by %c16_i32_23 dim 1 : vector<8x512xf32>, i32 -> vector<8x512xf32>
    %67 = vector.extract_strided_slice %6 {offsets = [0, 0], sizes = [8, 512], strides = [1, 1]} : vector<16x512xf32> to vector<8x512xf32>
    %68 = arith.mulf %66, %67 : vector<8x512xf32>
    %c15_i32_24 = arith.constant 15 : i32
    %69 = tpu.dynamic_rotate %62 by %c15_i32_24 dim 1 : vector<8x512xf32>, i32 -> vector<8x512xf32>
    %70 = vector.extract_strided_slice %9 {offsets = [0, 0], sizes = [8, 512], strides = [1, 1]} : vector<16x512xf32> to vector<8x512xf32>
    %71 = arith.mulf %69, %70 : vector<8x512xf32>
    %c1_i32_25 = arith.constant 1 : i32
    %72 = tpu.dynamic_rotate %62 by %c1_i32_25 dim 1 : vector<8x512xf32>, i32 -> vector<8x512xf32>
    %73 = vector.extract_strided_slice %12 {offsets = [0, 0], sizes = [8, 512], strides = [1, 1]} : vector<16x512xf32> to vector<8x512xf32>
    %74 = arith.mulf %72, %73 : vector<8x512xf32>
    %c511_i32_26 = arith.constant 511 : i32
    %75 = tpu.dynamic_rotate %62 by %c511_i32_26 dim 1 : vector<8x512xf32>, i32 -> vector<8x512xf32>
    %76 = vector.extract_strided_slice %15 {offsets = [0, 0], sizes = [8, 512], strides = [1, 1]} : vector<16x512xf32> to vector<8x512xf32>
    %77 = arith.mulf %75, %76 : vector<8x512xf32>
    %c497_i32_27 = arith.constant 497 : i32
    %78 = tpu.dynamic_rotate %62 by %c497_i32_27 dim 1 : vector<8x512xf32>, i32 -> vector<8x512xf32>
    %79 = vector.extract_strided_slice %18 {offsets = [0, 0], sizes = [8, 512], strides = [1, 1]} : vector<16x512xf32> to vector<8x512xf32>
    %80 = arith.mulf %78, %79 : vector<8x512xf32>
    %c496_i32_28 = arith.constant 496 : i32
    %81 = tpu.dynamic_rotate %62 by %c496_i32_28 dim 1 : vector<8x512xf32>, i32 -> vector<8x512xf32>
    %82 = vector.extract_strided_slice %21 {offsets = [0, 0], sizes = [8, 512], strides = [1, 1]} : vector<16x512xf32> to vector<8x512xf32>
    %83 = arith.mulf %81, %82 : vector<8x512xf32>
    %c495_i32_29 = arith.constant 495 : i32
    %84 = tpu.dynamic_rotate %62 by %c495_i32_29 dim 1 : vector<8x512xf32>, i32 -> vector<8x512xf32>
    %85 = vector.extract_strided_slice %24 {offsets = [0, 0], sizes = [8, 512], strides = [1, 1]} : vector<16x512xf32> to vector<8x512xf32>
    %86 = arith.mulf %84, %85 : vector<8x512xf32>
    %87 = tpu.concatenate %65, %68, %71, %74, %62, %77, %80, %83, %86 in 0 : vector<8x512xf32>, vector<8x512xf32>, vector<8x512xf32>, vector<8x512xf32>, vector<8x512xf32>, vector<8x512xf32>, vector<8x512xf32>, vector<8x512xf32>, vector<8x512xf32> -> vector<72x512xf32>
    %cst_30 = arith.constant dense<0.000000e+00> : vector<8x512xf32>
    %88 = tpu.matmul %32, %87, %cst_30 {dimension_numbers = #tpu.dot_dimension_numbers<[1], [0], [0], [1], [0, 0, 1, 1], [], []>} : vector<8x72xf32>, vector<72x512xf32>, vector<8x512xf32> -> vector<8x512xf32>
    %89 = arith.subf %88, %31 : vector<8x512xf32>
    %c17_i32_31 = arith.constant 17 : i32
    %90 = tpu.dynamic_rotate %89 by %c17_i32_31 dim 1 : vector<8x512xf32>, i32 -> vector<8x512xf32>
    %91 = vector.extract_strided_slice %3 {offsets = [0, 0], sizes = [8, 512], strides = [1, 1]} : vector<16x512xf32> to vector<8x512xf32>
    %92 = arith.mulf %90, %91 : vector<8x512xf32>
    %c16_i32_32 = arith.constant 16 : i32
    %93 = tpu.dynamic_rotate %89 by %c16_i32_32 dim 1 : vector<8x512xf32>, i32 -> vector<8x512xf32>
    %94 = vector.extract_strided_slice %6 {offsets = [0, 0], sizes = [8, 512], strides = [1, 1]} : vector<16x512xf32> to vector<8x512xf32>
    %95 = arith.mulf %93, %94 : vector<8x512xf32>
    %c15_i32_33 = arith.constant 15 : i32
    %96 = tpu.dynamic_rotate %89 by %c15_i32_33 dim 1 : vector<8x512xf32>, i32 -> vector<8x512xf32>
    %97 = vector.extract_strided_slice %9 {offsets = [0, 0], sizes = [8, 512], strides = [1, 1]} : vector<16x512xf32> to vector<8x512xf32>
    %98 = arith.mulf %96, %97 : vector<8x512xf32>
    %c1_i32_34 = arith.constant 1 : i32
    %99 = tpu.dynamic_rotate %89 by %c1_i32_34 dim 1 : vector<8x512xf32>, i32 -> vector<8x512xf32>
    %100 = vector.extract_strided_slice %12 {offsets = [0, 0], sizes = [8, 512], strides = [1, 1]} : vector<16x512xf32> to vector<8x512xf32>
    %101 = arith.mulf %99, %100 : vector<8x512xf32>
    %c511_i32_35 = arith.constant 511 : i32
    %102 = tpu.dynamic_rotate %89 by %c511_i32_35 dim 1 : vector<8x512xf32>, i32 -> vector<8x512xf32>
    %103 = vector.extract_strided_slice %15 {offsets = [0, 0], sizes = [8, 512], strides = [1, 1]} : vector<16x512xf32> to vector<8x512xf32>
    %104 = arith.mulf %102, %103 : vector<8x512xf32>
    %c497_i32_36 = arith.constant 497 : i32
    %105 = tpu.dynamic_rotate %89 by %c497_i32_36 dim 1 : vector<8x512xf32>, i32 -> vector<8x512xf32>
    %106 = vector.extract_strided_slice %18 {offsets = [0, 0], sizes = [8, 512], strides = [1, 1]} : vector<16x512xf32> to vector<8x512xf32>
    %107 = arith.mulf %105, %106 : vector<8x512xf32>
    %c496_i32_37 = arith.constant 496 : i32
    %108 = tpu.dynamic_rotate %89 by %c496_i32_37 dim 1 : vector<8x512xf32>, i32 -> vector<8x512xf32>
    %109 = vector.extract_strided_slice %21 {offsets = [0, 0], sizes = [8, 512], strides = [1, 1]} : vector<16x512xf32> to vector<8x512xf32>
    %110 = arith.mulf %108, %109 : vector<8x512xf32>
    %c495_i32_38 = arith.constant 495 : i32
    %111 = tpu.dynamic_rotate %89 by %c495_i32_38 dim 1 : vector<8x512xf32>, i32 -> vector<8x512xf32>
    %112 = vector.extract_strided_slice %24 {offsets = [0, 0], sizes = [8, 512], strides = [1, 1]} : vector<16x512xf32> to vector<8x512xf32>
    %113 = arith.mulf %111, %112 : vector<8x512xf32>
    %114 = tpu.concatenate %92, %95, %98, %101, %89, %104, %107, %110, %113 in 0 : vector<8x512xf32>, vector<8x512xf32>, vector<8x512xf32>, vector<8x512xf32>, vector<8x512xf32>, vector<8x512xf32>, vector<8x512xf32>, vector<8x512xf32>, vector<8x512xf32> -> vector<72x512xf32>
    %cst_39 = arith.constant dense<0.000000e+00> : vector<8x512xf32>
    %115 = tpu.matmul %34, %114, %cst_39 {dimension_numbers = #tpu.dot_dimension_numbers<[1], [0], [0], [1], [0, 0, 1, 1], [], []>} : vector<8x72xf32>, vector<72x512xf32>, vector<8x512xf32> -> vector<8x512xf32>
    %116 = arith.subf %62, %115 : vector<8x512xf32>
    %117 = arith.addf %116, %27 : vector<8x512xf32>
    %cst_40 = arith.constant 0.000000e+00 : f32
    %118 = vector.broadcast %cst_40 : f32 to vector<8x512xf32>
    %119 = arith.maximumf %117, %118 : vector<8x512xf32>
    %120 = arith.subf %62, %119 : vector<8x512xf32>
    %c17_i32_41 = arith.constant 17 : i32
    %121 = tpu.dynamic_rotate %120 by %c17_i32_41 dim 1 : vector<8x512xf32>, i32 -> vector<8x512xf32>
    %122 = vector.extract_strided_slice %3 {offsets = [0, 0], sizes = [8, 512], strides = [1, 1]} : vector<16x512xf32> to vector<8x512xf32>
    %123 = arith.mulf %121, %122 : vector<8x512xf32>
    %c16_i32_42 = arith.constant 16 : i32
    %124 = tpu.dynamic_rotate %120 by %c16_i32_42 dim 1 : vector<8x512xf32>, i32 -> vector<8x512xf32>
    %125 = vector.extract_strided_slice %6 {offsets = [0, 0], sizes = [8, 512], strides = [1, 1]} : vector<16x512xf32> to vector<8x512xf32>
    %126 = arith.mulf %124, %125 : vector<8x512xf32>
    %c15_i32_43 = arith.constant 15 : i32
    %127 = tpu.dynamic_rotate %120 by %c15_i32_43 dim 1 : vector<8x512xf32>, i32 -> vector<8x512xf32>
    %128 = vector.extract_strided_slice %9 {offsets = [0, 0], sizes = [8, 512], strides = [1, 1]} : vector<16x512xf32> to vector<8x512xf32>
    %129 = arith.mulf %127, %128 : vector<8x512xf32>
    %c1_i32_44 = arith.constant 1 : i32
    %130 = tpu.dynamic_rotate %120 by %c1_i32_44 dim 1 : vector<8x512xf32>, i32 -> vector<8x512xf32>
    %131 = vector.extract_strided_slice %12 {offsets = [0, 0], sizes = [8, 512], strides = [1, 1]} : vector<16x512xf32> to vector<8x512xf32>
    %132 = arith.mulf %130, %131 : vector<8x512xf32>
    %c511_i32_45 = arith.constant 511 : i32
    %133 = tpu.dynamic_rotate %120 by %c511_i32_45 dim 1 : vector<8x512xf32>, i32 -> vector<8x512xf32>
    %134 = vector.extract_strided_slice %15 {offsets = [0, 0], sizes = [8, 512], strides = [1, 1]} : vector<16x512xf32> to vector<8x512xf32>
    %135 = arith.mulf %133, %134 : vector<8x512xf32>
    %c497_i32_46 = arith.constant 497 : i32
    %136 = tpu.dynamic_rotate %120 by %c497_i32_46 dim 1 : vector<8x512xf32>, i32 -> vector<8x512xf32>
    %137 = vector.extract_strided_slice %18 {offsets = [0, 0], sizes = [8, 512], strides = [1, 1]} : vector<16x512xf32> to vector<8x512xf32>
    %138 = arith.mulf %136, %137 : vector<8x512xf32>
    %c496_i32_47 = arith.constant 496 : i32
    %139 = tpu.dynamic_rotate %120 by %c496_i32_47 dim 1 : vector<8x512xf32>, i32 -> vector<8x512xf32>
    %140 = vector.extract_strided_slice %21 {offsets = [0, 0], sizes = [8, 512], strides = [1, 1]} : vector<16x512xf32> to vector<8x512xf32>
    %141 = arith.mulf %139, %140 : vector<8x512xf32>
    %c495_i32_48 = arith.constant 495 : i32
    %142 = tpu.dynamic_rotate %120 by %c495_i32_48 dim 1 : vector<8x512xf32>, i32 -> vector<8x512xf32>
    %143 = vector.extract_strided_slice %24 {offsets = [0, 0], sizes = [8, 512], strides = [1, 1]} : vector<16x512xf32> to vector<8x512xf32>
    %144 = arith.mulf %142, %143 : vector<8x512xf32>
    %145 = tpu.concatenate %123, %126, %129, %132, %120, %135, %138, %141, %144 in 0 : vector<8x512xf32>, vector<8x512xf32>, vector<8x512xf32>, vector<8x512xf32>, vector<8x512xf32>, vector<8x512xf32>, vector<8x512xf32>, vector<8x512xf32>, vector<8x512xf32> -> vector<72x512xf32>
    %cst_49 = arith.constant dense<0.000000e+00> : vector<16x512xf32>
    %146 = tpu.matmul %35, %145, %cst_49 {dimension_numbers = #tpu.dot_dimension_numbers<[1], [0], [0], [1], [0, 0, 1, 1], [], []>} : vector<16x72xf32>, vector<72x512xf32>, vector<16x512xf32> -> vector<16x512xf32>
    %147 = arith.subf %44, %146 : vector<16x512xf32>
    %148 = arith.addf %147, %30 : vector<16x512xf32>
    %cst_50 = arith.constant 0.000000e+00 : f32
    %149 = vector.broadcast %cst_50 : f32 to vector<16x512xf32>
    %150 = arith.maximumf %148, %149 : vector<16x512xf32>
    %c1_i32_51 = arith.constant 1 : i32
    %c17_i32_52 = arith.constant 17 : i32
    %151 = tpu.dynamic_rotate %150 by %c17_i32_52 dim 1 : vector<16x512xf32>, i32 -> vector<16x512xf32>
    %152 = arith.mulf %151, %3 : vector<16x512xf32>
    %c16_i32_53 = arith.constant 16 : i32
    %153 = tpu.dynamic_rotate %150 by %c16_i32_53 dim 1 : vector<16x512xf32>, i32 -> vector<16x512xf32>
    %154 = arith.mulf %153, %6 : vector<16x512xf32>
    %c15_i32_54 = arith.constant 15 : i32
    %155 = tpu.dynamic_rotate %150 by %c15_i32_54 dim 1 : vector<16x512xf32>, i32 -> vector<16x512xf32>
    %156 = arith.mulf %155, %9 : vector<16x512xf32>
    %c1_i32_55 = arith.constant 1 : i32
    %157 = tpu.dynamic_rotate %150 by %c1_i32_55 dim 1 : vector<16x512xf32>, i32 -> vector<16x512xf32>
    %158 = arith.mulf %157, %12 : vector<16x512xf32>
    %c511_i32_56 = arith.constant 511 : i32
    %159 = tpu.dynamic_rotate %150 by %c511_i32_56 dim 1 : vector<16x512xf32>, i32 -> vector<16x512xf32>
    %160 = arith.mulf %159, %15 : vector<16x512xf32>
    %c497_i32_57 = arith.constant 497 : i32
    %161 = tpu.dynamic_rotate %150 by %c497_i32_57 dim 1 : vector<16x512xf32>, i32 -> vector<16x512xf32>
    %162 = arith.mulf %161, %18 : vector<16x512xf32>
    %c496_i32_58 = arith.constant 496 : i32
    %163 = tpu.dynamic_rotate %150 by %c496_i32_58 dim 1 : vector<16x512xf32>, i32 -> vector<16x512xf32>
    %164 = arith.mulf %163, %21 : vector<16x512xf32>
    %c495_i32_59 = arith.constant 495 : i32
    %165 = tpu.dynamic_rotate %150 by %c495_i32_59 dim 1 : vector<16x512xf32>, i32 -> vector<16x512xf32>
    %166 = arith.mulf %165, %24 : vector<16x512xf32>
    %167 = tpu.concatenate %152, %154, %156, %158, %150, %160, %162, %164, %166 in 0 : vector<16x512xf32>, vector<16x512xf32>, vector<16x512xf32>, vector<16x512xf32>, vector<16x512xf32>, vector<16x512xf32>, vector<16x512xf32>, vector<16x512xf32>, vector<16x512xf32> -> vector<144x512xf32>
    %cst_60 = arith.constant dense<0.000000e+00> : vector<8x512xf32>
    %168 = tpu.matmul %33, %167, %cst_60 {dimension_numbers = #tpu.dot_dimension_numbers<[1], [0], [0], [1], [0, 0, 1, 1], [], []>} : vector<8x144xf32>, vector<144x512xf32>, vector<8x512xf32> -> vector<8x512xf32>
    %c17_i32_61 = arith.constant 17 : i32
    %169 = tpu.dynamic_rotate %168 by %c17_i32_61 dim 1 : vector<8x512xf32>, i32 -> vector<8x512xf32>
    %170 = vector.extract_strided_slice %3 {offsets = [0, 0], sizes = [8, 512], strides = [1, 1]} : vector<16x512xf32> to vector<8x512xf32>
    %171 = arith.mulf %169, %170 : vector<8x512xf32>
    %c16_i32_62 = arith.constant 16 : i32
    %172 = tpu.dynamic_rotate %168 by %c16_i32_62 dim 1 : vector<8x512xf32>, i32 -> vector<8x512xf32>
    %173 = vector.extract_strided_slice %6 {offsets = [0, 0], sizes = [8, 512], strides = [1, 1]} : vector<16x512xf32> to vector<8x512xf32>
    %174 = arith.mulf %172, %173 : vector<8x512xf32>
    %c15_i32_63 = arith.constant 15 : i32
    %175 = tpu.dynamic_rotate %168 by %c15_i32_63 dim 1 : vector<8x512xf32>, i32 -> vector<8x512xf32>
    %176 = vector.extract_strided_slice %9 {offsets = [0, 0], sizes = [8, 512], strides = [1, 1]} : vector<16x512xf32> to vector<8x512xf32>
    %177 = arith.mulf %175, %176 : vector<8x512xf32>
    %c1_i32_64 = arith.constant 1 : i32
    %178 = tpu.dynamic_rotate %168 by %c1_i32_64 dim 1 : vector<8x512xf32>, i32 -> vector<8x512xf32>
    %179 = vector.extract_strided_slice %12 {offsets = [0, 0], sizes = [8, 512], strides = [1, 1]} : vector<16x512xf32> to vector<8x512xf32>
    %180 = arith.mulf %178, %179 : vector<8x512xf32>
    %c511_i32_65 = arith.constant 511 : i32
    %181 = tpu.dynamic_rotate %168 by %c511_i32_65 dim 1 : vector<8x512xf32>, i32 -> vector<8x512xf32>
    %182 = vector.extract_strided_slice %15 {offsets = [0, 0], sizes = [8, 512], strides = [1, 1]} : vector<16x512xf32> to vector<8x512xf32>
    %183 = arith.mulf %181, %182 : vector<8x512xf32>
    %c497_i32_66 = arith.constant 497 : i32
    %184 = tpu.dynamic_rotate %168 by %c497_i32_66 dim 1 : vector<8x512xf32>, i32 -> vector<8x512xf32>
    %185 = vector.extract_strided_slice %18 {offsets = [0, 0], sizes = [8, 512], strides = [1, 1]} : vector<16x512xf32> to vector<8x512xf32>
    %186 = arith.mulf %184, %185 : vector<8x512xf32>
    %c496_i32_67 = arith.constant 496 : i32
    %187 = tpu.dynamic_rotate %168 by %c496_i32_67 dim 1 : vector<8x512xf32>, i32 -> vector<8x512xf32>
    %188 = vector.extract_strided_slice %21 {offsets = [0, 0], sizes = [8, 512], strides = [1, 1]} : vector<16x512xf32> to vector<8x512xf32>
    %189 = arith.mulf %187, %188 : vector<8x512xf32>
    %c495_i32_68 = arith.constant 495 : i32
    %190 = tpu.dynamic_rotate %168 by %c495_i32_68 dim 1 : vector<8x512xf32>, i32 -> vector<8x512xf32>
    %191 = vector.extract_strided_slice %24 {offsets = [0, 0], sizes = [8, 512], strides = [1, 1]} : vector<16x512xf32> to vector<8x512xf32>
    %192 = arith.mulf %190, %191 : vector<8x512xf32>
    %193 = tpu.concatenate %171, %174, %177, %180, %168, %183, %186, %189, %192 in 0 : vector<8x512xf32>, vector<8x512xf32>, vector<8x512xf32>, vector<8x512xf32>, vector<8x512xf32>, vector<8x512xf32>, vector<8x512xf32>, vector<8x512xf32>, vector<8x512xf32> -> vector<72x512xf32>
    %cst_69 = arith.constant dense<0.000000e+00> : vector<8x512xf32>
    %194 = tpu.matmul %32, %193, %cst_69 {dimension_numbers = #tpu.dot_dimension_numbers<[1], [0], [0], [1], [0, 0, 1, 1], [], []>} : vector<8x72xf32>, vector<72x512xf32>, vector<8x512xf32> -> vector<8x512xf32>
    %195 = arith.subf %194, %31 : vector<8x512xf32>
    %c17_i32_70 = arith.constant 17 : i32
    %196 = tpu.dynamic_rotate %195 by %c17_i32_70 dim 1 : vector<8x512xf32>, i32 -> vector<8x512xf32>
    %197 = vector.extract_strided_slice %3 {offsets = [0, 0], sizes = [8, 512], strides = [1, 1]} : vector<16x512xf32> to vector<8x512xf32>
    %198 = arith.mulf %196, %197 : vector<8x512xf32>
    %c16_i32_71 = arith.constant 16 : i32
    %199 = tpu.dynamic_rotate %195 by %c16_i32_71 dim 1 : vector<8x512xf32>, i32 -> vector<8x512xf32>
    %200 = vector.extract_strided_slice %6 {offsets = [0, 0], sizes = [8, 512], strides = [1, 1]} : vector<16x512xf32> to vector<8x512xf32>
    %201 = arith.mulf %199, %200 : vector<8x512xf32>
    %c15_i32_72 = arith.constant 15 : i32
    %202 = tpu.dynamic_rotate %195 by %c15_i32_72 dim 1 : vector<8x512xf32>, i32 -> vector<8x512xf32>
    %203 = vector.extract_strided_slice %9 {offsets = [0, 0], sizes = [8, 512], strides = [1, 1]} : vector<16x512xf32> to vector<8x512xf32>
    %204 = arith.mulf %202, %203 : vector<8x512xf32>
    %c1_i32_73 = arith.constant 1 : i32
    %205 = tpu.dynamic_rotate %195 by %c1_i32_73 dim 1 : vector<8x512xf32>, i32 -> vector<8x512xf32>
    %206 = vector.extract_strided_slice %12 {offsets = [0, 0], sizes = [8, 512], strides = [1, 1]} : vector<16x512xf32> to vector<8x512xf32>
    %207 = arith.mulf %205, %206 : vector<8x512xf32>
    %c511_i32_74 = arith.constant 511 : i32
    %208 = tpu.dynamic_rotate %195 by %c511_i32_74 dim 1 : vector<8x512xf32>, i32 -> vector<8x512xf32>
    %209 = vector.extract_strided_slice %15 {offsets = [0, 0], sizes = [8, 512], strides = [1, 1]} : vector<16x512xf32> to vector<8x512xf32>
    %210 = arith.mulf %208, %209 : vector<8x512xf32>
    %c497_i32_75 = arith.constant 497 : i32
    %211 = tpu.dynamic_rotate %195 by %c497_i32_75 dim 1 : vector<8x512xf32>, i32 -> vector<8x512xf32>
    %212 = vector.extract_strided_slice %18 {offsets = [0, 0], sizes = [8, 512], strides = [1, 1]} : vector<16x512xf32> to vector<8x512xf32>
    %213 = arith.mulf %211, %212 : vector<8x512xf32>
    %c496_i32_76 = arith.constant 496 : i32
    %214 = tpu.dynamic_rotate %195 by %c496_i32_76 dim 1 : vector<8x512xf32>, i32 -> vector<8x512xf32>
    %215 = vector.extract_strided_slice %21 {offsets = [0, 0], sizes = [8, 512], strides = [1, 1]} : vector<16x512xf32> to vector<8x512xf32>
    %216 = arith.mulf %214, %215 : vector<8x512xf32>
    %c495_i32_77 = arith.constant 495 : i32
    %217 = tpu.dynamic_rotate %195 by %c495_i32_77 dim 1 : vector<8x512xf32>, i32 -> vector<8x512xf32>
    %218 = vector.extract_strided_slice %24 {offsets = [0, 0], sizes = [8, 512], strides = [1, 1]} : vector<16x512xf32> to vector<8x512xf32>
    %219 = arith.mulf %217, %218 : vector<8x512xf32>
    %220 = tpu.concatenate %198, %201, %204, %207, %195, %210, %213, %216, %219 in 0 : vector<8x512xf32>, vector<8x512xf32>, vector<8x512xf32>, vector<8x512xf32>, vector<8x512xf32>, vector<8x512xf32>, vector<8x512xf32>, vector<8x512xf32>, vector<8x512xf32> -> vector<72x512xf32>
    %cst_78 = arith.constant dense<0.000000e+00> : vector<8x512xf32>
    %221 = tpu.matmul %34, %220, %cst_78 {dimension_numbers = #tpu.dot_dimension_numbers<[1], [0], [0], [1], [0, 0, 1, 1], [], []>} : vector<8x72xf32>, vector<72x512xf32>, vector<8x512xf32> -> vector<8x512xf32>
    %222 = arith.subf %168, %221 : vector<8x512xf32>
    %223 = arith.addf %222, %27 : vector<8x512xf32>
    %cst_79 = arith.constant 0.000000e+00 : f32
    %224 = vector.broadcast %cst_79 : f32 to vector<8x512xf32>
    %225 = arith.maximumf %223, %224 : vector<8x512xf32>
    %226 = arith.subf %168, %225 : vector<8x512xf32>
    %c17_i32_80 = arith.constant 17 : i32
    %227 = tpu.dynamic_rotate %226 by %c17_i32_80 dim 1 : vector<8x512xf32>, i32 -> vector<8x512xf32>
    %228 = vector.extract_strided_slice %3 {offsets = [0, 0], sizes = [8, 512], strides = [1, 1]} : vector<16x512xf32> to vector<8x512xf32>
    %229 = arith.mulf %227, %228 : vector<8x512xf32>
    %c16_i32_81 = arith.constant 16 : i32
    %230 = tpu.dynamic_rotate %226 by %c16_i32_81 dim 1 : vector<8x512xf32>, i32 -> vector<8x512xf32>
    %231 = vector.extract_strided_slice %6 {offsets = [0, 0], sizes = [8, 512], strides = [1, 1]} : vector<16x512xf32> to vector<8x512xf32>
    %232 = arith.mulf %230, %231 : vector<8x512xf32>
    %c15_i32_82 = arith.constant 15 : i32
    %233 = tpu.dynamic_rotate %226 by %c15_i32_82 dim 1 : vector<8x512xf32>, i32 -> vector<8x512xf32>
    %234 = vector.extract_strided_slice %9 {offsets = [0, 0], sizes = [8, 512], strides = [1, 1]} : vector<16x512xf32> to vector<8x512xf32>
    %235 = arith.mulf %233, %234 : vector<8x512xf32>
    %c1_i32_83 = arith.constant 1 : i32
    %236 = tpu.dynamic_rotate %226 by %c1_i32_83 dim 1 : vector<8x512xf32>, i32 -> vector<8x512xf32>
    %237 = vector.extract_strided_slice %12 {offsets = [0, 0], sizes = [8, 512], strides = [1, 1]} : vector<16x512xf32> to vector<8x512xf32>
    %238 = arith.mulf %236, %237 : vector<8x512xf32>
    %c511_i32_84 = arith.constant 511 : i32
    %239 = tpu.dynamic_rotate %226 by %c511_i32_84 dim 1 : vector<8x512xf32>, i32 -> vector<8x512xf32>
    %240 = vector.extract_strided_slice %15 {offsets = [0, 0], sizes = [8, 512], strides = [1, 1]} : vector<16x512xf32> to vector<8x512xf32>
    %241 = arith.mulf %239, %240 : vector<8x512xf32>
    %c497_i32_85 = arith.constant 497 : i32
    %242 = tpu.dynamic_rotate %226 by %c497_i32_85 dim 1 : vector<8x512xf32>, i32 -> vector<8x512xf32>
    %243 = vector.extract_strided_slice %18 {offsets = [0, 0], sizes = [8, 512], strides = [1, 1]} : vector<16x512xf32> to vector<8x512xf32>
    %244 = arith.mulf %242, %243 : vector<8x512xf32>
    %c496_i32_86 = arith.constant 496 : i32
    %245 = tpu.dynamic_rotate %226 by %c496_i32_86 dim 1 : vector<8x512xf32>, i32 -> vector<8x512xf32>
    %246 = vector.extract_strided_slice %21 {offsets = [0, 0], sizes = [8, 512], strides = [1, 1]} : vector<16x512xf32> to vector<8x512xf32>
    %247 = arith.mulf %245, %246 : vector<8x512xf32>
    %c495_i32_87 = arith.constant 495 : i32
    %248 = tpu.dynamic_rotate %226 by %c495_i32_87 dim 1 : vector<8x512xf32>, i32 -> vector<8x512xf32>
    %249 = vector.extract_strided_slice %24 {offsets = [0, 0], sizes = [8, 512], strides = [1, 1]} : vector<16x512xf32> to vector<8x512xf32>
    %250 = arith.mulf %248, %249 : vector<8x512xf32>
    %251 = tpu.concatenate %229, %232, %235, %238, %226, %241, %244, %247, %250 in 0 : vector<8x512xf32>, vector<8x512xf32>, vector<8x512xf32>, vector<8x512xf32>, vector<8x512xf32>, vector<8x512xf32>, vector<8x512xf32>, vector<8x512xf32>, vector<8x512xf32> -> vector<72x512xf32>
    %cst_88 = arith.constant dense<0.000000e+00> : vector<16x512xf32>
    %252 = tpu.matmul %35, %251, %cst_88 {dimension_numbers = #tpu.dot_dimension_numbers<[1], [0], [0], [1], [0, 0, 1, 1], [], []>} : vector<16x72xf32>, vector<72x512xf32>, vector<16x512xf32> -> vector<16x512xf32>
    %253 = arith.subf %150, %252 : vector<16x512xf32>
    %254 = arith.addf %253, %30 : vector<16x512xf32>
    %cst_89 = arith.constant 0.000000e+00 : f32
    %255 = vector.broadcast %cst_89 : f32 to vector<16x512xf32>
    %256 = arith.maximumf %254, %255 : vector<16x512xf32>
    %c0_90 = arith.constant 0 : index
    %c0_91 = arith.constant 0 : index
    %257 = vector.load %arg12[%c0_90, %c0_91] : memref<16x512xf32, #tpu.memory_space<vmem>>, vector<16x512xf32>
    tpu.vector_store %arg12[%c0_90, %c0_91], %256 {strides = array<i32>} : memref<16x512xf32, #tpu.memory_space<vmem>>, vector<16x512xf32>,
    return
  }
  func.func @transform_0(%arg0: i32) -> (i32, i32) {
    %c0_i32 = arith.constant 0 : i32
    %c0_i32_0 = arith.constant 0 : i32
    return %c0_i32, %arg0 : i32, i32
  }
  func.func @transform_1(%arg0: i32) -> (i32, i32) {
    %c0_i32 = arith.constant 0 : i32
    %c0_i32_0 = arith.constant 0 : i32
    return %c0_i32, %arg0 : i32, i32
  }
  func.func @transform_2(%arg0: i32) -> (i32, i32) {
    %c0_i32 = arith.constant 0 : i32
    %c0_i32_0 = arith.constant 0 : i32
    %c0_i32_1 = arith.constant 0 : i32
    return %c0_i32, %c0_i32_0 : i32, i32
  }
  func.func @transform_3(%arg0: i32) -> (i32, i32) {
    %c0_i32 = arith.constant 0 : i32
    %c0_i32_0 = arith.constant 0 : i32
    %c0_i32_1 = arith.constant 0 : i32
    return %c0_i32, %c0_i32_0 : i32, i32
  }
  func.func @transform_4(%arg0: i32) -> (i32, i32) {
    %c0_i32 = arith.constant 0 : i32
    %c0_i32_0 = arith.constant 0 : i32
    %c0_i32_1 = arith.constant 0 : i32
    return %c0_i32, %c0_i32_0 : i32, i32
  }
  func.func @transform_5(%arg0: i32) -> (i32, i32) {
    %c0_i32 = arith.constant 0 : i32
    %c0_i32_0 = arith.constant 0 : i32
    %c0_i32_1 = arith.constant 0 : i32
    return %c0_i32, %c0_i32_0 : i32, i32
  }
  func.func @transform_6(%arg0: i32) -> (i32, i32) {
    %c0_i32 = arith.constant 0 : i32
    %c0_i32_0 = arith.constant 0 : i32
    %c0_i32_1 = arith.constant 0 : i32
    return %c0_i32, %c0_i32_0 : i32, i32
  }
  func.func @transform_7(%arg0: i32) -> (i32, i32) {
    %c0_i32 = arith.constant 0 : i32
    %c0_i32_0 = arith.constant 0 : i32
    %c0_i32_1 = arith.constant 0 : i32
    return %c0_i32, %c0_i32_0 : i32, i32
  }
  func.func @transform_8(%arg0: i32) -> (i32, i32) {
    %c0_i32 = arith.constant 0 : i32
    %c0_i32_0 = arith.constant 0 : i32
    %c0_i32_1 = arith.constant 0 : i32
    return %c0_i32, %c0_i32_0 : i32, i32
  }
  func.func @transform_9(%arg0: i32) -> (i32, i32) {
    %c0_i32 = arith.constant 0 : i32
    %c0_i32_0 = arith.constant 0 : i32
    %c0_i32_1 = arith.constant 0 : i32
    return %c0_i32, %c0_i32_0 : i32, i32
  }
  func.func @transform_10(%arg0: i32) -> (i32, i32) {
    %c0_i32 = arith.constant 0 : i32
    %c0_i32_0 = arith.constant 0 : i32
    %c0_i32_1 = arith.constant 0 : i32
    return %c0_i32, %c0_i32_0 : i32, i32
  }
  func.func @transform_11(%arg0: i32) -> (i32, i32) {
    %c0_i32 = arith.constant 0 : i32
    %c0_i32_0 = arith.constant 0 : i32
    return %c0_i32, %arg0 : i32, i32
  }
}

</mosaic_0001>

<bundles_post_ra>
// kernel: ml_ista_block_forward.3
= control target key start
LH: loop header
LB: loop body
LE: loop exit
PB: predicated region body
PF: predicated region fallthrough
CT: control target
= control target key end

     0   :  { %s495_s22 = smov 111   ;;  %s496_s25 = smov 112   ;;  %v502_v4 = vmov 0.0   ;;  %v38_v5 = vlaneseq  ;;  %vm296_vm8 = vcmask 588800   ;;  %vm451_vm9 = vcmask 7168   ;;  %s794_s0 = inlined_call_operand.vmem [shape: f32[8,512], index: 0, kind: input, shape index: {}]   ;;  %s795_s2 = inlined_call_operand.vmem [shape: f32[9,512], index: 2, kind: input, shape index: {}]   ;;  %s796_s1 = inlined_call_operand.vmem [shape: f32[8,72], index: 1, kind: input, shape index: {}]   ;;  %s797_s3 = inlined_call_operand.vmem [shape: f32[8,512], index: 3, kind: output, shape index: {0}]   ;;  %s798_s4 = inlined_call_operand.vmem [shape: f32[1,8,1], index: 4, kind: output, shape index: {1}]   ;;  %s799_s5 = inlined_call_operand.vmem [shape: f32[1,8,1], index: 5, kind: output, shape index: {2}]  }
   0x1   :  { %v537_v0 = vld [vmem:[%s794_s0 + $0x8] sm:$0xff]  ;;  %v542_v1 = vld [vmem:[%s794_s0] sm:$0xff]  ;;  %v549_v2 = vld [vmem:[%s794_s0 + $0x10] sm:$0xff]  ;;  %s497_s26 = smov 113   ;;  %s498_s29 = smov 127   ;;  %364 = vmatprep.mubr.f32.mxu0 %v502_v4  ;;  %435 = vmatprep.mubr.f32.mxu1 %v502_v4 }
   0x2   :  { %265 = vrot.lane.b32.xlu0 %v537_v0, %s495_s22  ;;  %263 = vrot.lane.b32.xlu1 %v542_v1, %s495_s22  ;;  %v560_v3 = vld [vmem:[%s794_s0 + $0x18] sm:$0xff]  ;;  %s499_s30 = smov 1   ;;  %s500_s0 = smov 15   ;;  %v586_v6 = vand.u32 127, %v38_v5  ;;  %v588_v7 = vshrl.u32 %v38_v5, 7  ;;  %v600_v12 = vld [vmem:[%s795_s2 + $0x8] sm:$0xff] }
   0x3   :  { %s501_s6 = smov 16   ;;  %s503_s7 = smov 17   ;;  %v481_v11 = vld [vmem:[%s795_s2 + $0x28] ss:$0 sm:$0xff]  ;;  %v605_v13 = vld [vmem:[%s795_s2] sm:$0xff]  ;;  %v654_v48 = vld [vmem:[%s795_s2 + $0x10] sm:$0xff] }
   0x4   :  { %vm271_vm0 = vcmp.lt.s32.totalorder %v586_v6, 111  ;;  %v592_v10 = vsub.s32 7, %v588_v7  ;;  %v480_v17 = vld [vmem:[%s795_s2 + $0x20] ss:$0 sm:$0xff]  ;;  %vm238_vm1 = vcmp.lt.s32.totalorder %v586_v6, 112  ;;  %v620_v22 = vsub.s32 6, %v588_v7 }
   0x5   :  { %vm205_vm2 = vcmp.lt.s32.totalorder %v586_v6, 113  ;;  %v634_v36 = vsub.s32 5, %v588_v7  ;;  %v483_v37 = vld [vmem:[%s795_s2 + $0x38] ss:$0 sm:$0xff]  ;;  %v482_v38 = vld [vmem:[%s795_s2 + $0x30] ss:$0 sm:$0xff] }
   0x6   :  { %267 = vrot.lane.b32.xlu0 %v549_v2, %s495_s22  ;;  %232 = vrot.lane.b32.xlu1 %v537_v0, %s496_s25  ;;  %v250_v20 = vrot.slane %v600_v12, %v592_v10  ;;  %v246_v21 = vrot.slane %v605_v13, %v592_v10  ;;  %v217_v30 = vrot.slane %v600_v12, %v620_v22  ;;  %vm172_vm3 = vcmp.lt.s32.totalorder %v586_v6, 127  ;;  %v659_v49 = vld [vmem:[%s795_s2 + $0x18] sm:$0xff] }
   0x7   :  { %v213_v35 = vrot.slane %v605_v13, %v620_v22  ;;  %v184_v46 = vrot.slane %v600_v12, %v634_v36  ;;  %v254_v54 = vrot.slane %v654_v48, %v592_v10  ;;  %v258_v55 = vrot.slane %v659_v49, %v592_v10 }
   0x8   :  { %v180_v56 = vrot.slane %v605_v13, %v634_v36  ;;  %v221_v59 = vrot.slane %v654_v48, %v620_v22  ;;  %v678_v63 = vsub.s32 3, %v588_v7  ;;  %vm139_vm4 = vcmp.lt.s32.totalorder %v586_v6, 1 }
   0x9   :  { %vm106_vm5 = vcmp.lt.s32.totalorder %v586_v6, 15  ;;  %vm73_vm6 = vcmp.lt.s32.totalorder %v586_v6, 16  ;;  %vm40_vm7 = vcmp.lt.s32.totalorder %v586_v6, 17 }
   0xa   :  { %234 = vrot.lane.b32.xlu0 %v549_v2, %s496_s25  ;;  %230 = vrot.lane.b32.xlu1 %v542_v1, %s496_s25 }
   0xe   :  { %199 = vrot.lane.b32.xlu0 %v537_v0, %s497_s26  ;;  %201 = vrot.lane.b32.xlu1 %v549_v2, %s497_s26 }
  0x12   :  { %269 = vrot.lane.b32.xlu0 %v560_v3, %s495_s22  ;;  %197 = vrot.lane.b32.xlu1 %v542_v1, %s497_s26 }
  0x16   :  { %166 = vrot.lane.b32.xlu0 %v537_v0, %s498_s29  ;;  %168 = vrot.lane.b32.xlu1 %v549_v2, %s498_s29 }
  0x1a   :  { %236 = vrot.lane.b32.xlu0 %v560_v3, %s496_s25  ;;  %164 = vrot.lane.b32.xlu1 %v542_v1, %s498_s29 }
  0x1e   :  { %203 = vrot.lane.b32.xlu0 %v560_v3, %s497_s26  ;;  %131 = vrot.lane.b32.xlu1 %v542_v1, %s499_s30 }
  0x22   :  { %133 = vrot.lane.b32.xlu0 %v537_v0, %s499_s30  ;;  %170 = vrot.lane.b32.xlu1 %v560_v3, %s498_s29 }
  0x26   :  { %137 = vrot.lane.b32.xlu0 %v560_v3, %s499_s30  ;;  %98 = vrot.lane.b32.xlu1 %v542_v1, %s500_s0 }
  0x2a   :  { %100 = vrot.lane.b32.xlu0 %v537_v0, %s500_s0  ;;  %104 = vrot.lane.b32.xlu1 %v560_v3, %s500_s0 }
  0x2e   :  { %65 = vrot.lane.b32.xlu0 %v542_v1, %s501_s6  ;;  %67 = vrot.lane.b32.xlu1 %v537_v0, %s501_s6 }
  0x32   :  { %135 = vrot.lane.b32.xlu0 %v549_v2, %s499_s30  ;;  %71 = vrot.lane.b32.xlu1 %v560_v3, %s501_s6 }
  0x36   :  { %30 = vrot.lane.b32.xlu0 %v542_v1, %s503_s7  ;;  %32 = vrot.lane.b32.xlu1 %v537_v0, %s503_s7 }
  0x3a   :  { %102 = vrot.lane.b32.xlu0 %v549_v2, %s500_s0  ;;  %36 = vrot.lane.b32.xlu1 %v560_v3, %s503_s7 }
  0x3e   :  { %69 = vrot.lane.b32.xlu0 %v549_v2, %s501_s6  ;;  %34 = vrot.lane.b32.xlu1 %v549_v2, %s503_s7 }
  0x74   :  { %v266_v8 = vpop.permute.xlu0 %265  ;;  %v264_v9 = vpop.permute.xlu1 %263 }
  0x75   :  { %v274_v14 = vsel %vm271_vm0, %v264_v9, %v266_v8 }
  0x76   :  { %v292_v23 = vmul.f32 %v480_v17, %v274_v14 }
  0x78   :  { %v268_v15 = vpop.permute.xlu0 %267  ;;  %v233_v16 = vpop.permute.xlu1 %232 }
  0x79   :  { %v273_v18 = vsel %vm271_vm0, %v266_v8, %v268_v15 }
  0x7a   :  { %v293_v19 = vmul.f32 %v481_v11, %v273_v18 }
  0x7c   :  { %314 = vmatprep.subr.mxu0 %v293_v19  ;;  %v235_v24 = vpop.permute.xlu0 %234  ;;  %v231_v25 = vpop.permute.xlu1 %230  ;;  %v188_v19 = vrot.slane %v654_v48, %v634_v36 }
  0x7d   :  { %v240_v26 = vsel %vm238_vm1, %v233_v16, %v235_v24  ;;  %v241_v27 = vsel %vm238_vm1, %v231_v25, %v233_v16  ;;  %315 = vmatpush1.msra.mxu0 %v292_v23  ;;  %v151_v16 = vrot.slane %v600_v12, %v678_v63 }
  0x7e   :  { %v260_v28 = vmul.f32 %v250_v20, %v240_v26  ;;  %v259_v29 = vmul.f32 %v246_v21, %v241_v27  ;;  %v192_v20 = vrot.slane %v659_v49, %v634_v36 }
  0x80   :  { %v200_v31 = vpop.permute.xlu0 %199  ;;  %316 = vmatprep.subr.mxu0 %v260_v28  ;;  %v202_v32 = vpop.permute.xlu1 %201 }
  0x81   :  { %v207_v33 = vsel %vm205_vm2, %v200_v31, %v202_v32  ;;  %317 = vmatpush1.msra.mxu0 %v259_v29 }
  0x82   :  { %v227_v34 = vmul.f32 %v217_v30, %v207_v33 }
  0x84   :  { %v270_v39 = vpop.permute.xlu0 %269  ;;  %318 = vmatprep.subr.mxu0 %v227_v34  ;;  %v198_v40 = vpop.permute.xlu1 %197 }
  0x85   :  { %v272_v41 = vsel %vm271_vm0, %v268_v15, %v270_v39  ;;  %v208_v42 = vsel %vm205_vm2, %v198_v40, %v200_v31  ;;  %v275_v43 = vsel %vm271_vm0, %v270_v39, %v264_v9  ;;  %v225_v9 = vrot.slane %v659_v49, %v620_v22 }
  0x86   :  { %v226_v44 = vmul.f32 %v213_v35, %v208_v42  ;;  %v295_v45 = vmul.f32 %v483_v37, %v275_v43  ;;  %v294_v47 = vmul.f32 %v482_v38, %v272_v41  ;;  %v714_v35 = vsub.s32 1, %v588_v7 }
  0x88   :  { %v167_v50 = vpop.permute.xlu0 %166  ;;  %319 = vmatpush1.msra.mxu0 %v226_v44  ;;  %385 = vmatprep.subr.mxu1 %v295_v45  ;;  %v169_v51 = vpop.permute.xlu1 %168  ;;  %v85_v42 = vrot.slane %v600_v12, %v714_v35  ;;  %v155_v44 = vrot.slane %v654_v48, %v678_v63 }
  0x89   :  { %v174_v52 = vsel %vm172_vm3, %v167_v50, %v169_v51  ;;  %386 = vmatpush1.msra.mxu1 %v294_v47  ;;  %v81_v47 = vrot.slane %v605_v13, %v714_v35 }
  0x8a   :  { %v194_v53 = vmul.f32 %v184_v46, %v174_v52  ;;  %v159_v46 = vrot.slane %v659_v49, %v678_v63 }
  0x8c   :  { %v237_v57 = vpop.permute.xlu0 %236  ;;  %320 = vmatprep.subr.mxu0 %v194_v53  ;;  %v165_v58 = vpop.permute.xlu1 %164 }
  0x8d   :  { %v239_v60 = vsel %vm238_vm1, %v235_v24, %v237_v57  ;;  %v242_v61 = vsel %vm238_vm1, %v237_v57, %v231_v25  ;;  %v175_v62 = vsel %vm172_vm3, %v165_v58, %v167_v50  ;;  %v147_v25 = vrot.slane %v605_v13, %v678_v63 }
  0x8e   :  { %v261_v4 = vmul.f32 %v254_v54, %v239_v60  ;;  %v262_v5 = vmul.f32 %v258_v55, %v242_v61  ;;  %v193_v8 = vmul.f32 %v180_v56, %v175_v62  ;;  %v47_v50 = vsub.s32 0, %v588_v7 }
  0x90   :  { %v204_v10 = vpop.permute.xlu0 %203  ;;  %321 = vmatpush1.msra.mxu0 %v193_v8  ;;  %387 = vmatprep.subr.mxu1 %v262_v5  ;;  %v132_v11 = vpop.permute.xlu1 %131  ;;  %v48_v5 = vrot.slane %v605_v13, %v47_v50 }
  0x91   :  { %v206_v14 = vsel %vm205_vm2, %v202_v32, %v204_v10  ;;  %v209_v15 = vsel %vm205_vm2, %v204_v10, %v198_v40  ;;  %388 = vmatpush1.msra.mxu1 %v261_v4  ;;  %322 = vmatprep.subr.mxu0 %v537_v0 }
  0x92   :  { %v228_v17 = vmul.f32 %v221_v59, %v206_v14  ;;  %v229_v18 = vmul.f32 %v225_v9, %v209_v15  ;;  %323 = vmatpush1.msra.mxu0 %v542_v1  ;;  %v704_v1 = vsub.s32 2, %v588_v7  ;;  %v52_v59 = vrot.slane %v600_v12, %v47_v50 }
  0x93   :  { %v89_v14 = vrot.slane %v654_v48, %v714_v35 }
  0x94   :  { %v134_v21 = vpop.permute.xlu0 %133  ;;  %389 = vmatprep.subr.mxu1 %v229_v18  ;;  %v171_v22 = vpop.permute.xlu1 %170  ;;  %v118_v33 = vrot.slane %v600_v12, %v704_v1  ;;  %v114_v34 = vrot.slane %v605_v13, %v704_v1  ;;  %v122_v63 = vrot.slane %v654_v48, %v704_v1  ;;  %v126_v4 = vrot.slane %v659_v49, %v704_v1  ;;  %v29_v18 = vld [vmem:[%s796_s1] sm:$0xff] }
  0x95   :  { %v142_v23 = vsel %vm139_vm4, %v132_v11, %v134_v21  ;;  %v173_v24 = vsel %vm172_vm3, %v169_v51, %v171_v22  ;;  %v176_v0 = vsel %vm172_vm3, %v171_v22, %v165_v58  ;;  %390 = vmatpush1.msra.mxu1 %v228_v17  ;;  %v93_v13 = vrot.slane %v659_v49, %v714_v35 }
  0x96   :  { %v161_v26 = vmul.f32 %v151_v16, %v142_v23  ;;  %v195_v27 = vmul.f32 %v188_v19, %v173_v24  ;;  %v196_v28 = vmul.f32 %v192_v20, %v176_v0  ;;  %v60_v20 = vrot.slane %v659_v49, %v47_v50 }
  0x97   :  { %v56_v24 = vrot.slane %v654_v48, %v47_v50 }
  0x98   :  { %v138_v29 = vpop.permute.xlu0 %137  ;;  %324 = vmatprep.subr.mxu0 %v161_v26  ;;  %391 = vmatprep.subr.mxu1 %v196_v28  ;;  %v99_v30 = vpop.permute.xlu1 %98 }
  0x99   :  { %v143_v31 = vsel %vm139_vm4, %v138_v29, %v132_v11  ;;  %392 = vmatpush1.msra.mxu1 %v195_v27 }
  0x9a   :  { %v160_v32 = vmul.f32 %v147_v25, %v143_v31  ;;  %393 = vmatprep.subr.mxu1 %v560_v3 }
  0x9b   :  { %394 = vmatpush1.msra.mxu1 %v549_v2 }
  0x9c   :  { %v101_v36 = vpop.permute.xlu0 %100  ;;  %325 = vmatpush1.msra.mxu0 %v160_v32  ;;  %v105_v37 = vpop.permute.xlu1 %104 }
  0x9d   :  { %v109_v38 = vsel %vm106_vm5, %v99_v30, %v101_v36  ;;  %v110_v39 = vsel %vm106_vm5, %v105_v37, %v99_v30 }
  0x9e   :  { %v128_v40 = vmul.f32 %v118_v33, %v109_v38  ;;  %v127_v41 = vmul.f32 %v114_v34, %v110_v39 }
  0xa0   :  { %v66_v43 = vpop.permute.xlu0 %65  ;;  %326 = vmatprep.subr.mxu0 %v128_v40  ;;  %v68_v3 = vpop.permute.xlu1 %67 }
  0xa1   :  { %v76_v2 = vsel %vm73_vm6, %v66_v43, %v68_v3  ;;  %327 = vmatpush1.msra.mxu0 %v127_v41 }
  0xa2   :  { %v95_v45 = vmul.f32 %v85_v42, %v76_v2 }
  0xa4   :  { %v136_v51 = vpop.permute.xlu0 %135  ;;  %328 = vmatprep.subr.mxu0 %v95_v45  ;;  %v72_v52 = vpop.permute.xlu1 %71 }
  0xa5   :  { %v140_v53 = vsel %vm139_vm4, %v136_v51, %v138_v29  ;;  %v141_v54 = vsel %vm139_vm4, %v134_v21, %v136_v51  ;;  %v77_v55 = vsel %vm73_vm6, %v72_v52, %v66_v43 }
  0xa6   :  { %v162_v56 = vmul.f32 %v155_v44, %v141_v54  ;;  %v163_v57 = vmul.f32 %v159_v46, %v140_v53  ;;  %v94_v58 = vmul.f32 %v81_v47, %v77_v55 }
  0xa8   :  { %v31_v7 = vpop.permute.xlu0 %30  ;;  %329 = vmatpush1.msra.mxu0 %v94_v58  ;;  %395 = vmatprep.subr.mxu1 %v163_v57  ;;  %v33_v60 = vpop.permute.xlu1 %32 }
  0xa9   :  { %v43_v61 = vsel %vm40_vm7, %v31_v7, %v33_v60  ;;  %396 = vmatpush1.msra.mxu1 %v162_v56 }
  0xaa   :  { %v62_v62 = vmul.f32 %v52_v59, %v43_v61 }
  0xac   :  { %v103_v8 = vpop.permute.xlu0 %102  ;;  %330 = vmatprep.subr.mxu0 %v62_v62  ;;  %v37_v12 = vpop.permute.xlu1 %36 }
  0xad   :  { %v107_v9 = vsel %vm106_vm5, %v103_v8, %v105_v37  ;;  %v108_v10 = vsel %vm106_vm5, %v101_v36, %v103_v8  ;;  %v44_v11 = vsel %vm40_vm7, %v37_v12, %v31_v7 }
  0xae   :  { %v129_v15 = vmul.f32 %v122_v63, %v108_v10  ;;  %v130_v16 = vmul.f32 %v126_v4, %v107_v9  ;;  %v61_v17 = vmul.f32 %v48_v5, %v44_v11 }
  0xb0   :  { %v70_v19 = vpop.permute.xlu0 %69  ;;  %331 = vmatpush1.msra.mxu0 %v61_v17  ;;  %397 = vmatprep.subr.mxu1 %v130_v16  ;;  %v35_v21 = vpop.permute.xlu1 %34 }
  0xb1   :  { %v74_v22 = vsel %vm73_vm6, %v70_v19, %v72_v52  ;;  %v75_v23 = vsel %vm73_vm6, %v68_v3, %v70_v19  ;;  %v41_v0 = vsel %vm40_vm7, %v35_v21, %v37_v12  ;;  %398 = vmatpush1.msra.mxu1 %v129_v15  ;;  %v42_v27 = vsel %vm40_vm7, %v33_v60, %v35_v21 }
  0xb2   :  { %v96_v25 = vmul.f32 %v89_v14, %v75_v23  ;;  %v97_v26 = vmul.f32 %v93_v13, %v74_v22  ;;  %484 = vmatmul.mubr.msk.f32.vlgmr.msra.gmra.mxu0 %vm296_vm8, %v29_v18  ;;  %v64_v49 = vmul.f32 %v60_v20, %v41_v0  ;;  %v63_v28 = vmul.f32 %v56_v24, %v42_v27 }
  0xb4   :  { %399 = vmatprep.subr.mxu1 %v97_v26 }
  0xb5   :  { %400 = vmatpush1.msra.mxu1 %v96_v25 }
  0xb6   :  { %401 = vmatprep.subr.mxu1 %v64_v49 }
  0xb7   :  { %402 = vmatpush1.msra.mxu1 %v63_v28 }
  0xb8   :  { %485 = vmatmul.mubr.msk.f32.vlgmr.msra.gmra.mxu1 %vm296_vm8, %v29_v18 }
 0x172   :  { %v366_v48 = vpop.f32.mrf.mxu0 }
 0x173   :  { %442 = vst [vmem:[%s797_s3] sm:$0xff] %v366_v48 }
 0x174   :  { %v368_v1 = vpop.f32.mrf.mxu0 }
 0x175   :  { %443 = vst [vmem:[%s797_s3 + $0x8] sm:$0xff] %v368_v1  ;;  %v446_v6 = vadd.f32 %v368_v1, %v366_v48 }
 0x178   :  { %v437_v29 = vpop.f32.mrf.mxu1 }
 0x179   :  { %444 = vst [vmem:[%s797_s3 + $0x10] sm:$0xff] %v437_v29  ;;  %v447_v30 = vadd.f32 %v446_v6, %v437_v29 }
 0x17a   :  { %v439_v31 = vpop.f32.mrf.mxu1 }
 0x17b   :  { %445 = vst [vmem:[%s797_s3 + $0x18] sm:$0xff] %v439_v31  ;;  %v448_v32 = vadd.f32 %v447_v30, %v439_v31 }
 0x17d   :  { %449 = vadd.xlane.f32.xlu0 %v448_v32 }
 0x206   :  { %v450_v33 = vpop.xlane.xlu0 %449 }
 0x207   :  { %452 = vst.msk [vmem:[%s798_s4] sm:$0xff] %vm451_vm9, %v450_v33  ;;  %v453_v34 = vmul.f32 0.001953125, %v450_v33 }
 0x209   :  { %v454_v35 = vsub.f32 %v366_v48, %v453_v34  ;;  %v455_v36 = vsub.f32 %v368_v1, %v453_v34  ;;  %v456_v37 = vsub.f32 %v437_v29, %v453_v34  ;;  %v457_v38 = vsub.f32 %v439_v31, %v453_v34 }
 0x20b   :  { %v458_v39 = vmul.f32 %v454_v35, %v454_v35  ;;  %v459_v40 = vmul.f32 %v455_v36, %v455_v36  ;;  %v460_v41 = vmul.f32 %v456_v37, %v456_v37  ;;  %v461_v43 = vmul.f32 %v457_v38, %v457_v38 }
 0x20d   :  { %v462_v42 = vadd.f32 %v459_v40, %v458_v39 }
 0x20f   :  { %v463_v3 = vadd.f32 %v462_v42, %v460_v41 }
 0x211   :  { %v464_v2 = vadd.f32 %v463_v3, %v461_v43 }
 0x213   :  { %465 = vadd.xlane.f32.xlu1 %v464_v2 }
 0x29c   :  { %v466_v44 = vpop.xlane.xlu1 %465 }
 0x29d   :  { %467 = vst.msk [vmem:[%s799_s5] sm:$0xff] %vm451_vm9, %v466_v44 }

// kernel: ml_ista_block_forward.4
= control target key start
LH: loop header
LB: loop body
LE: loop exit
PB: predicated region body
PF: predicated region fallthrough
CT: control target
= control target key end

     0   :  { %v570_v0 = vmov 0   ;;  %s572_s12 = smov 112   ;;  %s573_s13 = smov 113   ;;  %v579_v21 = vmov 0.0   ;;  %v69_v22 = vlaneseq  ;;  %vm327_vm8 = vcmask 588800   ;;  %s881_s1 = inlined_call_operand.vmem [shape: f32[8,1], index: 1, kind: input, shape index: {}]   ;;  %s882_s2 = inlined_call_operand.vmem [shape: f32[8,1], index: 2, kind: input, shape index: {}]   ;;  %s883_s0 = inlined_call_operand.vmem [shape: f32[8,512], index: 0, kind: input, shape index: {}]   ;;  %s884_s4 = inlined_call_operand.vmem [shape: f32[9,512], index: 4, kind: input, shape index: {}]   ;;  %s885_s3 = inlined_call_operand.vmem [shape: f32[16,72], index: 3, kind: input, shape index: {}]   ;;  %s886_s5 = inlined_call_operand.vmem [shape: f32[16,512], index: 5, kind: output, shape index: {0}]   ;;  %s887_s6 = inlined_call_operand.vmem [shape: f32[1,16,1], index: 6, kind: output, shape index: {1}]   ;;  %s888_s7 = inlined_call_operand.vmem [shape: f32[1,16,1], index: 7, kind: output, shape index: {2}]  }
   0x1   :  { %569 = vset.pattern.permute.xlu0 %v570_v0  ;;  %v35_v1 = vld [vmem:[%s881_s1] sm:$0xff]  ;;  %v32_v5 = vld [vmem:[%s883_s0 + $0x8] sm:$0xff]  ;;  %v33_v6 = vld [vmem:[%s883_s0 + $0x10] sm:$0xff]  ;;  %s571_s1 = smov 111   ;;  %s575_s14 = smov 1   ;;  %398 = vmatprep.mubr.f32.mxu0 %v579_v21  ;;  %vm506_vm9 = vcmask 7168  }
   0x2   :  { %38 = vperm.xlu0 %569, %v35_v1   ;;  %v45_v2 = vld [vmem:[%s882_s2] sm:$0xff]  ;;  %v34_v16 = vld [vmem:[%s883_s0 + $0x18] sm:$0xff]  ;;  %s576_s15 = smov 15   ;;  %s577_s16 = smov 16   ;;  %475 = vmatprep.mubr.f32.mxu1 %v579_v21  ;;  %v680_v23 = vand.u32 127, %v69_v22  ;;  %v682_v24 = vshrl.u32 %v69_v22, 7 }
   0x3   :  { %v31_v4 = vld [vmem:[%s883_s0] sm:$0xff]  ;;  %s574_s0 = smov 127   ;;  %s578_s17 = smov 17   ;;  %v552_v28 = vld [vmem:[%s884_s4 + $0x28] ss:$0 sm:$0xff]  ;;  %v729_v56 = vld [vmem:[%s884_s4 + $0x10] sm:$0xff] }
   0x4   :  { %vm302_vm0 = vcmp.lt.s32.totalorder %v680_v23, 111  ;;  %v276_v27 = vsub.s32 7, %v682_v24  ;;  %v692_v29 = vld [vmem:[%s884_s4 + $0x8] sm:$0xff]  ;;  %v551_v33 = vld [vmem:[%s884_s4 + $0x20] ss:$0 sm:$0xff]  ;;  %vm269_vm1 = vcmp.lt.s32.totalorder %v680_v23, 112 }
   0x5   :  { %v706_v38 = vld [vmem:[%s884_s4] sm:$0xff]  ;;  %v243_v44 = vsub.s32 6, %v682_v24  ;;  %v554_v45 = vld [vmem:[%s884_s4 + $0x38] ss:$0 sm:$0xff]  ;;  %v553_v46 = vld [vmem:[%s884_s4 + $0x30] ss:$0 sm:$0xff] }
   0x6   :  { %48 = vperm.xlu0 %569, %v45_v2   ;;  %v281_v36 = vrot.slane %v692_v29, %v276_v27  ;;  %v277_v43 = vrot.slane %v706_v38, %v276_v27  ;;  %vm236_vm2 = vcmp.lt.s32.totalorder %v680_v23, 113  ;;  %v734_v57 = vld [vmem:[%s884_s4 + $0x18] sm:$0xff]  ;;  %v737_v60 = vsub.s32 5, %v682_v24 }
   0x7   :  { %v248_v53 = vrot.slane %v692_v29, %v243_v44  ;;  %v244_v63 = vrot.slane %v706_v38, %v243_v44  ;;  %v285_v0 = vrot.slane %v729_v56, %v276_v27  ;;  %v289_v1 = vrot.slane %v734_v57, %v276_v27 }
   0x8   :  { %vm203_vm3 = vcmp.lt.s32.totalorder %v680_v23, 127  ;;  %vm170_vm4 = vcmp.lt.s32.totalorder %v680_v23, 1  ;;  %vm137_vm5 = vcmp.lt.s32.totalorder %v680_v23, 15  ;;  %vm104_vm6 = vcmp.lt.s32.totalorder %v680_v23, 16 }
   0x9   :  { %vm71_vm7 = vcmp.lt.s32.totalorder %v680_v23, 17 }
  0x7d   :  { %v39_v3 = vpop.permute.xlu0 %38 }
  0x7e   :  { %v41_v7 = vmul.f32 %v39_v3, %v31_v4  ;;  %v42_v8 = vmul.f32 %v39_v3, %v32_v5  ;;  %v43_v10 = vmul.f32 %v39_v3, %v33_v6  ;;  %v44_v18 = vmul.f32 %v39_v3, %v34_v16 }
  0x7f   :  { %v215_v4 = vrot.slane %v692_v29, %v737_v60 }
  0x81   :  { %v49_v9 = vpop.permute.xlu0 %48 }
  0x82   :  { %v51_v11 = vadd.f32 %v49_v9, %v41_v7  ;;  %v52_v12 = vadd.f32 %v49_v9, %v42_v8  ;;  %v53_v13 = vadd.f32 %v49_v9, %v43_v10  ;;  %v54_v19 = vadd.f32 %v49_v9, %v44_v18 }
  0x83   :  { %v252_v8 = vrot.slane %v729_v56, %v243_v44 }
  0x84   :  { %v635_v14 = vmax.f32 %v51_v11, 0.0  ;;  %v637_v15 = vmax.f32 %v52_v12, 0.0  ;;  %v644_v17 = vmax.f32 %v53_v13, 0.0  ;;  %v650_v20 = vmax.f32 %v54_v19, 0.0 }
  0x85   :  { %v256_v12 = vrot.slane %v734_v57, %v243_v44 }
  0x86   :  { %296 = vrot.lane.b32.xlu1 %v637_v15, %s571_s1  ;;  %294 = vrot.lane.b32.xlu0 %v635_v14, %s571_s1 }
  0x8a   :  { %298 = vrot.lane.b32.xlu1 %v644_v17, %s571_s1  ;;  %265 = vrot.lane.b32.xlu0 %v644_v17, %s572_s12 }
  0x8e   :  { %263 = vrot.lane.b32.xlu1 %v637_v15, %s572_s12  ;;  %230 = vrot.lane.b32.xlu0 %v637_v15, %s573_s13 }
  0x92   :  { %261 = vrot.lane.b32.xlu1 %v635_v14, %s572_s12  ;;  %300 = vrot.lane.b32.xlu0 %v650_v20, %s571_s1 }
  0x96   :  { %232 = vrot.lane.b32.xlu1 %v644_v17, %s573_s13  ;;  %197 = vrot.lane.b32.xlu0 %v637_v15, %s574_s0 }
  0x9a   :  { %228 = vrot.lane.b32.xlu1 %v635_v14, %s573_s13  ;;  %267 = vrot.lane.b32.xlu0 %v650_v20, %s572_s12 }
  0x9e   :  { %199 = vrot.lane.b32.xlu1 %v644_v17, %s574_s0  ;;  %234 = vrot.lane.b32.xlu0 %v650_v20, %s573_s13 }
  0xa2   :  { %195 = vrot.lane.b32.xlu1 %v635_v14, %s574_s0  ;;  %164 = vrot.lane.b32.xlu0 %v637_v15, %s575_s14 }
  0xa6   :  { %162 = vrot.lane.b32.xlu1 %v635_v14, %s575_s14  ;;  %168 = vrot.lane.b32.xlu0 %v650_v20, %s575_s14 }
  0xaa   :  { %201 = vrot.lane.b32.xlu1 %v650_v20, %s574_s0  ;;  %131 = vrot.lane.b32.xlu0 %v637_v15, %s576_s15 }
  0xae   :  { %129 = vrot.lane.b32.xlu1 %v635_v14, %s576_s15  ;;  %96 = vrot.lane.b32.xlu0 %v635_v14, %s577_s16 }
  0xb2   :  { %135 = vrot.lane.b32.xlu1 %v650_v20, %s576_s15  ;;  %166 = vrot.lane.b32.xlu0 %v644_v17, %s575_s14 }
  0xb6   :  { %98 = vrot.lane.b32.xlu1 %v637_v15, %s577_s16  ;;  %61 = vrot.lane.b32.xlu0 %v635_v14, %s578_s17 }
  0xba   :  { %102 = vrot.lane.b32.xlu1 %v650_v20, %s577_s16  ;;  %133 = vrot.lane.b32.xlu0 %v644_v17, %s576_s15 }
  0xbe   :  { %63 = vrot.lane.b32.xlu1 %v637_v15, %s578_s17  ;;  %100 = vrot.lane.b32.xlu0 %v644_v17, %s577_s16 }
  0xc2   :  { %67 = vrot.lane.b32.xlu1 %v650_v20, %s578_s17 }
  0xc6   :  { %65 = vrot.lane.b32.xlu1 %v644_v17, %s578_s17 }
  0xf8   :  { %v297_v25 = vpop.permute.xlu1 %296  ;;  %v295_v26 = vpop.permute.xlu0 %294 }
  0xf9   :  { %v305_v30 = vsel %vm302_vm0, %v295_v26, %v297_v25 }
  0xfa   :  { %v323_v37 = vmul.f32 %v551_v33, %v305_v30  ;;  %v177_v30 = vsub.s32 3, %v682_v24 }
  0xfc   :  { %v299_v31 = vpop.permute.xlu1 %298  ;;  %v266_v32 = vpop.permute.xlu0 %265 }
  0xfd   :  { %v304_v34 = vsel %vm302_vm0, %v297_v25, %v299_v31  ;;  %v211_v25 = vrot.slane %v706_v38, %v737_v60 }
  0xfe   :  { %v324_v35 = vmul.f32 %v552_v28, %v304_v34 }
 0x100   :  { %348 = vmatprep.subr.mxu0 %v324_v35  ;;  %v264_v39 = vpop.permute.xlu1 %263  ;;  %v231_v40 = vpop.permute.xlu0 %230  ;;  %v182_v35 = vrot.slane %v692_v29, %v177_v30 }
 0x101   :  { %v271_v41 = vsel %vm269_vm1, %v264_v39, %v266_v32  ;;  %349 = vmatpush1.msra.mxu0 %v323_v37 }
 0x102   :  { %v291_v42 = vmul.f32 %v281_v36, %v271_v41  ;;  %v178_v36 = vrot.slane %v706_v38, %v177_v30 }
 0x104   :  { %v262_v47 = vpop.permute.xlu1 %261  ;;  %350 = vmatprep.subr.mxu0 %v291_v42  ;;  %v301_v48 = vpop.permute.xlu0 %300  ;;  %v219_v42 = vrot.slane %v729_v56, %v737_v60 }
 0x105   :  { %v272_v49 = vsel %vm269_vm1, %v262_v47, %v264_v39  ;;  %v303_v50 = vsel %vm302_vm0, %v299_v31, %v301_v48  ;;  %v306_v51 = vsel %vm302_vm0, %v301_v48, %v295_v26 }
 0x106   :  { %v290_v52 = vmul.f32 %v277_v43, %v272_v49  ;;  %v326_v54 = vmul.f32 %v554_v45, %v306_v51  ;;  %v325_v55 = vmul.f32 %v553_v46, %v303_v50  ;;  %v223_v45 = vrot.slane %v734_v57, %v737_v60 }
 0x107   :  { %v144_v46 = vsub.s32 2, %v682_v24  ;;  %v190_v60 = vrot.slane %v734_v57, %v177_v30 }
 0x108   :  { %v233_v58 = vpop.permute.xlu1 %232  ;;  %351 = vmatpush1.msra.mxu0 %v290_v52  ;;  %425 = vmatprep.subr.mxu1 %v326_v54  ;;  %v198_v59 = vpop.permute.xlu0 %197 }
 0x109   :  { %v238_v61 = vsel %vm236_vm2, %v231_v40, %v233_v58  ;;  %426 = vmatpush1.msra.mxu1 %v325_v55  ;;  %v145_v55 = vrot.slane %v706_v38, %v144_v46 }
 0x10a   :  { %v258_v62 = vmul.f32 %v248_v53, %v238_v61  ;;  %v111_v61 = vsub.s32 1, %v682_v24 }
 0x10c   :  { %v229_v2 = vpop.permute.xlu1 %228  ;;  %352 = vmatprep.subr.mxu0 %v258_v62  ;;  %v268_v3 = vpop.permute.xlu0 %267 }
 0x10d   :  { %v239_v5 = vsel %vm236_vm2, %v229_v2, %v231_v40  ;;  %v270_v6 = vsel %vm269_vm1, %v266_v32, %v268_v3  ;;  %v273_v7 = vsel %vm269_vm1, %v268_v3, %v262_v47 }
 0x10e   :  { %v257_v9 = vmul.f32 %v244_v63, %v239_v5  ;;  %v292_v10 = vmul.f32 %v285_v0, %v270_v6  ;;  %v293_v11 = vmul.f32 %v289_v1, %v273_v7  ;;  %v116_v5 = vrot.slane %v692_v29, %v111_v61 }
 0x10f   :  { %v78_v7 = vsub.s32 0, %v682_v24 }
 0x110   :  { %v200_v13 = vpop.permute.xlu1 %199  ;;  %353 = vmatpush1.msra.mxu0 %v257_v9  ;;  %427 = vmatprep.subr.mxu1 %v293_v11  ;;  %v235_v16 = vpop.permute.xlu0 %234  ;;  %v153_v11 = vrot.slane %v729_v56, %v144_v46 }
 0x111   :  { %v205_v18 = vsel %vm203_vm3, %v198_v59, %v200_v13  ;;  %v237_v19 = vsel %vm236_vm2, %v233_v58, %v235_v16  ;;  %v240_v22 = vsel %vm236_vm2, %v235_v16, %v229_v2  ;;  %428 = vmatpush1.msra.mxu1 %v292_v10  ;;  %v112_v10 = vrot.slane %v706_v38, %v111_v61 }
 0x112   :  { %v225_v26 = vmul.f32 %v215_v4, %v205_v18  ;;  %v259_v27 = vmul.f32 %v252_v8, %v237_v19  ;;  %v260_v28 = vmul.f32 %v256_v12, %v240_v22  ;;  %v157_v12 = vrot.slane %v734_v57, %v144_v46 }
 0x113   :  { %v83_v18 = vrot.slane %v692_v29, %v78_v7 }
 0x114   :  { %v196_v31 = vpop.permute.xlu1 %195  ;;  %354 = vmatprep.subr.mxu0 %v225_v26  ;;  %429 = vmatprep.subr.mxu1 %v260_v28  ;;  %v165_v32 = vpop.permute.xlu0 %164 }
 0x115   :  { %v206_v33 = vsel %vm203_vm3, %v196_v31, %v198_v59  ;;  %430 = vmatpush1.msra.mxu1 %v259_v27  ;;  %v186_v59 = vrot.slane %v729_v56, %v177_v30  ;;  %v124_v30 = vrot.slane %v734_v57, %v111_v61 }
 0x116   :  { %v224_v34 = vmul.f32 %v211_v25, %v206_v33  ;;  %v120_v25 = vrot.slane %v729_v56, %v111_v61 }
 0x118   :  { %v163_v37 = vpop.permute.xlu1 %162  ;;  %355 = vmatpush1.msra.mxu0 %v224_v34  ;;  %v169_v39 = vpop.permute.xlu0 %168 }
 0x119   :  { %v173_v40 = vsel %vm170_vm4, %v163_v37, %v165_v32  ;;  %v174_v41 = vsel %vm170_vm4, %v169_v39, %v163_v37  ;;  %356 = vmatprep.subr.mxu0 %v637_v15 }
 0x11a   :  { %v192_v43 = vmul.f32 %v182_v35, %v173_v40  ;;  %v191_v44 = vmul.f32 %v178_v36, %v174_v41  ;;  %357 = vmatpush1.msra.mxu0 %v635_v14  ;;  %v149_v14 = vrot.slane %v692_v29, %v144_v46 }
 0x11c   :  { %v202_v47 = vpop.permute.xlu1 %201  ;;  %358 = vmatprep.subr.mxu0 %v192_v43  ;;  %v132_v48 = vpop.permute.xlu0 %131  ;;  %v87_v43 = vrot.slane %v729_v56, %v78_v7  ;;  %v60_v56 = vld [vmem:[%s885_s3 + $0x8] sm:$0xff] }
 0x11d   :  { %v204_v49 = vsel %vm203_vm3, %v200_v13, %v202_v47  ;;  %v207_v15 = vsel %vm203_vm3, %v202_v47, %v196_v31  ;;  %359 = vmatpush1.msra.mxu0 %v191_v44  ;;  %v91_v44 = vrot.slane %v734_v57, %v78_v7 }
 0x11e   :  { %v226_v50 = vmul.f32 %v219_v42, %v204_v49  ;;  %v227_v51 = vmul.f32 %v223_v45, %v207_v15  ;;  %v59_v45 = vld [vmem:[%s885_s3] sm:$0xff] }
 0x120   :  { %v130_v52 = vpop.permute.xlu1 %129  ;;  %431 = vmatprep.subr.mxu1 %v227_v51  ;;  %v97_v53 = vpop.permute.xlu0 %96 }
 0x121   :  { %v140_v54 = vsel %vm137_vm5, %v130_v52, %v132_v48  ;;  %432 = vmatpush1.msra.mxu1 %v226_v50 }
 0x122   :  { %v159_v58 = vmul.f32 %v149_v14, %v140_v54  ;;  %433 = vmatprep.subr.mxu1 %v650_v20 }
 0x123   :  { %434 = vmatpush1.msra.mxu1 %v644_v17 }
 0x124   :  { %v136_v62 = vpop.permute.xlu1 %135  ;;  %360 = vmatprep.subr.mxu0 %v159_v58  ;;  %v167_v63 = vpop.permute.xlu0 %166 }
 0x125   :  { %v141_v0 = vsel %vm137_vm5, %v136_v62, %v130_v52  ;;  %v171_v1 = vsel %vm170_vm4, %v167_v63, %v169_v39  ;;  %v172_v20 = vsel %vm170_vm4, %v165_v32, %v167_v63  ;;  %v79_v39 = vrot.slane %v706_v38, %v78_v7 }
 0x126   :  { %v158_v2 = vmul.f32 %v145_v55, %v141_v0  ;;  %v193_v3 = vmul.f32 %v186_v59, %v172_v20  ;;  %v194_v4 = vmul.f32 %v190_v60, %v171_v1 }
 0x128   :  { %v99_v17 = vpop.permute.xlu1 %98  ;;  %361 = vmatpush1.msra.mxu0 %v158_v2  ;;  %435 = vmatprep.subr.mxu1 %v194_v4  ;;  %v62_v6 = vpop.permute.xlu0 %61 }
 0x129   :  { %v107_v8 = vsel %vm104_vm6, %v97_v53, %v99_v17  ;;  %436 = vmatpush1.msra.mxu1 %v193_v3 }
 0x12a   :  { %v126_v9 = vmul.f32 %v116_v5, %v107_v8 }
 0x12c   :  { %v103_v13 = vpop.permute.xlu1 %102  ;;  %362 = vmatprep.subr.mxu0 %v126_v9  ;;  %v134_v16 = vpop.permute.xlu0 %133 }
 0x12d   :  { %v108_v24 = vsel %vm104_vm6, %v103_v13, %v97_v53  ;;  %v138_v19 = vsel %vm137_vm5, %v134_v16, %v136_v62  ;;  %v139_v22 = vsel %vm137_vm5, %v132_v48, %v134_v16 }
 0x12e   :  { %v125_v26 = vmul.f32 %v112_v10, %v108_v24  ;;  %v160_v27 = vmul.f32 %v153_v11, %v139_v22  ;;  %v161_v28 = vmul.f32 %v157_v12, %v138_v19 }
 0x130   :  { %v64_v31 = vpop.permute.xlu1 %63  ;;  %363 = vmatpush1.msra.mxu0 %v125_v26  ;;  %437 = vmatprep.subr.mxu1 %v161_v28  ;;  %v101_v29 = vpop.permute.xlu0 %100 }
 0x131   :  { %v74_v32 = vsel %vm71_vm7, %v62_v6, %v64_v31  ;;  %v105_v33 = vsel %vm104_vm6, %v101_v29, %v103_v13  ;;  %v106_v34 = vsel %vm104_vm6, %v99_v17, %v101_v29  ;;  %438 = vmatpush1.msra.mxu1 %v160_v27 }
 0x132   :  { %v93_v35 = vmul.f32 %v83_v18, %v74_v32  ;;  %v127_v36 = vmul.f32 %v120_v25, %v106_v34  ;;  %v128_v37 = vmul.f32 %v124_v30, %v105_v33 }
 0x134   :  { %v68_v40 = vpop.permute.xlu1 %67  ;;  %364 = vmatprep.subr.mxu0 %v93_v35  ;;  %439 = vmatprep.subr.mxu1 %v128_v37 }
 0x135   :  { %v75_v41 = vsel %vm71_vm7, %v68_v40, %v62_v6  ;;  %440 = vmatpush1.msra.mxu1 %v127_v36 }
 0x136   :  { %v92_v42 = vmul.f32 %v79_v39, %v75_v41 }
 0x138   :  { %v66_v46 = vpop.permute.xlu1 %65  ;;  %365 = vmatpush1.msra.mxu0 %v92_v42 }
 0x139   :  { %v72_v38 = vsel %vm71_vm7, %v66_v46, %v68_v40  ;;  %v73_v47 = vsel %vm71_vm7, %v64_v31, %v66_v46  ;;  %555 = vmatmul.mubr.msk.f32.vlgmr.msra.gmra.mxu0 %vm327_vm8, %v59_v45 }
 0x13a   :  { %v94_v48 = vmul.f32 %v87_v43, %v73_v47  ;;  %v95_v49 = vmul.f32 %v91_v44, %v72_v38  ;;  %404 = vmatprep.mubr.f32.mxu0 %v579_v21 }
 0x13c   :  { %441 = vmatprep.subr.mxu1 %v95_v49 }
 0x13d   :  { %556 = vmatmul.mubr.msk.f32.gmra.mxu0 %vm327_vm8, %v60_v56  ;;  %442 = vmatpush1.msra.mxu1 %v94_v48 }
 0x13e   :  { %557 = vmatmul.mubr.msk.f32.vlgmr.msra.gmra.mxu1 %vm327_vm8, %v59_v45 }
 0x13f   :  { %481 = vmatprep.mubr.f32.mxu1 %v579_v21 }
 0x142   :  { %558 = vmatmul.mubr.msk.f32.gmra.mxu1 %vm327_vm8, %v60_v56 }
 0x1f9   :  { %v400_v57 = vpop.f32.mrf.mxu0 }
 0x1fa   :  { %488 = vst [vmem:[%s886_s5] sm:$0xff] %v400_v57 }
 0x1fb   :  { %v402_v23 = vpop.f32.mrf.mxu0 }
 0x1fc   :  { %489 = vst [vmem:[%s886_s5 + $0x8] sm:$0xff] %v402_v23  ;;  %v496_v15 = vadd.f32 %v402_v23, %v400_v57 }
 0x1fd   :  { %v406_v50 = vpop.f32.mrf.mxu0 }
 0x1fe   :  { %492 = vst [vmem:[%s886_s5 + $0x20] sm:$0xff] %v406_v50  ;;  %v477_v51 = vpop.f32.mrf.mxu1 }
 0x1ff   :  { %490 = vst [vmem:[%s886_s5 + $0x10] sm:$0xff] %v477_v51  ;;  %v408_v21 = vpop.f32.mrf.mxu0  ;;  %v497_v14 = vadd.f32 %v496_v15, %v477_v51 }
 0x200   :  { %493 = vst [vmem:[%s886_s5 + $0x28] sm:$0xff] %v408_v21  ;;  %v501_v52 = vadd.f32 %v408_v21, %v406_v50  ;;  %v479_v53 = vpop.f32.mrf.mxu1 }
 0x201   :  { %491 = vst [vmem:[%s886_s5 + $0x18] sm:$0xff] %v479_v53  ;;  %v498_v54 = vadd.f32 %v497_v14, %v479_v53 }
 0x202   :  { %v483_v55 = vpop.f32.mrf.mxu1 }
 0x203   :  { %494 = vst [vmem:[%s886_s5 + $0x30] sm:$0xff] %v483_v55  ;;  %499 = vadd.xlane.f32.xlu0 %v498_v54  ;;  %v502_v58 = vadd.f32 %v501_v52, %v483_v55 }
 0x204   :  { %v485_v59 = vpop.f32.mrf.mxu1 }
 0x205   :  { %495 = vst [vmem:[%s886_s5 + $0x38] sm:$0xff] %v485_v59  ;;  %v503_v60 = vadd.f32 %v502_v58, %v485_v59 }
 0x207   :  { %504 = vadd.xlane.f32.xlu1 %v503_v60 }
 0x28c   :  { %v500_v61 = vpop.xlane.xlu0 %499 }
 0x28d   :  { %507 = vst.msk [vmem:[%s887_s6] sm:$0xff] %vm506_vm9, %v500_v61  ;;  %v509_v62 = vmul.f32 0.001953125, %v500_v61 }
 0x28f   :  { %v511_v63 = vsub.f32 %v400_v57, %v509_v62  ;;  %v512_v0 = vsub.f32 %v402_v23, %v509_v62  ;;  %v513_v1 = vsub.f32 %v477_v51, %v509_v62  ;;  %v514_v2 = vsub.f32 %v479_v53, %v509_v62 }
 0x290   :  { %v505_v20 = vpop.xlane.xlu1 %504 }
 0x291   :  { %508 = vst.msk [vmem:[%s887_s6 + $0x8] sm:$0xff] %vm506_vm9, %v505_v20  ;;  %v510_v3 = vmul.f32 0.001953125, %v505_v20  ;;  %v519_v4 = vmul.f32 %v511_v63, %v511_v63  ;;  %v520_v5 = vmul.f32 %v512_v0, %v512_v0  ;;  %v521_v17 = vmul.f32 %v513_v1, %v513_v1 }
 0x292   :  { %v522_v10 = vmul.f32 %v514_v2, %v514_v2 }
 0x293   :  { %v527_v6 = vadd.f32 %v520_v5, %v519_v4  ;;  %v515_v7 = vsub.f32 %v406_v50, %v510_v3  ;;  %v516_v8 = vsub.f32 %v408_v21, %v510_v3  ;;  %v517_v9 = vsub.f32 %v483_v55, %v510_v3 }
 0x294   :  { %v518_v12 = vsub.f32 %v485_v59, %v510_v3 }
 0x295   :  { %v528_v11 = vadd.f32 %v527_v6, %v521_v17  ;;  %v523_v13 = vmul.f32 %v515_v7, %v515_v7  ;;  %v524_v16 = vmul.f32 %v516_v8, %v516_v8  ;;  %v525_v24 = vmul.f32 %v517_v9, %v517_v9 }
 0x296   :  { %v526_v22 = vmul.f32 %v518_v12, %v518_v12 }
 0x297   :  { %v529_v18 = vadd.f32 %v528_v11, %v522_v10  ;;  %v532_v19 = vadd.f32 %v524_v16, %v523_v13 }
 0x299   :  { %530 = vadd.xlane.f32.xlu0 %v529_v18  ;;  %v533_v25 = vadd.f32 %v532_v19, %v525_v24 }
 0x29b   :  { %v534_v26 = vadd.f32 %v533_v25, %v526_v22 }
 0x29d   :  { %535 = vadd.xlane.f32.xlu0 %v534_v26 }
 0x322   :  { %v531_v27 = vpop.xlane.xlu0 %530 }
 0x323   :  { %537 = vst.msk [vmem:[%s888_s7] sm:$0xff] %vm506_vm9, %v531_v27 }
 0x326   :  { %v536_v28 = vpop.xlane.xlu0 %535 }
 0x327   :  { %538 = vst.msk [vmem:[%s888_s7 + $0x8] sm:$0xff] %vm506_vm9, %v536_v28 }

// kernel: ml_ista_block_forward.5
= control target key start
LH: loop header
LB: loop body
LE: loop exit
PB: predicated region body
PF: predicated region fallthrough
CT: control target
= control target key end

     0   :  { %v2875_v0 = vmov 0   ;;  %s2876_s20 = smov 112   ;;  %s2878_s21 = smov 127   ;;  %v46_v41 = vlaneseq  ;;  %vm524_vm1 = vcmask 130048   ;;  %vm798_vm9 = vcmask 588800   ;;  %s5155_s3 = inlined_call_operand.vmem [shape: f32[16,1], index: 3, kind: input, shape index: {}]   ;;  %s5156_s2 = inlined_call_operand.vmem [shape: f32[16,1], index: 2, kind: input, shape index: {}]   ;;  %s5157_s1 = inlined_call_operand.vmem [shape: f32[16,512], index: 1, kind: input, shape index: {}, may-alias: {1,11}]   ;;  %s5158_s10 = inlined_call_operand.vmem [shape: f32[9,512], index: 10, kind: input, shape index: {}]   ;;  %s5159_s5 = inlined_call_operand.vmem [shape: f32[8,144], index: 5, kind: input, shape index: {}]   ;;  %s5160_s4 = inlined_call_operand.vmem [shape: f32[8,72], index: 4, kind: input, shape index: {}]   ;;  %s5161_s0 = inlined_call_operand.vmem [shape: f32[8,512], index: 0, kind: input, shape index: {}]   ;;  %s5162_s8 = inlined_call_operand.vmem [shape: f32[8,1], index: 8, kind: input, shape index: {}]   ;;  %s5163_s6 = inlined_call_operand.vmem [shape: f32[8,72], index: 6, kind: input, shape index: {}]   ;;  %s5164_s9 = inlined_call_operand.vmem [shape: f32[16,1], index: 9, kind: input, shape index: {}]   ;;  %s5165_s7 = inlined_call_operand.vmem [shape: f32[16,72], index: 7, kind: input, shape index: {}]   ;;  %s5166_s11 = inlined_call_operand.vmem [shape: f32[16,512], index: 11, kind: output, shape index: {}, may-alias: {1,11}]  }
   0x1   :  { %2860 = vset.pattern.permute.xlu1 %v2875_v0  ;;  %2859 = vset.pattern.permute.xlu0 %v2875_v0  ;;  %v231_v1 = vld [vmem:[%s5155_s3 + $0x8] sm:$0xff]  ;;  %v230_v3 = vld [vmem:[%s5155_s3] sm:$0xff]  ;;  %v208_v7 = vld [vmem:[%s5157_s1 + $0x30] sm:$0xff]  ;;  %s2879_s22 = smov 1   ;;  %s2880_s23 = smov 15  }
   0x2   :  { %v211_v2 = vld [vmem:[%s5156_s2 + $0x8] sm:$0xff]  ;;  %239 = vperm.xlu1 %2860, %v231_v1   ;;  %v210_v4 = vld [vmem:[%s5156_s2] sm:$0xff]  ;;  %v209_v8 = vld [vmem:[%s5157_s1 + $0x38] sm:$0xff]  ;;  %s2881_s24 = smov 16   ;;  %s2882_s25 = smov 17   ;;  %v3109_v42 = vshrl.u32 %v46_v41, 7 }
   0x3   :  { %219 = vperm.xlu0 %2859, %v211_v2   ;;  %v206_v5 = vld [vmem:[%s5157_s1 + $0x20] sm:$0xff]  ;;  %v207_v6 = vld [vmem:[%s5157_s1 + $0x28] sm:$0xff]  ;;  %v204_v24 = vld [vmem:[%s5157_s1 + $0x10] sm:$0xff]  ;;  %v3111_v43 = vand.u32 127, %v46_v41  ;;  %s2883_s26 = smov 111  }
   0x4   :  { %v202_v17 = vld [vmem:[%s5157_s1] sm:$0xff]  ;;  %v203_v18 = vld [vmem:[%s5157_s1 + $0x8] sm:$0xff]  ;;  %v205_v25 = vld [vmem:[%s5157_s1 + $0x18] sm:$0xff]  ;;  %s2877_s1 = smov 113   ;;  %v144_v45 = vsub.s32 7, %v3109_v42 }
   0x5   :  { %v3120_v44 = vld [vmem:[%s5158_s10 + $0x8] sm:$0xff]  ;;  %v3126_v46 = vld [vmem:[%s5158_s10 + $0x18] sm:$0xff]  ;;  %v3131_v47 = vld [vmem:[%s5158_s10 + $0x10] sm:$0xff]  ;;  %vm474_vm0 = vcmp.lt.s32.totalorder %v3111_v43, 112  ;;  %vm441_vm2 = vcmp.lt.s32.totalorder %v3111_v43, 113  ;;  %vm408_vm3 = vcmp.lt.s32.totalorder %v3111_v43, 127 }
   0x6   :  { %234 = vperm.xlu1 %2860, %v230_v3   ;;  %v3136_v50 = vld [vmem:[%s5158_s10] sm:$0xff]  ;;  %v198_v51 = vld [vmem:[%s5159_s5 + $0x8] sm:$0xff]  ;;  %v3147_v52 = vrot.slane %v3120_v44, %v144_v45  ;;  %v3150_v53 = vrot.slane %v3126_v46, %v144_v45  ;;  %v3153_v54 = vrot.slane %v3131_v47, %v144_v45  ;;  %vm375_vm4 = vcmp.lt.s32.totalorder %v3111_v43, 1 }
   0x7   :  { %214 = vperm.xlu0 %2859, %v210_v4   ;;  %v3156_v55 = vrot.slane %v3136_v50, %v144_v45  ;;  %2829 = vmatprep.mubr.msk.f32.mxu0 %vm524_vm1, %v198_v51  ;;  %vm342_vm5 = vcmp.lt.s32.totalorder %v3111_v43, 15  ;;  %vm309_vm6 = vcmp.lt.s32.totalorder %v3111_v43, 16  ;;  %vm276_vm7 = vcmp.lt.s32.totalorder %v3111_v43, 17 }
   0x8   :  { %2830 = vmatprep.mubr.msk.f32.mxu1 %vm524_vm1, %v198_v51  ;;  %vm507_vm8 = vcmp.lt.s32.totalorder %v3111_v43, 111  ;;  %v2874_v43 = vld [vmem:[%s5165_s7 + $0x8] sm:$0xff] }
  0x7d   :  { %v240_v14 = vpop.permute.xlu1 %239 }
  0x7e   :  { %v220_v9 = vpop.permute.xlu0 %219 }
  0x7f   :  { %v226_v10 = vmul.f32 %v220_v9, %v206_v5  ;;  %v227_v11 = vmul.f32 %v220_v9, %v207_v6  ;;  %v228_v12 = vmul.f32 %v220_v9, %v208_v7  ;;  %v229_v13 = vmul.f32 %v220_v9, %v209_v8 }
  0x81   :  { %v246_v15 = vadd.f32 %v240_v14, %v226_v10  ;;  %v247_v16 = vadd.f32 %v240_v14, %v227_v11  ;;  %v248_v19 = vadd.f32 %v240_v14, %v228_v12  ;;  %v249_v20 = vadd.f32 %v240_v14, %v229_v13  ;;  %v235_v30 = vpop.permute.xlu1 %234 }
  0x82   :  { %v215_v21 = vpop.permute.xlu0 %214  ;;  %v128_v14 = vsub.s32 6, %v3109_v42 }
  0x83   :  { %v2975_v22 = vmax.f32 %v246_v15, 0.0  ;;  %v2977_v23 = vmax.f32 %v247_v16, 0.0  ;;  %v222_v26 = vmul.f32 %v215_v21, %v202_v17  ;;  %v223_v27 = vmul.f32 %v215_v21, %v203_v18 }
  0x84   :  { %v2989_v28 = vmax.f32 %v248_v19, 0.0  ;;  %v2991_v29 = vmax.f32 %v249_v20, 0.0  ;;  %v224_v31 = vmul.f32 %v215_v21, %v204_v24  ;;  %v225_v32 = vmul.f32 %v215_v21, %v205_v25 }
  0x85   :  { %464 = vrot.lane.b32.xlu1 %v2977_v23, %s2876_s20  ;;  %460 = vrot.lane.b32.xlu0 %v2975_v22, %s2876_s20  ;;  %v242_v33 = vadd.f32 %v235_v30, %v222_v26  ;;  %v243_v34 = vadd.f32 %v235_v30, %v223_v27  ;;  %v3195_v17 = vrot.slane %v3120_v44, %v128_v14 }
  0x86   :  { %v244_v35 = vadd.f32 %v235_v30, %v224_v31  ;;  %v245_v36 = vadd.f32 %v235_v30, %v225_v32  ;;  %v3198_v18 = vrot.slane %v3126_v46, %v128_v14  ;;  %v3201_v19 = vrot.slane %v3131_v47, %v128_v14 }
  0x87   :  { %v2997_v37 = vmax.f32 %v242_v33, 0.0  ;;  %v2999_v38 = vmax.f32 %v243_v34, 0.0  ;;  %v3204_v20 = vrot.slane %v3136_v50, %v128_v14 }
  0x88   :  { %v3005_v39 = vmax.f32 %v244_v35, 0.0  ;;  %v3007_v40 = vmax.f32 %v245_v36, 0.0 }
  0x89   :  { %472 = vrot.lane.b32.xlu1 %v2991_v29, %s2876_s20  ;;  %468 = vrot.lane.b32.xlu0 %v2989_v28, %s2876_s20 }
  0x8d   :  { %462 = vrot.lane.b32.xlu1 %v2999_v38, %s2876_s20  ;;  %458 = vrot.lane.b32.xlu0 %v2997_v37, %s2876_s20 }
  0x91   :  { %470 = vrot.lane.b32.xlu1 %v3007_v40, %s2876_s20  ;;  %466 = vrot.lane.b32.xlu0 %v3005_v39, %s2876_s20 }
  0x95   :  { %431 = vrot.lane.b32.xlu1 %v2977_v23, %s2877_s1  ;;  %427 = vrot.lane.b32.xlu0 %v2975_v22, %s2877_s1 }
  0x99   :  { %439 = vrot.lane.b32.xlu1 %v2991_v29, %s2877_s1  ;;  %435 = vrot.lane.b32.xlu0 %v2989_v28, %s2877_s1 }
  0x9d   :  { %429 = vrot.lane.b32.xlu1 %v2999_v38, %s2877_s1  ;;  %425 = vrot.lane.b32.xlu0 %v2997_v37, %s2877_s1 }
  0xa1   :  { %437 = vrot.lane.b32.xlu1 %v3007_v40, %s2877_s1  ;;  %433 = vrot.lane.b32.xlu0 %v3005_v39, %s2877_s1 }
  0xa5   :  { %398 = vrot.lane.b32.xlu1 %v2977_v23, %s2878_s21  ;;  %394 = vrot.lane.b32.xlu0 %v2975_v22, %s2878_s21 }
  0xa9   :  { %406 = vrot.lane.b32.xlu1 %v2991_v29, %s2878_s21  ;;  %402 = vrot.lane.b32.xlu0 %v2989_v28, %s2878_s21 }
  0xad   :  { %396 = vrot.lane.b32.xlu1 %v2999_v38, %s2878_s21  ;;  %392 = vrot.lane.b32.xlu0 %v2997_v37, %s2878_s21 }
  0xb1   :  { %404 = vrot.lane.b32.xlu1 %v3007_v40, %s2878_s21  ;;  %400 = vrot.lane.b32.xlu0 %v3005_v39, %s2878_s21 }
  0xb5   :  { %365 = vrot.lane.b32.xlu1 %v2977_v23, %s2879_s22  ;;  %361 = vrot.lane.b32.xlu0 %v2975_v22, %s2879_s22 }
  0xb9   :  { %373 = vrot.lane.b32.xlu1 %v2991_v29, %s2879_s22  ;;  %369 = vrot.lane.b32.xlu0 %v2989_v28, %s2879_s22 }
  0xbd   :  { %363 = vrot.lane.b32.xlu1 %v2999_v38, %s2879_s22  ;;  %359 = vrot.lane.b32.xlu0 %v2997_v37, %s2879_s22 }
  0xc1   :  { %371 = vrot.lane.b32.xlu1 %v3007_v40, %s2879_s22  ;;  %367 = vrot.lane.b32.xlu0 %v3005_v39, %s2879_s22 }
  0xc5   :  { %332 = vrot.lane.b32.xlu1 %v2977_v23, %s2880_s23  ;;  %328 = vrot.lane.b32.xlu0 %v2975_v22, %s2880_s23 }
  0xc9   :  { %340 = vrot.lane.b32.xlu1 %v2991_v29, %s2880_s23  ;;  %336 = vrot.lane.b32.xlu0 %v2989_v28, %s2880_s23 }
  0xcd   :  { %330 = vrot.lane.b32.xlu1 %v2999_v38, %s2880_s23  ;;  %326 = vrot.lane.b32.xlu0 %v2997_v37, %s2880_s23 }
  0xd1   :  { %338 = vrot.lane.b32.xlu1 %v3007_v40, %s2880_s23  ;;  %334 = vrot.lane.b32.xlu0 %v3005_v39, %s2880_s23 }
  0xd5   :  { %299 = vrot.lane.b32.xlu1 %v2977_v23, %s2881_s24  ;;  %295 = vrot.lane.b32.xlu0 %v2975_v22, %s2881_s24 }
  0xd9   :  { %307 = vrot.lane.b32.xlu1 %v2991_v29, %s2881_s24  ;;  %303 = vrot.lane.b32.xlu0 %v2989_v28, %s2881_s24 }
  0xdd   :  { %297 = vrot.lane.b32.xlu1 %v2999_v38, %s2881_s24  ;;  %293 = vrot.lane.b32.xlu0 %v2997_v37, %s2881_s24 }
  0xe1   :  { %305 = vrot.lane.b32.xlu1 %v3007_v40, %s2881_s24  ;;  %301 = vrot.lane.b32.xlu0 %v3005_v39, %s2881_s24 }
  0xe5   :  { %264 = vrot.lane.b32.xlu1 %v2977_v23, %s2882_s25  ;;  %260 = vrot.lane.b32.xlu0 %v2975_v22, %s2882_s25 }
  0xe9   :  { %272 = vrot.lane.b32.xlu1 %v2991_v29, %s2882_s25  ;;  %268 = vrot.lane.b32.xlu0 %v2989_v28, %s2882_s25 }
  0xed   :  { %262 = vrot.lane.b32.xlu1 %v2999_v38, %s2882_s25  ;;  %258 = vrot.lane.b32.xlu0 %v2997_v37, %s2882_s25 }
  0xf1   :  { %270 = vrot.lane.b32.xlu1 %v3007_v40, %s2882_s25  ;;  %266 = vrot.lane.b32.xlu0 %v3005_v39, %s2882_s25 }
  0xf5   :  { %497 = vrot.lane.b32.xlu1 %v2977_v23, %s2883_s26  ;;  %493 = vrot.lane.b32.xlu0 %v2975_v22, %s2883_s26 }
  0xf7   :  { %v465_v48 = vpop.permute.xlu1 %464  ;;  %v461_v49 = vpop.permute.xlu0 %460 }
  0xf8   :  { %v480_v58 = vsel %vm474_vm0, %v461_v49, %v465_v48 }
  0xf9   :  { %505 = vrot.lane.b32.xlu1 %v2991_v29, %s2883_s26  ;;  %501 = vrot.lane.b32.xlu0 %v2989_v28, %s2883_s26  ;;  %v487_v1 = vmul.f32 %v480_v58, %v3156_v55 }
  0xfb   :  { %v473_v56 = vpop.permute.xlu1 %472  ;;  %v469_v57 = vpop.permute.xlu0 %468 }
  0xfc   :  { %v478_v59 = vsel %vm474_vm0, %v465_v48, %v469_v57  ;;  %v482_v60 = vsel %vm474_vm0, %v473_v56, %v461_v49  ;;  %v476_v61 = vsel %vm474_vm0, %v469_v57, %v473_v56 }
  0xfd   :  { %495 = vrot.lane.b32.xlu1 %v2999_v38, %s2883_s26  ;;  %491 = vrot.lane.b32.xlu0 %v2997_v37, %s2883_s26  ;;  %v488_v62 = vmul.f32 %v478_v59, %v3147_v52  ;;  %v490_v63 = vmul.f32 %v482_v60, %v3150_v53  ;;  %v489_v0 = vmul.f32 %v476_v61, %v3153_v54  ;;  %v112_v61 = vsub.s32 5, %v3109_v42 }
  0xff   :  { %528 = vmatprep.subr.mxu0 %v488_v62  ;;  %599 = vmatprep.subr.mxu1 %v490_v63  ;;  %v463_v2 = vpop.permute.xlu1 %462  ;;  %v459_v3 = vpop.permute.xlu0 %458 }
 0x100   :  { %529 = vmatpush1.msra.mxu0 %v487_v1  ;;  %600 = vmatpush1.msra.mxu1 %v489_v0  ;;  %v479_v4 = vsel %vm474_vm0, %v459_v3, %v463_v2  ;;  %v3233_v0 = vrot.slane %v3120_v44, %v112_v61  ;;  %v3236_v1 = vrot.slane %v3126_v46, %v112_v61 }
 0x101   :  { %503 = vrot.lane.b32.xlu1 %v3007_v40, %s2883_s26  ;;  %499 = vrot.lane.b32.xlu0 %v3005_v39, %s2883_s26  ;;  %v483_v13 = vmul.f32 %v479_v4, %v3156_v55 }
 0x103   :  { %v471_v5 = vpop.permute.xlu1 %470  ;;  %v467_v6 = vpop.permute.xlu0 %466 }
 0x104   :  { %v481_v7 = vsel %vm474_vm0, %v471_v5, %v459_v3  ;;  %v475_v8 = vsel %vm474_vm0, %v467_v6, %v471_v5  ;;  %v477_v9 = vsel %vm474_vm0, %v463_v2, %v467_v6  ;;  %v3239_v2 = vrot.slane %v3131_v47, %v112_v61 }
 0x105   :  { %v484_v10 = vmul.f32 %v477_v9, %v3147_v52  ;;  %v486_v11 = vmul.f32 %v481_v7, %v3150_v53  ;;  %v485_v12 = vmul.f32 %v475_v8, %v3153_v54  ;;  %v3242_v3 = vrot.slane %v3136_v50, %v112_v61 }
 0x107   :  { %v432_v15 = vpop.permute.xlu1 %431  ;;  %530 = vmatprep.subr.mxu0 %v484_v10  ;;  %601 = vmatprep.subr.mxu1 %v486_v11  ;;  %v428_v16 = vpop.permute.xlu0 %427 }
 0x108   :  { %531 = vmatpush1.msra.mxu0 %v483_v13  ;;  %602 = vmatpush1.msra.mxu1 %v485_v12  ;;  %v447_v21 = vsel %vm441_vm2, %v428_v16, %v432_v15 }
 0x109   :  { %v454_v34 = vmul.f32 %v447_v21, %v3204_v20 }
 0x10b   :  { %v440_v24 = vpop.permute.xlu1 %439  ;;  %v436_v25 = vpop.permute.xlu0 %435 }
 0x10c   :  { %v449_v26 = vsel %vm441_vm2, %v440_v24, %v428_v16  ;;  %v443_v27 = vsel %vm441_vm2, %v436_v25, %v440_v24  ;;  %v445_v30 = vsel %vm441_vm2, %v432_v15, %v436_v25  ;;  %v96_v25 = vsub.s32 3, %v3109_v42 }
 0x10d   :  { %v455_v31 = vmul.f32 %v445_v30, %v3195_v17  ;;  %v457_v32 = vmul.f32 %v449_v26, %v3198_v18  ;;  %v456_v33 = vmul.f32 %v443_v27, %v3201_v19 }
 0x10f   :  { %v430_v35 = vpop.permute.xlu1 %429  ;;  %532 = vmatprep.subr.mxu0 %v455_v31  ;;  %603 = vmatprep.subr.mxu1 %v457_v32  ;;  %v426_v36 = vpop.permute.xlu0 %425 }
 0x110   :  { %533 = vmatpush1.msra.mxu0 %v454_v34  ;;  %604 = vmatpush1.msra.mxu1 %v456_v33  ;;  %v446_v41 = vsel %vm441_vm2, %v426_v36, %v430_v35 }
 0x111   :  { %v450_v60 = vmul.f32 %v446_v41, %v3204_v20  ;;  %v3271_v41 = vrot.slane %v3120_v44, %v96_v25 }
 0x113   :  { %v438_v45 = vpop.permute.xlu1 %437  ;;  %v434_v48 = vpop.permute.xlu0 %433 }
 0x114   :  { %v448_v49 = vsel %vm441_vm2, %v438_v45, %v426_v36  ;;  %v442_v51 = vsel %vm441_vm2, %v434_v48, %v438_v45  ;;  %v444_v56 = vsel %vm441_vm2, %v430_v35, %v434_v48  ;;  %v3278_v48 = vrot.slane %v3136_v50, %v96_v25 }
 0x115   :  { %v451_v57 = vmul.f32 %v444_v56, %v3195_v17  ;;  %v453_v58 = vmul.f32 %v448_v49, %v3198_v18  ;;  %v452_v59 = vmul.f32 %v442_v51, %v3201_v19  ;;  %v3281_v49 = vrot.slane %v3126_v46, %v96_v25 }
 0x116   :  { %v3284_v51 = vrot.slane %v3131_v47, %v96_v25 }
 0x117   :  { %v399_v62 = vpop.permute.xlu1 %398  ;;  %534 = vmatprep.subr.mxu0 %v451_v57  ;;  %605 = vmatprep.subr.mxu1 %v453_v58  ;;  %v395_v63 = vpop.permute.xlu0 %394 }
 0x118   :  { %535 = vmatpush1.msra.mxu0 %v450_v60  ;;  %606 = vmatpush1.msra.mxu1 %v452_v59  ;;  %v414_v4 = vsel %vm408_vm3, %v395_v63, %v399_v62 }
 0x119   :  { %v421_v13 = vmul.f32 %v414_v4, %v3242_v3 }
 0x11b   :  { %v407_v5 = vpop.permute.xlu1 %406  ;;  %v403_v6 = vpop.permute.xlu0 %402 }
 0x11c   :  { %v416_v7 = vsel %vm408_vm3, %v407_v5, %v395_v63  ;;  %v410_v8 = vsel %vm408_vm3, %v403_v6, %v407_v5  ;;  %v412_v9 = vsel %vm408_vm3, %v399_v62, %v403_v6 }
 0x11d   :  { %v422_v10 = vmul.f32 %v412_v9, %v3233_v0  ;;  %v424_v11 = vmul.f32 %v416_v7, %v3236_v1  ;;  %v423_v12 = vmul.f32 %v410_v8, %v3239_v2  ;;  %v80_v9 = vsub.s32 2, %v3109_v42 }
 0x11f   :  { %v397_v14 = vpop.permute.xlu1 %396  ;;  %536 = vmatprep.subr.mxu0 %v422_v10  ;;  %607 = vmatprep.subr.mxu1 %v424_v11  ;;  %v393_v15 = vpop.permute.xlu0 %392 }
 0x120   :  { %537 = vmatpush1.msra.mxu0 %v421_v13  ;;  %608 = vmatpush1.msra.mxu1 %v423_v12  ;;  %v413_v16 = vsel %vm408_vm3, %v393_v15, %v397_v14 }
 0x121   :  { %v417_v34 = vmul.f32 %v413_v16, %v3242_v3 }
 0x123   :  { %v405_v21 = vpop.permute.xlu1 %404  ;;  %v401_v24 = vpop.permute.xlu0 %400 }
 0x124   :  { %v415_v26 = vsel %vm408_vm3, %v405_v21, %v393_v15  ;;  %v409_v27 = vsel %vm408_vm3, %v401_v24, %v405_v21  ;;  %v411_v30 = vsel %vm408_vm3, %v397_v14, %v401_v24  ;;  %v3317_v24 = vrot.slane %v3120_v44, %v80_v9 }
 0x125   :  { %v418_v31 = vmul.f32 %v411_v30, %v3233_v0  ;;  %v420_v32 = vmul.f32 %v415_v26, %v3236_v1  ;;  %v419_v33 = vmul.f32 %v409_v27, %v3239_v2 }
 0x127   :  { %v366_v35 = vpop.permute.xlu1 %365  ;;  %538 = vmatprep.subr.mxu0 %v418_v31  ;;  %609 = vmatprep.subr.mxu1 %v420_v32  ;;  %v362_v36 = vpop.permute.xlu0 %361  ;;  %v3323_v31 = vrot.slane %v3136_v50, %v80_v9  ;;  %v3326_v32 = vrot.slane %v3126_v46, %v80_v9 }
 0x128   :  { %v381_v45 = vsel %vm375_vm4, %v362_v36, %v366_v35  ;;  %539 = vmatpush1.msra.mxu0 %v417_v34  ;;  %610 = vmatpush1.msra.mxu1 %v419_v33  ;;  %v3329_v33 = vrot.slane %v3131_v47, %v80_v9 }
 0x129   :  { %540 = vmatprep.subr.mxu0 %v2977_v23  ;;  %611 = vmatprep.subr.mxu1 %v2991_v29  ;;  %v389_v58 = vmul.f32 %v381_v45, %v3271_v41 }
 0x12a   :  { %541 = vmatpush1.msra.mxu0 %v2975_v22  ;;  %612 = vmatpush1.msra.mxu1 %v2989_v28 }
 0x12b   :  { %v374_v56 = vpop.permute.xlu1 %373  ;;  %542 = vmatprep.subr.mxu0 %v2999_v38  ;;  %613 = vmatprep.subr.mxu1 %v3007_v40  ;;  %v370_v57 = vpop.permute.xlu0 %369 }
 0x12c   :  { %v383_v59 = vsel %vm375_vm4, %v374_v56, %v362_v36  ;;  %v377_v60 = vsel %vm375_vm4, %v370_v57, %v374_v56  ;;  %v379_v61 = vsel %vm375_vm4, %v366_v35, %v370_v57  ;;  %543 = vmatpush1.msra.mxu0 %v2997_v37  ;;  %614 = vmatpush1.msra.mxu1 %v3005_v39 }
 0x12d   :  { %544 = vmatprep.subr.mxu0 %v389_v58  ;;  %v388_v62 = vmul.f32 %v383_v59, %v3278_v48  ;;  %v391_v63 = vmul.f32 %v377_v60, %v3281_v49  ;;  %v390_v4 = vmul.f32 %v379_v61, %v3284_v51 }
 0x12f   :  { %v364_v5 = vpop.permute.xlu1 %363  ;;  %545 = vmatpush1.msra.mxu0 %v388_v62  ;;  %615 = vmatprep.subr.mxu1 %v391_v63  ;;  %v360_v6 = vpop.permute.xlu0 %359 }
 0x130   :  { %v380_v7 = vsel %vm375_vm4, %v360_v6, %v364_v5  ;;  %616 = vmatpush1.msra.mxu1 %v390_v4  ;;  %v64_v4 = vsub.s32 1, %v3109_v42 }
 0x131   :  { %v385_v8 = vmul.f32 %v380_v7, %v3271_v41 }
 0x133   :  { %v372_v10 = vpop.permute.xlu1 %371  ;;  %546 = vmatprep.subr.mxu0 %v385_v8  ;;  %v368_v11 = vpop.permute.xlu0 %367 }
 0x134   :  { %v382_v12 = vsel %vm375_vm4, %v372_v10, %v360_v6  ;;  %v376_v13 = vsel %vm375_vm4, %v368_v11, %v372_v10  ;;  %v378_v14 = vsel %vm375_vm4, %v364_v5, %v368_v11 }
 0x135   :  { %v384_v15 = vmul.f32 %v382_v12, %v3278_v48  ;;  %v387_v16 = vmul.f32 %v376_v13, %v3281_v49  ;;  %v386_v21 = vmul.f32 %v378_v14, %v3284_v51  ;;  %v3355_v13 = vrot.slane %v3120_v44, %v64_v4 }
 0x137   :  { %v333_v25 = vpop.permute.xlu1 %332  ;;  %547 = vmatpush1.msra.mxu0 %v384_v15  ;;  %617 = vmatprep.subr.mxu1 %v387_v16  ;;  %v329_v26 = vpop.permute.xlu0 %328  ;;  %5201 = vst [vmem:[#allocation2_spill] sm:$0xff] %v3355_v13 }
 0x138   :  { %v348_v27 = vsel %vm342_vm5, %v329_v26, %v333_v25  ;;  %618 = vmatpush1.msra.mxu1 %v386_v21 }
 0x139   :  { %v356_v30 = vmul.f32 %v348_v27, %v3317_v24  ;;  %v3367_v27 = vrot.slane %v3131_v47, %v64_v4 }
 0x13b   :  { %v341_v34 = vpop.permute.xlu1 %340  ;;  %548 = vmatprep.subr.mxu0 %v356_v30  ;;  %v337_v35 = vpop.permute.xlu0 %336  ;;  %5204 = vst [vmem:[#allocation5_spill] sm:$0xff] %v3367_v27 }
 0x13c   :  { %v350_v36 = vsel %vm342_vm5, %v341_v34, %v329_v26  ;;  %v344_v45 = vsel %vm342_vm5, %v337_v35, %v341_v34  ;;  %v346_v56 = vsel %vm342_vm5, %v333_v25, %v337_v35  ;;  %v3361_v25 = vrot.slane %v3136_v50, %v64_v4 }
 0x13d   :  { %v355_v57 = vmul.f32 %v350_v36, %v3323_v31  ;;  %v358_v58 = vmul.f32 %v344_v45, %v3326_v32  ;;  %v357_v59 = vmul.f32 %v346_v56, %v3329_v33  ;;  %v3364_v26 = vrot.slane %v3126_v46, %v64_v4 }
 0x13e   :  { %5202 = vst [vmem:[#allocation3_spill] sm:$0xff] %v3361_v25 }
 0x13f   :  { %v331_v60 = vpop.permute.xlu1 %330  ;;  %549 = vmatpush1.msra.mxu0 %v355_v57  ;;  %619 = vmatprep.subr.mxu1 %v358_v58  ;;  %v327_v61 = vpop.permute.xlu0 %326  ;;  %5203 = vst [vmem:[#allocation4_spill] sm:$0xff] %v3364_v26 }
 0x140   :  { %v347_v62 = vsel %vm342_vm5, %v327_v61, %v331_v60  ;;  %620 = vmatpush1.msra.mxu1 %v357_v59 }
 0x141   :  { %v352_v63 = vmul.f32 %v347_v62, %v3317_v24 }
 0x143   :  { %v339_v5 = vpop.permute.xlu1 %338  ;;  %550 = vmatprep.subr.mxu0 %v352_v63  ;;  %v335_v6 = vpop.permute.xlu0 %334  ;;  %v48_v63 = vsub.s32 0, %v3109_v42 }
 0x144   :  { %v349_v7 = vsel %vm342_vm5, %v339_v5, %v327_v61  ;;  %v343_v8 = vsel %vm342_vm5, %v335_v6, %v339_v5  ;;  %v345_v9 = vsel %vm342_vm5, %v331_v60, %v335_v6 }
 0x145   :  { %v351_v10 = vmul.f32 %v349_v7, %v3323_v31  ;;  %v354_v11 = vmul.f32 %v343_v8, %v3326_v32  ;;  %v353_v12 = vmul.f32 %v345_v9, %v3329_v33 }
 0x147   :  { %v300_v14 = vpop.permute.xlu1 %299  ;;  %551 = vmatpush1.msra.mxu0 %v351_v10  ;;  %621 = vmatprep.subr.mxu1 %v354_v11  ;;  %v296_v15 = vpop.permute.xlu0 %295  ;;  %v3393_v11 = vrot.slane %v3120_v44, %v48_v63 }
 0x148   :  { %v315_v16 = vsel %vm309_vm6, %v296_v15, %v300_v14  ;;  %622 = vmatpush1.msra.mxu1 %v353_v12 }
 0x149   :  { %v323_v21 = vmul.f32 %v315_v16, %v3355_v13  ;;  %5205 = vst [vmem:[#allocation6_spill] sm:$0xff] %v3393_v11 }
 0x14b   :  { %v308_v30 = vpop.permute.xlu1 %307  ;;  %552 = vmatprep.subr.mxu0 %v323_v21  ;;  %v304_v34 = vpop.permute.xlu0 %303  ;;  %v3399_v21 = vrot.slane %v3136_v50, %v48_v63 }
 0x14c   :  { %v317_v35 = vsel %vm309_vm6, %v308_v30, %v296_v15  ;;  %v311_v36 = vsel %vm309_vm6, %v304_v34, %v308_v30  ;;  %v313_v45 = vsel %vm309_vm6, %v300_v14, %v304_v34  ;;  %v3402_v30 = vrot.slane %v3126_v46, %v48_v63 }
 0x14d   :  { %v322_v56 = vmul.f32 %v317_v35, %v3361_v25  ;;  %v325_v57 = vmul.f32 %v311_v36, %v3364_v26  ;;  %v324_v58 = vmul.f32 %v313_v45, %v3367_v27  ;;  %5206 = vst [vmem:[#allocation7_spill] sm:$0xff] %v3399_v21  ;;  %v3405_v34 = vrot.slane %v3131_v47, %v48_v63 }
 0x14e   :  { %5207 = vst [vmem:[#allocation8_spill] sm:$0xff] %v3402_v30 }
 0x14f   :  { %v298_v59 = vpop.permute.xlu1 %297  ;;  %553 = vmatpush1.msra.mxu0 %v322_v56  ;;  %623 = vmatprep.subr.mxu1 %v325_v57  ;;  %v294_v60 = vpop.permute.xlu0 %293  ;;  %5208 = vst [vmem:[#allocation9_spill] sm:$0xff] %v3405_v34 }
 0x150   :  { %v314_v61 = vsel %vm309_vm6, %v294_v60, %v298_v59  ;;  %624 = vmatpush1.msra.mxu1 %v324_v58 }
 0x151   :  { %v319_v62 = vmul.f32 %v314_v61, %v3355_v13 }
 0x153   :  { %v306_v4 = vpop.permute.xlu1 %305  ;;  %554 = vmatprep.subr.mxu0 %v319_v62  ;;  %v302_v5 = vpop.permute.xlu0 %301 }
 0x154   :  { %v316_v6 = vsel %vm309_vm6, %v306_v4, %v294_v60  ;;  %v310_v7 = vsel %vm309_vm6, %v302_v5, %v306_v4  ;;  %v312_v8 = vsel %vm309_vm6, %v298_v59, %v302_v5 }
 0x155   :  { %v318_v9 = vmul.f32 %v316_v6, %v3361_v25  ;;  %v321_v10 = vmul.f32 %v310_v7, %v3364_v26  ;;  %v320_v42 = vmul.f32 %v312_v8, %v3367_v27 }
 0x157   :  { %v265_v12 = vpop.permute.xlu1 %264  ;;  %555 = vmatpush1.msra.mxu0 %v318_v9  ;;  %625 = vmatprep.subr.mxu1 %v321_v10  ;;  %v261_v14 = vpop.permute.xlu0 %260 }
 0x158   :  { %v282_v15 = vsel %vm276_vm7, %v261_v14, %v265_v12  ;;  %626 = vmatpush1.msra.mxu1 %v320_v42  ;;  %v3432_v42 = vld [vmem:[%s5158_s10 + $0x28] ss:$0 sm:$0xff] }
 0x159   :  { %v290_v16 = vmul.f32 %v282_v15, %v3393_v11 }
 0x15b   :  { %v273_v44 = vpop.permute.xlu1 %272  ;;  %556 = vmatprep.subr.mxu0 %v290_v16  ;;  %v269_v35 = vpop.permute.xlu0 %268 }
 0x15c   :  { %v284_v36 = vsel %vm276_vm7, %v273_v44, %v261_v14  ;;  %v278_v45 = vsel %vm276_vm7, %v269_v35, %v273_v44  ;;  %v280_v56 = vsel %vm276_vm7, %v265_v12, %v269_v35  ;;  %v3437_v12 = vld [vmem:[%s5158_s10 + $0x38] ss:$0 sm:$0xff]  ;;  %v3442_v14 = vld [vmem:[%s5158_s10 + $0x30] ss:$0 sm:$0xff]  ;;  %v3449_v35 = vld [vmem:[%s5158_s10 + $0x20] ss:$0 sm:$0xff] }
 0x15d   :  { %v289_v50 = vmul.f32 %v284_v36, %v3399_v21  ;;  %v292_v46 = vmul.f32 %v278_v45, %v3402_v30  ;;  %v291_v57 = vmul.f32 %v280_v56, %v3405_v34 }
 0x15f   :  { %v263_v47 = vpop.permute.xlu1 %262  ;;  %557 = vmatpush1.msra.mxu0 %v289_v50  ;;  %627 = vmatprep.subr.mxu1 %v292_v46  ;;  %v259_v58 = vpop.permute.xlu0 %258 }
 0x160   :  { %v281_v59 = vsel %vm276_vm7, %v259_v58, %v263_v47  ;;  %628 = vmatpush1.msra.mxu1 %v291_v57 }
 0x161   :  { %v286_v60 = vmul.f32 %v281_v59, %v3393_v11 }
 0x163   :  { %v271_v61 = vpop.permute.xlu1 %270  ;;  %558 = vmatprep.subr.mxu0 %v286_v60  ;;  %v267_v62 = vpop.permute.xlu0 %266 }
 0x164   :  { %v283_v63 = vsel %vm276_vm7, %v271_v61, %v259_v58  ;;  %v277_v4 = vsel %vm276_vm7, %v267_v62, %v271_v61  ;;  %v279_v5 = vsel %vm276_vm7, %v263_v47, %v267_v62 }
 0x165   :  { %v285_v6 = vmul.f32 %v283_v63, %v3399_v21  ;;  %v288_v7 = vmul.f32 %v277_v4, %v3402_v30  ;;  %v287_v8 = vmul.f32 %v279_v5, %v3405_v34 }
 0x167   :  { %v498_v9 = vpop.permute.xlu1 %497  ;;  %559 = vmatpush1.msra.mxu0 %v285_v6  ;;  %629 = vmatprep.subr.mxu1 %v288_v7  ;;  %v494_v10 = vpop.permute.xlu0 %493 }
 0x168   :  { %630 = vmatpush1.msra.mxu1 %v287_v8  ;;  %v513_v15 = vsel %vm507_vm8, %v494_v10, %v498_v9 }
 0x169   :  { %v520_v47 = vmul.f32 %v3449_v35, %v513_v15 }
 0x16b   :  { %v506_v16 = vpop.permute.xlu1 %505  ;;  %v502_v44 = vpop.permute.xlu0 %501 }
 0x16c   :  { %v515_v36 = vsel %vm507_vm8, %v506_v16, %v494_v10  ;;  %v509_v45 = vsel %vm507_vm8, %v502_v44, %v506_v16  ;;  %v511_v56 = vsel %vm507_vm8, %v498_v9, %v502_v44  ;;  %v197_v10 = vld [vmem:[%s5159_s5] sm:$0xff] }
 0x16d   :  { %v521_v50 = vmul.f32 %v3432_v42, %v511_v56  ;;  %v523_v46 = vmul.f32 %v3437_v12, %v515_v36  ;;  %v522_v57 = vmul.f32 %v3442_v14, %v509_v45  ;;  %v5167_v45 = vmov 0.0  }
 0x16f   :  { %v496_v58 = vpop.permute.xlu1 %495  ;;  %588 = vmatprep.subr.mxu0 %v521_v50  ;;  %659 = vmatprep.subr.mxu1 %v523_v46  ;;  %v492_v59 = vpop.permute.xlu0 %491 }
 0x170   :  { %589 = vmatpush2.msra.mxu0 %v520_v47  ;;  %660 = vmatpush2.msra.mxu1 %v522_v57  ;;  %v512_v60 = vsel %vm507_vm8, %v492_v59, %v496_v58 }
 0x171   :  { %v516_v9 = vmul.f32 %v3449_v35, %v512_v60 }
 0x173   :  { %v504_v61 = vpop.permute.xlu1 %503  ;;  %v500_v62 = vpop.permute.xlu0 %499 }
 0x174   :  { %v514_v63 = vsel %vm507_vm8, %v504_v61, %v492_v59  ;;  %v508_v4 = vsel %vm507_vm8, %v500_v62, %v504_v61  ;;  %v510_v5 = vsel %vm507_vm8, %v496_v58, %v500_v62 }
 0x175   :  { %v517_v6 = vmul.f32 %v3432_v42, %v510_v5  ;;  %v519_v7 = vmul.f32 %v3437_v12, %v514_v63  ;;  %v518_v8 = vmul.f32 %v3442_v14, %v508_v4 }
 0x177   :  { %590 = vmatprep.subr.mxu0 %v517_v6  ;;  %661 = vmatprep.subr.mxu1 %v519_v7 }
 0x178   :  { %591 = vmatpush2.msra.mxu0 %v516_v9  ;;  %662 = vmatpush2.msra.mxu1 %v518_v8 }
 0x179   :  { %593 = vmatmul.mubr.f32.vlgmr.msra.gmra.mxu0 %v197_v10  ;;  %664 = vmatmul.mubr.f32.vlgmr.msra.gmra.mxu1 %v197_v10 }
 0x17a   :  { %866 = vmatprep.mubr.f32.mxu0 %v5167_v45  ;;  %937 = vmatprep.mubr.f32.mxu1 %v5167_v45 }
 0x239   :  { %v3476_v15 = vpop.f32.mrf.mxu0  ;;  %v3482_v44 = vpop.f32.mrf.mxu1 }
 0x23a   :  { %782 = vrot.lane.b32.xlu0 %v3476_v15, %s2883_s26 }
 0x23b   :  { %v3480_v16 = vpop.f32.mrf.mxu0  ;;  %v3488_v36 = vpop.f32.mrf.mxu1 }
 0x23c   :  { %784 = vrot.lane.b32.xlu1 %v3480_v16, %s2883_s26 }
 0x23e   :  { %786 = vrot.lane.b32.xlu0 %v3482_v44, %s2883_s26 }
 0x240   :  { %788 = vrot.lane.b32.xlu1 %v3488_v36, %s2883_s26 }
 0x242   :  { %766 = vrot.lane.b32.xlu0 %v3476_v15, %s2876_s20 }
 0x244   :  { %768 = vrot.lane.b32.xlu1 %v3480_v16, %s2876_s20 }
 0x246   :  { %770 = vrot.lane.b32.xlu0 %v3482_v44, %s2876_s20 }
 0x248   :  { %772 = vrot.lane.b32.xlu1 %v3488_v36, %s2876_s20 }
 0x24a   :  { %750 = vrot.lane.b32.xlu0 %v3476_v15, %s2877_s1 }
 0x24c   :  { %752 = vrot.lane.b32.xlu1 %v3480_v16, %s2877_s1 }
 0x24e   :  { %754 = vrot.lane.b32.xlu0 %v3482_v44, %s2877_s1 }
 0x250   :  { %756 = vrot.lane.b32.xlu1 %v3488_v36, %s2877_s1 }
 0x252   :  { %734 = vrot.lane.b32.xlu0 %v3476_v15, %s2878_s21 }
 0x254   :  { %736 = vrot.lane.b32.xlu1 %v3480_v16, %s2878_s21 }
 0x256   :  { %738 = vrot.lane.b32.xlu0 %v3482_v44, %s2878_s21 }
 0x258   :  { %740 = vrot.lane.b32.xlu1 %v3488_v36, %s2878_s21 }
 0x25a   :  { %718 = vrot.lane.b32.xlu0 %v3476_v15, %s2879_s22 }
 0x25c   :  { %720 = vrot.lane.b32.xlu1 %v3480_v16, %s2879_s22 }
 0x25e   :  { %722 = vrot.lane.b32.xlu0 %v3482_v44, %s2879_s22 }
 0x260   :  { %724 = vrot.lane.b32.xlu1 %v3488_v36, %s2879_s22 }
 0x262   :  { %702 = vrot.lane.b32.xlu0 %v3476_v15, %s2880_s23 }
 0x264   :  { %704 = vrot.lane.b32.xlu1 %v3480_v16, %s2880_s23 }
 0x266   :  { %706 = vrot.lane.b32.xlu0 %v3482_v44, %s2880_s23 }
 0x268   :  { %708 = vrot.lane.b32.xlu1 %v3488_v36, %s2880_s23 }
 0x26a   :  { %686 = vrot.lane.b32.xlu0 %v3476_v15, %s2881_s24 }
 0x26c   :  { %688 = vrot.lane.b32.xlu1 %v3480_v16, %s2881_s24 }
 0x26e   :  { %690 = vrot.lane.b32.xlu0 %v3482_v44, %s2881_s24 }
 0x270   :  { %692 = vrot.lane.b32.xlu1 %v3488_v36, %s2881_s24 }
 0x272   :  { %670 = vrot.lane.b32.xlu0 %v3476_v15, %s2882_s25 }
 0x274   :  { %672 = vrot.lane.b32.xlu1 %v3480_v16, %s2882_s25 }
 0x276   :  { %674 = vrot.lane.b32.xlu0 %v3482_v44, %s2882_s25 }
 0x278   :  { %676 = vrot.lane.b32.xlu1 %v3488_v36, %s2882_s25 }
 0x2ac   :  { %v783_v56 = vpop.permute.xlu0 %782 }
 0x2ae   :  { %v785_v50 = vpop.permute.xlu1 %784 }
 0x2af   :  { %v792_v46 = vsel %vm507_vm8, %v783_v56, %v785_v50 }
 0x2b0   :  { %v787_v57 = vpop.permute.xlu0 %786  ;;  %v794_v60 = vmul.f32 %v3449_v35, %v792_v46 }
 0x2b1   :  { %v791_v47 = vsel %vm507_vm8, %v785_v50, %v787_v57 }
 0x2b2   :  { %v789_v58 = vpop.permute.xlu1 %788  ;;  %v795_v59 = vmul.f32 %v3432_v42, %v791_v47 }
 0x2b3   :  { %v790_v61 = vsel %vm507_vm8, %v787_v57, %v789_v58  ;;  %v793_v62 = vsel %vm507_vm8, %v789_v58, %v783_v56 }
 0x2b4   :  { %v796_v63 = vmul.f32 %v3442_v14, %v790_v61  ;;  %816 = vmatprep.subr.mxu0 %v795_v59  ;;  %v767_v4 = vpop.permute.xlu0 %766  ;;  %v797_v5 = vmul.f32 %v3437_v12, %v793_v62 }
 0x2b5   :  { %817 = vmatpush1.msra.mxu0 %v794_v60 }
 0x2b6   :  { %887 = vmatprep.subr.mxu1 %v797_v5  ;;  %v769_v6 = vpop.permute.xlu1 %768 }
 0x2b7   :  { %888 = vmatpush1.msra.mxu1 %v796_v63  ;;  %v776_v7 = vsel %vm474_vm0, %v767_v4, %v769_v6 }
 0x2b8   :  { %v771_v8 = vpop.permute.xlu0 %770  ;;  %v778_v50 = vmul.f32 %v776_v7, %v3156_v55 }
 0x2b9   :  { %v775_v9 = vsel %vm474_vm0, %v769_v6, %v771_v8 }
 0x2ba   :  { %v773_v10 = vpop.permute.xlu1 %772  ;;  %v779_v56 = vmul.f32 %v775_v9, %v3147_v52 }
 0x2bb   :  { %v774_v46 = vsel %vm474_vm0, %v771_v8, %v773_v10  ;;  %v777_v57 = vsel %vm474_vm0, %v773_v10, %v767_v4 }
 0x2bc   :  { %v780_v47 = vmul.f32 %v774_v46, %v3153_v54  ;;  %v751_v58 = vpop.permute.xlu0 %750  ;;  %818 = vmatprep.subr.mxu0 %v779_v56  ;;  %v781_v59 = vmul.f32 %v777_v57, %v3150_v53 }
 0x2bd   :  { %819 = vmatpush1.msra.mxu0 %v778_v50 }
 0x2be   :  { %889 = vmatprep.subr.mxu1 %v781_v59  ;;  %v753_v60 = vpop.permute.xlu1 %752 }
 0x2bf   :  { %890 = vmatpush1.msra.mxu1 %v780_v47  ;;  %v760_v61 = vsel %vm441_vm2, %v751_v58, %v753_v60 }
 0x2c0   :  { %v755_v62 = vpop.permute.xlu0 %754  ;;  %v762_v6 = vmul.f32 %v760_v61, %v3204_v20 }
 0x2c1   :  { %v759_v63 = vsel %vm441_vm2, %v753_v60, %v755_v62 }
 0x2c2   :  { %v757_v5 = vpop.permute.xlu1 %756  ;;  %v763_v4 = vmul.f32 %v759_v63, %v3195_v17 }
 0x2c3   :  { %v758_v7 = vsel %vm441_vm2, %v755_v62, %v757_v5  ;;  %v761_v8 = vsel %vm441_vm2, %v757_v5, %v751_v58 }
 0x2c4   :  { %v764_v9 = vmul.f32 %v758_v7, %v3201_v19  ;;  %v735_v10 = vpop.permute.xlu0 %734  ;;  %820 = vmatprep.subr.mxu0 %v763_v4  ;;  %v765_v56 = vmul.f32 %v761_v8, %v3198_v18 }
 0x2c5   :  { %821 = vmatpush1.msra.mxu0 %v762_v6 }
 0x2c6   :  { %891 = vmatprep.subr.mxu1 %v765_v56  ;;  %v737_v50 = vpop.permute.xlu1 %736 }
 0x2c7   :  { %892 = vmatpush1.msra.mxu1 %v764_v9  ;;  %v744_v46 = vsel %vm408_vm3, %v735_v10, %v737_v50 }
 0x2c8   :  { %v739_v57 = vpop.permute.xlu0 %738  ;;  %v746_v60 = vmul.f32 %v744_v46, %v3242_v3 }
 0x2c9   :  { %v743_v47 = vsel %vm408_vm3, %v737_v50, %v739_v57 }
 0x2ca   :  { %v741_v59 = vpop.permute.xlu1 %740  ;;  %v747_v58 = vmul.f32 %v743_v47, %v3233_v0 }
 0x2cb   :  { %v742_v61 = vsel %vm408_vm3, %v739_v57, %v741_v59  ;;  %v745_v62 = vsel %vm408_vm3, %v741_v59, %v735_v10 }
 0x2cc   :  { %v748_v63 = vmul.f32 %v742_v61, %v3239_v2  ;;  %v719_v5 = vpop.permute.xlu0 %718  ;;  %822 = vmatprep.subr.mxu0 %v747_v58  ;;  %v749_v4 = vmul.f32 %v745_v62, %v3236_v1 }
 0x2cd   :  { %823 = vmatpush1.msra.mxu0 %v746_v60 }
 0x2ce   :  { %824 = vmatprep.subr.mxu0 %v3480_v16  ;;  %893 = vmatprep.subr.mxu1 %v749_v4  ;;  %v721_v6 = vpop.permute.xlu1 %720 }
 0x2cf   :  { %v728_v7 = vsel %vm375_vm4, %v719_v5, %v721_v6  ;;  %825 = vmatpush1.msra.mxu0 %v3476_v15  ;;  %894 = vmatpush1.msra.mxu1 %v748_v63 }
 0x2d0   :  { %v723_v8 = vpop.permute.xlu0 %722  ;;  %895 = vmatprep.subr.mxu1 %v3488_v36  ;;  %v731_v9 = vmul.f32 %v728_v7, %v3271_v41 }
 0x2d1   :  { %896 = vmatpush1.msra.mxu1 %v3482_v44  ;;  %v727_v10 = vsel %vm375_vm4, %v721_v6, %v723_v8 }
 0x2d2   :  { %826 = vmatprep.subr.mxu0 %v731_v9  ;;  %v725_v56 = vpop.permute.xlu1 %724  ;;  %v732_v58 = vmul.f32 %v727_v10, %v3284_v51 }
 0x2d3   :  { %v726_v50 = vsel %vm375_vm4, %v723_v8, %v725_v56  ;;  %v729_v46 = vsel %vm375_vm4, %v725_v56, %v719_v5 }
 0x2d4   :  { %v730_v57 = vmul.f32 %v729_v46, %v3278_v48  ;;  %v703_v47 = vpop.permute.xlu0 %702  ;;  %v733_v59 = vmul.f32 %v726_v50, %v3281_v49 }
 0x2d6   :  { %827 = vmatpush1.msra.mxu0 %v730_v57  ;;  %897 = vmatprep.subr.mxu1 %v733_v59  ;;  %v705_v60 = vpop.permute.xlu1 %704 }
 0x2d7   :  { %v712_v61 = vsel %vm342_vm5, %v703_v47, %v705_v60  ;;  %898 = vmatpush1.msra.mxu1 %v732_v58 }
 0x2d8   :  { %v707_v62 = vpop.permute.xlu0 %706  ;;  %v715_v63 = vmul.f32 %v712_v61, %v3317_v24 }
 0x2d9   :  { %v711_v5 = vsel %vm342_vm5, %v705_v60, %v707_v62 }
 0x2da   :  { %828 = vmatprep.subr.mxu0 %v715_v63  ;;  %v709_v4 = vpop.permute.xlu1 %708  ;;  %v716_v56 = vmul.f32 %v711_v5, %v3329_v33 }
 0x2db   :  { %v710_v6 = vsel %vm342_vm5, %v707_v62, %v709_v4  ;;  %v713_v7 = vsel %vm342_vm5, %v709_v4, %v703_v47 }
 0x2dc   :  { %v714_v8 = vmul.f32 %v713_v7, %v3323_v31  ;;  %v687_v9 = vpop.permute.xlu0 %686  ;;  %v717_v10 = vmul.f32 %v710_v6, %v3326_v32 }
 0x2de   :  { %829 = vmatpush1.msra.mxu0 %v714_v8  ;;  %899 = vmatprep.subr.mxu1 %v717_v10  ;;  %v689_v50 = vpop.permute.xlu1 %688 }
 0x2df   :  { %v696_v46 = vsel %vm309_vm6, %v687_v9, %v689_v50  ;;  %900 = vmatpush1.msra.mxu1 %v716_v56 }
 0x2e0   :  { %v691_v57 = vpop.permute.xlu0 %690  ;;  %v699_v59 = vmul.f32 %v696_v46, %v3355_v13 }
 0x2e1   :  { %v695_v47 = vsel %vm309_vm6, %v689_v50, %v691_v57 }
 0x2e2   :  { %830 = vmatprep.subr.mxu0 %v699_v59  ;;  %v693_v58 = vpop.permute.xlu1 %692  ;;  %v700_v4 = vmul.f32 %v695_v47, %v3367_v27  ;;  %v196_v47 = vld [vmem:[%s5160_s4] sm:$0xff] }
 0x2e3   :  { %v694_v60 = vsel %vm309_vm6, %v691_v57, %v693_v58  ;;  %v697_v61 = vsel %vm309_vm6, %v693_v58, %v687_v9 }
 0x2e4   :  { %v698_v62 = vmul.f32 %v697_v61, %v3361_v25  ;;  %v671_v63 = vpop.permute.xlu0 %670  ;;  %v701_v5 = vmul.f32 %v694_v60, %v3364_v26  ;;  %v192_v60 = vld [vmem:[%s5161_s0] sm:$0xff] }
 0x2e6   :  { %831 = vmatpush1.msra.mxu0 %v698_v62  ;;  %901 = vmatprep.subr.mxu1 %v701_v5  ;;  %v673_v6 = vpop.permute.xlu1 %672  ;;  %v193_v62 = vld [vmem:[%s5161_s0 + $0x8] sm:$0xff] }
 0x2e7   :  { %v680_v7 = vsel %vm276_vm7, %v671_v63, %v673_v6  ;;  %902 = vmatpush1.msra.mxu1 %v700_v4 }
 0x2e8   :  { %v675_v8 = vpop.permute.xlu0 %674  ;;  %v683_v10 = vmul.f32 %v680_v7, %v3393_v11 }
 0x2e9   :  { %v679_v9 = vsel %vm276_vm7, %v673_v6, %v675_v8 }
 0x2ea   :  { %832 = vmatprep.subr.mxu0 %v683_v10  ;;  %v677_v56 = vpop.permute.xlu1 %676  ;;  %v684_v58 = vmul.f32 %v679_v9, %v3405_v34  ;;  %v195_v10 = vld [vmem:[%s5161_s0 + $0x18] sm:$0xff] }
 0x2eb   :  { %v678_v50 = vsel %vm276_vm7, %v675_v8, %v677_v56  ;;  %v681_v46 = vsel %vm276_vm7, %v677_v56, %v671_v63  ;;  %v194_v63 = vld [vmem:[%s5161_s0 + $0x10] sm:$0xff] }
 0x2ec   :  { %v682_v57 = vmul.f32 %v681_v46, %v3399_v21  ;;  %v685_v59 = vmul.f32 %v678_v50, %v3402_v30  ;;  %v174_v50 = vld [vmem:[%s5162_s8] sm:$0xff] }
 0x2ee   :  { %833 = vmatpush1.msra.mxu0 %v682_v57  ;;  %903 = vmatprep.subr.mxu1 %v685_v59 }
 0x2ef   :  { %2831 = vmatmul.mubr.msk.f32.vlgmr.msra.gmra.mxu0 %vm798_vm9, %v196_v47  ;;  %904 = vmatpush1.msra.mxu1 %v684_v58 }
 0x2f0   :  { %2832 = vmatmul.mubr.msk.f32.vlgmr.msra.gmra.mxu1 %vm798_vm9, %v196_v47  ;;  %1143 = vmatprep.mubr.f32.mxu0 %v5167_v45 }
 0x2f1   :  { %1214 = vmatprep.mubr.f32.mxu1 %v5167_v45 }
 0x3af   :  { %v868_v61 = vpop.f32.mrf.mxu0 }
 0x3b0   :  { %v3666_v5 = vsub.f32 %v868_v61, %v192_v60  ;;  %v939_v4 = vpop.f32.mrf.mxu1 }
 0x3b1   :  { %v870_v6 = vpop.f32.mrf.mxu0  ;;  %v3670_v8 = vsub.f32 %v939_v4, %v194_v63 }
 0x3b2   :  { %v3668_v7 = vsub.f32 %v870_v6, %v193_v62  ;;  %1060 = vrot.lane.b32.xlu0 %v3666_v5, %s2883_s26  ;;  %v941_v9 = vpop.f32.mrf.mxu1 }
 0x3b3   :  { %v3679_v56 = vsub.f32 %v941_v9, %v195_v10 }
 0x3b4   :  { %1062 = vrot.lane.b32.xlu1 %v3668_v7, %s2883_s26 }
 0x3b6   :  { %1064 = vrot.lane.b32.xlu0 %v3670_v8, %s2883_s26 }
 0x3b8   :  { %1066 = vrot.lane.b32.xlu1 %v3679_v56, %s2883_s26 }
 0x3ba   :  { %1044 = vrot.lane.b32.xlu0 %v3666_v5, %s2876_s20 }
 0x3bc   :  { %1046 = vrot.lane.b32.xlu1 %v3668_v7, %s2876_s20 }
 0x3be   :  { %1048 = vrot.lane.b32.xlu0 %v3670_v8, %s2876_s20 }
 0x3c0   :  { %1050 = vrot.lane.b32.xlu1 %v3679_v56, %s2876_s20 }
 0x3c2   :  { %1028 = vrot.lane.b32.xlu0 %v3666_v5, %s2877_s1 }
 0x3c4   :  { %1030 = vrot.lane.b32.xlu1 %v3668_v7, %s2877_s1 }
 0x3c6   :  { %1032 = vrot.lane.b32.xlu0 %v3670_v8, %s2877_s1 }
 0x3c8   :  { %1034 = vrot.lane.b32.xlu1 %v3679_v56, %s2877_s1 }
 0x3ca   :  { %1012 = vrot.lane.b32.xlu0 %v3666_v5, %s2878_s21 }
 0x3cc   :  { %1014 = vrot.lane.b32.xlu1 %v3668_v7, %s2878_s21 }
 0x3ce   :  { %1016 = vrot.lane.b32.xlu0 %v3670_v8, %s2878_s21 }
 0x3d0   :  { %1018 = vrot.lane.b32.xlu1 %v3679_v56, %s2878_s21 }
 0x3d2   :  { %996 = vrot.lane.b32.xlu0 %v3666_v5, %s2879_s22 }
 0x3d4   :  { %998 = vrot.lane.b32.xlu1 %v3668_v7, %s2879_s22 }
 0x3d6   :  { %1000 = vrot.lane.b32.xlu0 %v3670_v8, %s2879_s22 }
 0x3d8   :  { %1002 = vrot.lane.b32.xlu1 %v3679_v56, %s2879_s22 }
 0x3da   :  { %980 = vrot.lane.b32.xlu0 %v3666_v5, %s2880_s23 }
 0x3dc   :  { %982 = vrot.lane.b32.xlu1 %v3668_v7, %s2880_s23 }
 0x3de   :  { %984 = vrot.lane.b32.xlu0 %v3670_v8, %s2880_s23 }
 0x3e0   :  { %986 = vrot.lane.b32.xlu1 %v3679_v56, %s2880_s23 }
 0x3e2   :  { %964 = vrot.lane.b32.xlu0 %v3666_v5, %s2881_s24 }
 0x3e4   :  { %966 = vrot.lane.b32.xlu1 %v3668_v7, %s2881_s24 }
 0x3e6   :  { %968 = vrot.lane.b32.xlu0 %v3670_v8, %s2881_s24 }
 0x3e8   :  { %970 = vrot.lane.b32.xlu1 %v3679_v56, %s2881_s24 }
 0x3ea   :  { %948 = vrot.lane.b32.xlu0 %v3666_v5, %s2882_s25 }
 0x3ec   :  { %950 = vrot.lane.b32.xlu1 %v3668_v7, %s2882_s25 }
 0x3ee   :  { %952 = vrot.lane.b32.xlu0 %v3670_v8, %s2882_s25 }
 0x3f0   :  { %954 = vrot.lane.b32.xlu1 %v3679_v56, %s2882_s25 }
 0x3f2   :  { %177 = vperm.xlu0 %2859, %v174_v50  }
 0x424   :  { %v1061_v46 = vpop.permute.xlu0 %1060 }
 0x426   :  { %v1063_v57 = vpop.permute.xlu1 %1062 }
 0x427   :  { %v1070_v59 = vsel %vm507_vm8, %v1061_v46, %v1063_v57 }
 0x428   :  { %v1065_v47 = vpop.permute.xlu0 %1064  ;;  %v1072_v62 = vmul.f32 %v3449_v35, %v1070_v59 }
 0x429   :  { %v1069_v58 = vsel %vm507_vm8, %v1063_v57, %v1065_v47 }
 0x42a   :  { %v1067_v60 = vpop.permute.xlu1 %1066  ;;  %v1073_v61 = vmul.f32 %v3432_v42, %v1069_v58 }
 0x42b   :  { %v1068_v63 = vsel %vm507_vm8, %v1065_v47, %v1067_v60  ;;  %v1071_v4 = vsel %vm507_vm8, %v1067_v60, %v1061_v46 }
 0x42c   :  { %v1074_v6 = vmul.f32 %v3442_v14, %v1068_v63  ;;  %1093 = vmatprep.subr.mxu0 %v1073_v61  ;;  %v1045_v10 = vpop.permute.xlu0 %1044  ;;  %v1075_v9 = vmul.f32 %v3437_v12, %v1071_v4 }
 0x42d   :  { %1094 = vmatpush1.msra.mxu0 %v1072_v62 }
 0x42e   :  { %v1047_v50 = vpop.permute.xlu1 %1046  ;;  %1164 = vmatprep.subr.mxu1 %v1075_v9 }
 0x42f   :  { %1165 = vmatpush1.msra.mxu1 %v1074_v6  ;;  %v1054_v57 = vsel %vm474_vm0, %v1045_v10, %v1047_v50 }
 0x430   :  { %v1049_v59 = vpop.permute.xlu0 %1048  ;;  %v1056_v60 = vmul.f32 %v1054_v57, %v3156_v55 }
 0x431   :  { %v1053_v47 = vsel %vm474_vm0, %v1047_v50, %v1049_v59 }
 0x432   :  { %v1051_v58 = vpop.permute.xlu1 %1050  ;;  %v1057_v46 = vmul.f32 %v1053_v47, %v3147_v52 }
 0x433   :  { %v1052_v61 = vsel %vm474_vm0, %v1049_v59, %v1051_v58  ;;  %v1055_v62 = vsel %vm474_vm0, %v1051_v58, %v1045_v10 }
 0x434   :  { %v1058_v63 = vmul.f32 %v1052_v61, %v3153_v54  ;;  %1095 = vmatprep.subr.mxu0 %v1057_v46  ;;  %v1029_v4 = vpop.permute.xlu0 %1028  ;;  %v1059_v6 = vmul.f32 %v1055_v62, %v3150_v53 }
 0x435   :  { %1096 = vmatpush1.msra.mxu0 %v1056_v60 }
 0x436   :  { %v1031_v9 = vpop.permute.xlu1 %1030  ;;  %1166 = vmatprep.subr.mxu1 %v1059_v6 }
 0x437   :  { %1167 = vmatpush1.msra.mxu1 %v1058_v63  ;;  %v1038_v50 = vsel %vm441_vm2, %v1029_v4, %v1031_v9 }
 0x438   :  { %v1033_v57 = vpop.permute.xlu0 %1032  ;;  %v1040_v58 = vmul.f32 %v1038_v50, %v3204_v20 }
 0x439   :  { %v1037_v59 = vsel %vm441_vm2, %v1031_v9, %v1033_v57 }
 0x43a   :  { %v1035_v47 = vpop.permute.xlu1 %1034  ;;  %v1041_v10 = vmul.f32 %v1037_v59, %v3195_v17 }
 0x43b   :  { %v1036_v46 = vsel %vm441_vm2, %v1033_v57, %v1035_v47  ;;  %v1039_v60 = vsel %vm441_vm2, %v1035_v47, %v1029_v4 }
 0x43c   :  { %v1042_v61 = vmul.f32 %v1036_v46, %v3201_v19  ;;  %1097 = vmatprep.subr.mxu0 %v1041_v10  ;;  %v1013_v62 = vpop.permute.xlu0 %1012  ;;  %v1043_v63 = vmul.f32 %v1039_v60, %v3198_v18 }
 0x43d   :  { %1098 = vmatpush1.msra.mxu0 %v1040_v58 }
 0x43e   :  { %v1015_v6 = vpop.permute.xlu1 %1014  ;;  %1168 = vmatprep.subr.mxu1 %v1043_v63 }
 0x43f   :  { %1169 = vmatpush1.msra.mxu1 %v1042_v61  ;;  %v1022_v9 = vsel %vm408_vm3, %v1013_v62, %v1015_v6 }
 0x440   :  { %v1017_v50 = vpop.permute.xlu0 %1016  ;;  %v1024_v47 = vmul.f32 %v1022_v9, %v3242_v3 }
 0x441   :  { %v1021_v57 = vsel %vm408_vm3, %v1015_v6, %v1017_v50 }
 0x442   :  { %v1019_v59 = vpop.permute.xlu1 %1018  ;;  %v1025_v4 = vmul.f32 %v1021_v57, %v3233_v0 }
 0x443   :  { %v1020_v10 = vsel %vm408_vm3, %v1017_v50, %v1019_v59  ;;  %v1023_v58 = vsel %vm408_vm3, %v1019_v59, %v1013_v62 }
 0x444   :  { %v1026_v46 = vmul.f32 %v1020_v10, %v3239_v2  ;;  %1099 = vmatprep.subr.mxu0 %v1025_v4  ;;  %v997_v60 = vpop.permute.xlu0 %996  ;;  %v1027_v61 = vmul.f32 %v1023_v58, %v3236_v1 }
 0x445   :  { %1100 = vmatpush1.msra.mxu0 %v1024_v47 }
 0x446   :  { %v999_v63 = vpop.permute.xlu1 %998  ;;  %1101 = vmatprep.subr.mxu0 %v3668_v7  ;;  %1170 = vmatprep.subr.mxu1 %v1027_v61 }
 0x447   :  { %v1006_v6 = vsel %vm375_vm4, %v997_v60, %v999_v63  ;;  %1102 = vmatpush1.msra.mxu0 %v3666_v5  ;;  %1171 = vmatpush1.msra.mxu1 %v1026_v46 }
 0x448   :  { %1172 = vmatprep.subr.mxu1 %v3679_v56  ;;  %v1001_v62 = vpop.permute.xlu0 %1000  ;;  %v1009_v9 = vmul.f32 %v1006_v6, %v3271_v41 }
 0x449   :  { %1173 = vmatpush1.msra.mxu1 %v3670_v8  ;;  %v1005_v50 = vsel %vm375_vm4, %v999_v63, %v1001_v62 }
 0x44a   :  { %v1003_v57 = vpop.permute.xlu1 %1002  ;;  %1103 = vmatprep.subr.mxu0 %v1009_v9  ;;  %v1010_v47 = vmul.f32 %v1005_v50, %v3284_v51 }
 0x44b   :  { %v1004_v7 = vsel %vm375_vm4, %v1001_v62, %v1003_v57  ;;  %v1007_v59 = vsel %vm375_vm4, %v1003_v57, %v997_v60 }
 0x44c   :  { %v1008_v5 = vmul.f32 %v1007_v59, %v3278_v48  ;;  %v981_v4 = vpop.permute.xlu0 %980  ;;  %v1011_v56 = vmul.f32 %v1004_v7, %v3281_v49 }
 0x44e   :  { %v983_v10 = vpop.permute.xlu1 %982  ;;  %1104 = vmatpush1.msra.mxu0 %v1008_v5  ;;  %1174 = vmatprep.subr.mxu1 %v1011_v56 }
 0x44f   :  { %v990_v8 = vsel %vm342_vm5, %v981_v4, %v983_v10  ;;  %1175 = vmatpush1.msra.mxu1 %v1010_v47 }
 0x450   :  { %v985_v58 = vpop.permute.xlu0 %984  ;;  %v993_v46 = vmul.f32 %v990_v8, %v3317_v24 }
 0x451   :  { %v989_v60 = vsel %vm342_vm5, %v983_v10, %v985_v58 }
 0x452   :  { %v987_v61 = vpop.permute.xlu1 %986  ;;  %1105 = vmatprep.subr.mxu0 %v993_v46  ;;  %v994_v57 = vmul.f32 %v989_v60, %v3329_v33 }
 0x453   :  { %v988_v63 = vsel %vm342_vm5, %v985_v58, %v987_v61  ;;  %v991_v6 = vsel %vm342_vm5, %v987_v61, %v981_v4 }
 0x454   :  { %v992_v62 = vmul.f32 %v991_v6, %v3323_v31  ;;  %v965_v9 = vpop.permute.xlu0 %964  ;;  %v995_v50 = vmul.f32 %v988_v63, %v3326_v32 }
 0x456   :  { %v967_v7 = vpop.permute.xlu1 %966  ;;  %1106 = vmatpush1.msra.mxu0 %v992_v62  ;;  %1176 = vmatprep.subr.mxu1 %v995_v50 }
 0x457   :  { %v974_v59 = vsel %vm309_vm6, %v965_v9, %v967_v7  ;;  %1177 = vmatpush1.msra.mxu1 %v994_v57 }
 0x458   :  { %v969_v5 = vpop.permute.xlu0 %968  ;;  %v977_v56 = vmul.f32 %v974_v59, %v3355_v13 }
 0x459   :  { %v973_v4 = vsel %vm309_vm6, %v967_v7, %v969_v5 }
 0x45a   :  { %v971_v47 = vpop.permute.xlu1 %970  ;;  %1107 = vmatprep.subr.mxu0 %v977_v56  ;;  %v978_v61 = vmul.f32 %v973_v4, %v3367_v27  ;;  %v199_v4 = vld [vmem:[%s5163_s6] sm:$0xff] }
 0x45b   :  { %v972_v10 = vsel %vm309_vm6, %v969_v5, %v971_v47  ;;  %v975_v8 = vsel %vm309_vm6, %v971_v47, %v965_v9 }
 0x45c   :  { %v976_v58 = vmul.f32 %v975_v8, %v3361_v25  ;;  %v949_v46 = vpop.permute.xlu0 %948  ;;  %v979_v60 = vmul.f32 %v972_v10, %v3364_v26 }
 0x45e   :  { %v951_v63 = vpop.permute.xlu1 %950  ;;  %1108 = vmatpush1.msra.mxu0 %v976_v58  ;;  %1178 = vmatprep.subr.mxu1 %v979_v60 }
 0x45f   :  { %v958_v6 = vsel %vm276_vm7, %v949_v46, %v951_v63  ;;  %1179 = vmatpush1.msra.mxu1 %v978_v61 }
 0x460   :  { %v953_v62 = vpop.permute.xlu0 %952  ;;  %v961_v50 = vmul.f32 %v958_v6, %v3393_v11 }
 0x461   :  { %v957_v9 = vsel %vm276_vm7, %v951_v63, %v953_v62 }
 0x462   :  { %v955_v57 = vpop.permute.xlu1 %954  ;;  %1109 = vmatprep.subr.mxu0 %v961_v50  ;;  %v962_v47 = vmul.f32 %v957_v9, %v3405_v34 }
 0x463   :  { %v956_v7 = vsel %vm276_vm7, %v953_v62, %v955_v57  ;;  %v959_v59 = vsel %vm276_vm7, %v955_v57, %v949_v46 }
 0x464   :  { %v960_v5 = vmul.f32 %v959_v59, %v3399_v21  ;;  %v963_v56 = vmul.f32 %v956_v7, %v3402_v30 }
 0x466   :  { %1110 = vmatpush1.msra.mxu0 %v960_v5  ;;  %1180 = vmatprep.subr.mxu1 %v963_v56 }
 0x467   :  { %2833 = vmatmul.mubr.msk.f32.vlgmr.msra.gmra.mxu0 %vm798_vm9, %v199_v4  ;;  %1181 = vmatpush1.msra.mxu1 %v962_v47 }
 0x468   :  { %2834 = vmatmul.mubr.msk.f32.vlgmr.msra.gmra.mxu1 %vm798_vm9, %v199_v4  ;;  %1435 = vmatprep.mubr.f32.mxu0 %v5167_v45 }
 0x469   :  { %1512 = vmatprep.mubr.f32.mxu1 %v5167_v45 }
 0x46d   :  { %v3852_v46 = vpop.permute.xlu0 %177 }
 0x46e   :  { %5209 = vst [vmem:[#allocation10_spill] sm:$0xff] %v3852_v46 }
 0x527   :  { %v1145_v10 = vpop.f32.mrf.mxu0 }
 0x528   :  { %v1221_v8 = vsub.f32 %v3476_v15, %v1145_v10  ;;  %v1216_v58 = vpop.f32.mrf.mxu1 }
 0x529   :  { %v1223_v60 = vsub.f32 %v3482_v44, %v1216_v58  ;;  %v1147_v61 = vpop.f32.mrf.mxu0 }
 0x52a   :  { %v1225_v63 = vadd.f32 %v1221_v8, %v3852_v46  ;;  %v1222_v6 = vsub.f32 %v3480_v16, %v1147_v61  ;;  %v1218_v62 = vpop.f32.mrf.mxu1 }
 0x52b   :  { %v1227_v50 = vadd.f32 %v1223_v60, %v3852_v46  ;;  %v1224_v9 = vsub.f32 %v3488_v36, %v1218_v62 }
 0x52c   :  { %v1229_v57 = vmax.f32 %v1225_v63, 0.0  ;;  %v1226_v7 = vadd.f32 %v1222_v6, %v3852_v46 }
 0x52d   :  { %v1228_v59 = vadd.f32 %v1224_v9, %v3852_v46  ;;  %v1231_v56 = vmax.f32 %v1227_v50, 0.0 }
 0x52e   :  { %v3862_v5 = vsub.f32 %v3476_v15, %v1229_v57  ;;  %v1230_v4 = vmax.f32 %v1226_v7, 0.0  ;;  %v181_v15 = vld [vmem:[%s5164_s9 + $0x8] sm:$0xff] }
 0x52f   :  { %v1232_v10 = vmax.f32 %v1228_v59, 0.0  ;;  %v3870_v8 = vsub.f32 %v3482_v44, %v1231_v56 }
 0x530   :  { %v3865_v47 = vsub.f32 %v3480_v16, %v1230_v4  ;;  %1349 = vrot.lane.b32.xlu1 %v3862_v5, %s2883_s26  ;;  %v180_v16 = vld [vmem:[%s5164_s9] sm:$0xff] }
 0x531   :  { %v3875_v58 = vsub.f32 %v3488_v36, %v1232_v10 }
 0x532   :  { %1351 = vrot.lane.b32.xlu0 %v3865_v47, %s2883_s26 }
 0x534   :  { %1353 = vrot.lane.b32.xlu1 %v3870_v8, %s2883_s26 }
 0x536   :  { %1355 = vrot.lane.b32.xlu0 %v3875_v58, %s2883_s26 }
 0x538   :  { %1333 = vrot.lane.b32.xlu1 %v3862_v5, %s2876_s20 }
 0x53a   :  { %1335 = vrot.lane.b32.xlu0 %v3865_v47, %s2876_s20 }
 0x53c   :  { %1337 = vrot.lane.b32.xlu1 %v3870_v8, %s2876_s20 }
 0x53e   :  { %1339 = vrot.lane.b32.xlu0 %v3875_v58, %s2876_s20 }
 0x540   :  { %1317 = vrot.lane.b32.xlu1 %v3862_v5, %s2877_s1 }
 0x542   :  { %1319 = vrot.lane.b32.xlu0 %v3865_v47, %s2877_s1 }
 0x544   :  { %1321 = vrot.lane.b32.xlu1 %v3870_v8, %s2877_s1 }
 0x546   :  { %1323 = vrot.lane.b32.xlu0 %v3875_v58, %s2877_s1 }
 0x548   :  { %1301 = vrot.lane.b32.xlu1 %v3862_v5, %s2878_s21 }
 0x54a   :  { %1303 = vrot.lane.b32.xlu0 %v3865_v47, %s2878_s21 }
 0x54c   :  { %1305 = vrot.lane.b32.xlu1 %v3870_v8, %s2878_s21 }
 0x54e   :  { %1307 = vrot.lane.b32.xlu0 %v3875_v58, %s2878_s21 }
 0x550   :  { %1285 = vrot.lane.b32.xlu1 %v3862_v5, %s2879_s22 }
 0x552   :  { %1287 = vrot.lane.b32.xlu0 %v3865_v47, %s2879_s22 }
 0x554   :  { %1289 = vrot.lane.b32.xlu1 %v3870_v8, %s2879_s22 }
 0x556   :  { %1291 = vrot.lane.b32.xlu0 %v3875_v58, %s2879_s22 }
 0x558   :  { %1269 = vrot.lane.b32.xlu1 %v3862_v5, %s2880_s23 }
 0x55a   :  { %1271 = vrot.lane.b32.xlu0 %v3865_v47, %s2880_s23 }
 0x55c   :  { %1273 = vrot.lane.b32.xlu1 %v3870_v8, %s2880_s23 }
 0x55e   :  { %1275 = vrot.lane.b32.xlu0 %v3875_v58, %s2880_s23 }
 0x560   :  { %1253 = vrot.lane.b32.xlu1 %v3862_v5, %s2881_s24 }
 0x562   :  { %1255 = vrot.lane.b32.xlu0 %v3865_v47, %s2881_s24 }
 0x564   :  { %1257 = vrot.lane.b32.xlu1 %v3870_v8, %s2881_s24 }
 0x566   :  { %1259 = vrot.lane.b32.xlu0 %v3875_v58, %s2881_s24 }
 0x568   :  { %1237 = vrot.lane.b32.xlu1 %v3862_v5, %s2882_s25 }
 0x56a   :  { %1239 = vrot.lane.b32.xlu0 %v3865_v47, %s2882_s25 }
 0x56c   :  { %1241 = vrot.lane.b32.xlu1 %v3870_v8, %s2882_s25 }
 0x56e   :  { %1243 = vrot.lane.b32.xlu0 %v3875_v58, %s2882_s25 }
 0x570   :  { %189 = vperm.xlu1 %2860, %v181_v15  }
 0x572   :  { %184 = vperm.xlu0 %2859, %v180_v16  }
 0x5a2   :  { %v1350_v44 = vpop.permute.xlu1 %1349 }
 0x5a4   :  { %v1352_v36 = vpop.permute.xlu0 %1351 }
 0x5a5   :  { %v1359_v60 = vsel %vm507_vm8, %v1350_v44, %v1352_v36 }
 0x5a6   :  { %v1354_v61 = vpop.permute.xlu1 %1353  ;;  %v1361_v50 = vmul.f32 %v3449_v35, %v1359_v60 }
 0x5a7   :  { %v1358_v63 = vsel %vm507_vm8, %v1352_v36, %v1354_v61 }
 0x5a8   :  { %v1356_v6 = vpop.permute.xlu0 %1355  ;;  %v1362_v62 = vmul.f32 %v3432_v42, %v1358_v63 }
 0x5a9   :  { %v1357_v9 = vsel %vm507_vm8, %v1354_v61, %v1356_v6  ;;  %v1360_v57 = vsel %vm507_vm8, %v1356_v6, %v1350_v44 }
 0x5aa   :  { %v1363_v7 = vmul.f32 %v3442_v14, %v1357_v9  ;;  %1385 = vmatprep.subr.mxu0 %v1362_v62  ;;  %v1334_v59 = vpop.permute.xlu1 %1333  ;;  %v1364_v56 = vmul.f32 %v3437_v12, %v1360_v57 }
 0x5ab   :  { %1386 = vmatpush1.msra.mxu0 %v1361_v50 }
 0x5ac   :  { %v1336_v4 = vpop.permute.xlu0 %1335  ;;  %1462 = vmatprep.subr.mxu1 %v1364_v56 }
 0x5ad   :  { %1463 = vmatpush1.msra.mxu1 %v1363_v7  ;;  %v1343_v42 = vsel %vm474_vm0, %v1334_v59, %v1336_v4 }
 0x5ae   :  { %v1338_v35 = vpop.permute.xlu1 %1337  ;;  %v1345_v14 = vmul.f32 %v1343_v42, %v3156_v55 }
 0x5af   :  { %v1342_v10 = vsel %vm474_vm0, %v1336_v4, %v1338_v35 }
 0x5b0   :  { %v1340_v15 = vpop.permute.xlu0 %1339  ;;  %v1346_v16 = vmul.f32 %v1342_v10, %v3147_v52 }
 0x5b1   :  { %v1341_v44 = vsel %vm474_vm0, %v1338_v35, %v1340_v15  ;;  %v1344_v12 = vsel %vm474_vm0, %v1340_v15, %v1334_v59 }
 0x5b2   :  { %v1347_v36 = vmul.f32 %v1341_v44, %v3153_v54  ;;  %1387 = vmatprep.subr.mxu0 %v1346_v16  ;;  %v1318_v60 = vpop.permute.xlu1 %1317  ;;  %v1348_v61 = vmul.f32 %v1344_v12, %v3150_v53 }
 0x5b3   :  { %1388 = vmatpush1.msra.mxu0 %v1345_v14 }
 0x5b4   :  { %v1320_v63 = vpop.permute.xlu0 %1319  ;;  %1464 = vmatprep.subr.mxu1 %v1348_v61 }
 0x5b5   :  { %1465 = vmatpush1.msra.mxu1 %v1347_v36  ;;  %v1327_v6 = vsel %vm441_vm2, %v1318_v60, %v1320_v63 }
 0x5b6   :  { %v1322_v62 = vpop.permute.xlu1 %1321  ;;  %v1329_v7 = vmul.f32 %v1327_v6, %v3204_v20 }
 0x5b7   :  { %v1326_v50 = vsel %vm441_vm2, %v1320_v63, %v1322_v62 }
 0x5b8   :  { %v1324_v9 = vpop.permute.xlu0 %1323  ;;  %v1330_v57 = vmul.f32 %v1326_v50, %v3195_v17 }
 0x5b9   :  { %v1325_v59 = vsel %vm441_vm2, %v1322_v62, %v1324_v9  ;;  %v1328_v56 = vsel %vm441_vm2, %v1324_v9, %v1318_v60 }
 0x5ba   :  { %v1331_v4 = vmul.f32 %v1325_v59, %v3201_v19  ;;  %1389 = vmatprep.subr.mxu0 %v1330_v57  ;;  %v1302_v42 = vpop.permute.xlu1 %1301  ;;  %v1332_v35 = vmul.f32 %v1328_v56, %v3198_v18 }
 0x5bb   :  { %1390 = vmatpush1.msra.mxu0 %v1329_v7 }
 0x5bc   :  { %v1304_v10 = vpop.permute.xlu0 %1303  ;;  %1466 = vmatprep.subr.mxu1 %v1332_v35 }
 0x5bd   :  { %1467 = vmatpush1.msra.mxu1 %v1331_v4  ;;  %v1311_v15 = vsel %vm408_vm3, %v1302_v42, %v1304_v10 }
 0x5be   :  { %v1306_v16 = vpop.permute.xlu1 %1305  ;;  %v1313_v36 = vmul.f32 %v1311_v15, %v3242_v3 }
 0x5bf   :  { %v1310_v14 = vsel %vm408_vm3, %v1304_v10, %v1306_v16 }
 0x5c0   :  { %v1308_v44 = vpop.permute.xlu0 %1307  ;;  %v1314_v12 = vmul.f32 %v1310_v14, %v3233_v0 }
 0x5c1   :  { %v1309_v60 = vsel %vm408_vm3, %v1306_v16, %v1308_v44  ;;  %v1312_v61 = vsel %vm408_vm3, %v1308_v44, %v1302_v42 }
 0x5c2   :  { %v1315_v63 = vmul.f32 %v1309_v60, %v3239_v2  ;;  %1391 = vmatprep.subr.mxu0 %v1314_v12  ;;  %v1286_v6 = vpop.permute.xlu1 %1285  ;;  %v1316_v62 = vmul.f32 %v1312_v61, %v3236_v1 }
 0x5c3   :  { %1392 = vmatpush1.msra.mxu0 %v1313_v36 }
 0x5c4   :  { %v1288_v50 = vpop.permute.xlu0 %1287  ;;  %1393 = vmatprep.subr.mxu0 %v3865_v47  ;;  %1468 = vmatprep.subr.mxu1 %v1316_v62 }
 0x5c5   :  { %v1295_v9 = vsel %vm375_vm4, %v1286_v6, %v1288_v50  ;;  %1394 = vmatpush1.msra.mxu0 %v3862_v5  ;;  %1469 = vmatpush1.msra.mxu1 %v1315_v63 }
 0x5c6   :  { %1470 = vmatprep.subr.mxu1 %v3875_v58  ;;  %v1290_v57 = vpop.permute.xlu1 %1289  ;;  %v1298_v7 = vmul.f32 %v1295_v9, %v3271_v41 }
 0x5c7   :  { %1471 = vmatpush1.msra.mxu1 %v3870_v8  ;;  %v1294_v59 = vsel %vm375_vm4, %v1288_v50, %v1290_v57 }
 0x5c8   :  { %v1292_v56 = vpop.permute.xlu0 %1291  ;;  %1395 = vmatprep.subr.mxu0 %v1298_v7  ;;  %v1299_v35 = vmul.f32 %v1294_v59, %v3284_v51 }
 0x5c9   :  { %v1293_v47 = vsel %vm375_vm4, %v1290_v57, %v1292_v56  ;;  %v1296_v4 = vsel %vm375_vm4, %v1292_v56, %v1286_v6 }
 0x5ca   :  { %v1297_v5 = vmul.f32 %v1296_v4, %v3278_v48  ;;  %v1270_v42 = vpop.permute.xlu1 %1269  ;;  %v1300_v58 = vmul.f32 %v1293_v47, %v3281_v49 }
 0x5cc   :  { %v1272_v10 = vpop.permute.xlu0 %1271  ;;  %1396 = vmatpush1.msra.mxu0 %v1297_v5  ;;  %1472 = vmatprep.subr.mxu1 %v1300_v58 }
 0x5cd   :  { %v1279_v8 = vsel %vm342_vm5, %v1270_v42, %v1272_v10  ;;  %1473 = vmatpush1.msra.mxu1 %v1299_v35 }
 0x5ce   :  { %v1274_v15 = vpop.permute.xlu1 %1273  ;;  %v1282_v16 = vmul.f32 %v1279_v8, %v3317_v24 }
 0x5cf   :  { %v1278_v14 = vsel %vm342_vm5, %v1272_v10, %v1274_v15 }
 0x5d0   :  { %v1276_v44 = vpop.permute.xlu0 %1275  ;;  %1397 = vmatprep.subr.mxu0 %v1282_v16  ;;  %v1283_v6 = vmul.f32 %v1278_v14, %v3329_v33 }
 0x5d1   :  { %v1277_v12 = vsel %vm342_vm5, %v1274_v15, %v1276_v44  ;;  %v1280_v36 = vsel %vm342_vm5, %v1276_v44, %v1270_v42 }
 0x5d2   :  { %v1281_v60 = vmul.f32 %v1280_v36, %v3323_v31  ;;  %v1254_v61 = vpop.permute.xlu1 %1253  ;;  %v1284_v63 = vmul.f32 %v1277_v12, %v3326_v32 }
 0x5d4   :  { %v1256_v62 = vpop.permute.xlu0 %1255  ;;  %1398 = vmatpush1.msra.mxu0 %v1281_v60  ;;  %1474 = vmatprep.subr.mxu1 %v1284_v63 }
 0x5d5   :  { %v1263_v50 = vsel %vm309_vm6, %v1254_v61, %v1256_v62  ;;  %1475 = vmatpush1.msra.mxu1 %v1283_v6  ;;  %v201_v6 = vld [vmem:[%s5165_s7 + $0x8] sm:$0xff] }
 0x5d6   :  { %v1258_v9 = vpop.permute.xlu1 %1257  ;;  %v1266_v57 = vmul.f32 %v1263_v50, %v3355_v13 }
 0x5d7   :  { %v1262_v7 = vsel %vm309_vm6, %v1256_v62, %v1258_v9  ;;  %v2861_v62 = vld [vmem:[%s5159_s5 + $0x8] sm:$0xff] }
 0x5d8   :  { %v1260_v59 = vpop.permute.xlu0 %1259  ;;  %1399 = vmatprep.subr.mxu0 %v1266_v57  ;;  %v1267_v58 = vmul.f32 %v1262_v7, %v3367_v27 }
 0x5d9   :  { %v1261_v56 = vsel %vm309_vm6, %v1258_v9, %v1260_v59  ;;  %v1264_v47 = vsel %vm309_vm6, %v1260_v59, %v1254_v61  ;;  %v200_v61 = vld [vmem:[%s5165_s7] sm:$0xff] }
 0x5da   :  { %v1265_v4 = vmul.f32 %v1264_v47, %v3361_v25  ;;  %v1238_v5 = vpop.permute.xlu1 %1237  ;;  %v1268_v42 = vmul.f32 %v1261_v56, %v3364_v26 }
 0x5dc   :  { %v1240_v35 = vpop.permute.xlu0 %1239  ;;  %1400 = vmatpush1.msra.mxu0 %v1265_v4  ;;  %1476 = vmatprep.subr.mxu1 %v1268_v42 }
 0x5dd   :  { %v1247_v10 = vsel %vm276_vm7, %v1238_v5, %v1240_v35  ;;  %1477 = vmatpush1.msra.mxu1 %v1267_v58 }
 0x5de   :  { %v1242_v8 = vpop.permute.xlu1 %1241  ;;  %v1250_v15 = vmul.f32 %v1247_v10, %v3393_v11 }
 0x5df   :  { %v1246_v16 = vsel %vm276_vm7, %v1240_v35, %v1242_v8 }
 0x5e0   :  { %v1244_v14 = vpop.permute.xlu0 %1243  ;;  %1401 = vmatprep.subr.mxu0 %v1250_v15  ;;  %v1251_v63 = vmul.f32 %v1246_v16, %v3405_v34 }
 0x5e1   :  { %v1245_v44 = vsel %vm276_vm7, %v1242_v8, %v1244_v14  ;;  %v1248_v12 = vsel %vm276_vm7, %v1244_v14, %v1238_v5 }
 0x5e2   :  { %v1249_v36 = vmul.f32 %v1248_v12, %v3399_v21  ;;  %v1252_v60 = vmul.f32 %v1245_v44, %v3402_v30 }
 0x5e4   :  { %1402 = vmatpush1.msra.mxu0 %v1249_v36  ;;  %1478 = vmatprep.subr.mxu1 %v1252_v60 }
 0x5e5   :  { %2835 = vmatmul.mubr.msk.f32.vlgmr.msra.gmra.mxu0 %vm798_vm9, %v200_v61  ;;  %1479 = vmatpush1.msra.mxu1 %v1251_v63 }
 0x5e6   :  { %2837 = vmatmul.mubr.msk.f32.vlgmr.msra.gmra.mxu1 %vm798_vm9, %v200_v61  ;;  %1441 = vmatprep.mubr.f32.mxu0 %v5167_v45 }
 0x5e7   :  { %1518 = vmatprep.mubr.f32.mxu1 %v5167_v45 }
 0x5e9   :  { %2836 = vmatmul.mubr.msk.f32.gmra.mxu0 %vm798_vm9, %v201_v6 }
 0x5ea   :  { %2838 = vmatmul.mubr.msk.f32.gmra.mxu1 %vm798_vm9, %v201_v6  ;;  %2839 = vmatprep.mubr.msk.f32.mxu0 %vm524_vm1, %v2861_v62 }
 0x5eb   :  { %2840 = vmatprep.mubr.msk.f32.mxu1 %vm524_vm1, %v2861_v62  ;;  %v4134_v12 = vpop.permute.xlu1 %189 }
 0x5ec   :  { %5211 = vst [vmem:[#allocation12_spill] sm:$0xff] %v4134_v12 }
 0x5ed   :  { %v4061_v7 = vpop.permute.xlu0 %184 }
 0x5ee   :  { %5210 = vst [vmem:[#allocation11_spill] sm:$0xff] %v4061_v7 }
 0x6a5   :  { %v1437_v50 = vpop.f32.mrf.mxu0 }
 0x6a6   :  { %v1525_v9 = vsub.f32 %v2997_v37, %v1437_v50  ;;  %v1514_v57 = vpop.f32.mrf.mxu1 }
 0x6a7   :  { %v1527_v59 = vsub.f32 %v3005_v39, %v1514_v57  ;;  %v1439_v56 = vpop.f32.mrf.mxu0 }
 0x6a8   :  { %v1533_v47 = vadd.f32 %v1525_v9, %v4061_v7  ;;  %v1526_v4 = vsub.f32 %v2999_v38, %v1439_v56  ;;  %v1516_v5 = vpop.f32.mrf.mxu1 }
 0x6a9   :  { %v1528_v42 = vsub.f32 %v3007_v40, %v1516_v5  ;;  %v1535_v35 = vadd.f32 %v1527_v59, %v4061_v7  ;;  %v1443_v40 = vpop.f32.mrf.mxu0 }
 0x6aa   :  { %v4067_v58 = vmax.f32 %v1533_v47, 0.0  ;;  %v1534_v10 = vadd.f32 %v1526_v4, %v4061_v7  ;;  %v1520_v15 = vpop.f32.mrf.mxu1  ;;  %v1529_v14 = vsub.f32 %v2975_v22, %v1443_v40 }
 0x6ab   :  { %v1536_v8 = vadd.f32 %v1528_v42, %v4061_v7  ;;  %v4076_v39 = vmax.f32 %v1535_v35, 0.0  ;;  %v1445_v16 = vpop.f32.mrf.mxu0  ;;  %v1531_v61 = vsub.f32 %v2989_v28, %v1520_v15 }
 0x6ac   :  { %v4071_v37 = vmax.f32 %v1534_v10, 0.0  ;;  %1741 = vrot.lane.b32.xlu1 %v4067_v58, %s2876_s20  ;;  %v1530_v44 = vsub.f32 %v2977_v23, %v1445_v16  ;;  %v1522_v36 = vpop.f32.mrf.mxu1  ;;  %v1537_v60 = vadd.f32 %v1529_v14, %v4134_v12 }
 0x6ad   :  { %v4080_v38 = vmax.f32 %v1536_v8, 0.0  ;;  %v1532_v63 = vsub.f32 %v2991_v29, %v1522_v36  ;;  %v1539_v6 = vadd.f32 %v1531_v61, %v4134_v12 }
 0x6ae   :  { %1745 = vrot.lane.b32.xlu0 %v4071_v37, %s2876_s20  ;;  %v1538_v22 = vadd.f32 %v1530_v44, %v4134_v12  ;;  %v4144_v23 = vmax.f32 %v1537_v60, 0.0 }
 0x6af   :  { %v1540_v28 = vadd.f32 %v1532_v63, %v4134_v12  ;;  %v4154_v50 = vmax.f32 %v1539_v6, 0.0 }
 0x6b0   :  { %1749 = vrot.lane.b32.xlu1 %v4076_v39, %s2876_s20  ;;  %v4149_v62 = vmax.f32 %v1538_v22, 0.0 }
 0x6b1   :  { %v4158_v29 = vmax.f32 %v1540_v28, 0.0 }
 0x6b2   :  { %1753 = vrot.lane.b32.xlu0 %v4080_v38, %s2876_s20 }
 0x6b4   :  { %1709 = vrot.lane.b32.xlu1 %v4067_v58, %s2877_s1 }
 0x6b6   :  { %1713 = vrot.lane.b32.xlu0 %v4071_v37, %s2877_s1 }
 0x6b8   :  { %1717 = vrot.lane.b32.xlu1 %v4076_v39, %s2877_s1 }
 0x6ba   :  { %1721 = vrot.lane.b32.xlu0 %v4080_v38, %s2877_s1 }
 0x6bc   :  { %1677 = vrot.lane.b32.xlu1 %v4067_v58, %s2878_s21 }
 0x6be   :  { %1681 = vrot.lane.b32.xlu0 %v4071_v37, %s2878_s21 }
 0x6c0   :  { %1685 = vrot.lane.b32.xlu1 %v4076_v39, %s2878_s21 }
 0x6c2   :  { %1689 = vrot.lane.b32.xlu0 %v4080_v38, %s2878_s21 }
 0x6c4   :  { %1645 = vrot.lane.b32.xlu1 %v4067_v58, %s2879_s22 }
 0x6c6   :  { %1649 = vrot.lane.b32.xlu0 %v4071_v37, %s2879_s22 }
 0x6c8   :  { %1653 = vrot.lane.b32.xlu1 %v4076_v39, %s2879_s22 }
 0x6ca   :  { %1657 = vrot.lane.b32.xlu0 %v4080_v38, %s2879_s22 }
 0x6cc   :  { %1613 = vrot.lane.b32.xlu1 %v4067_v58, %s2880_s23 }
 0x6ce   :  { %1617 = vrot.lane.b32.xlu0 %v4071_v37, %s2880_s23 }
 0x6d0   :  { %1621 = vrot.lane.b32.xlu1 %v4076_v39, %s2880_s23 }
 0x6d2   :  { %1625 = vrot.lane.b32.xlu0 %v4080_v38, %s2880_s23 }
 0x6d4   :  { %1581 = vrot.lane.b32.xlu1 %v4067_v58, %s2881_s24 }
 0x6d6   :  { %1585 = vrot.lane.b32.xlu0 %v4071_v37, %s2881_s24 }
 0x6d8   :  { %1589 = vrot.lane.b32.xlu1 %v4076_v39, %s2881_s24 }
 0x6da   :  { %1593 = vrot.lane.b32.xlu0 %v4080_v38, %s2881_s24 }
 0x6dc   :  { %1549 = vrot.lane.b32.xlu1 %v4067_v58, %s2882_s25 }
 0x6de   :  { %1553 = vrot.lane.b32.xlu0 %v4071_v37, %s2882_s25 }
 0x6e0   :  { %1557 = vrot.lane.b32.xlu1 %v4076_v39, %s2882_s25 }
 0x6e2   :  { %1561 = vrot.lane.b32.xlu0 %v4080_v38, %s2882_s25 }
 0x6e4   :  { %1773 = vrot.lane.b32.xlu1 %v4067_v58, %s2883_s26 }
 0x6e6   :  { %1777 = vrot.lane.b32.xlu0 %v4071_v37, %s2883_s26 }
 0x6e8   :  { %1743 = vrot.lane.b32.xlu1 %v4144_v23, %s2876_s20 }
 0x6ea   :  { %1747 = vrot.lane.b32.xlu0 %v4149_v62, %s2876_s20 }
 0x6ec   :  { %1751 = vrot.lane.b32.xlu1 %v4154_v50, %s2876_s20 }
 0x6ee   :  { %1755 = vrot.lane.b32.xlu0 %v4158_v29, %s2876_s20 }
 0x6f0   :  { %1711 = vrot.lane.b32.xlu1 %v4144_v23, %s2877_s1 }
 0x6f2   :  { %1715 = vrot.lane.b32.xlu0 %v4149_v62, %s2877_s1 }
 0x6f4   :  { %1719 = vrot.lane.b32.xlu1 %v4154_v50, %s2877_s1 }
 0x6f6   :  { %1723 = vrot.lane.b32.xlu0 %v4158_v29, %s2877_s1 }
 0x6f8   :  { %1679 = vrot.lane.b32.xlu1 %v4144_v23, %s2878_s21 }
 0x6fa   :  { %1683 = vrot.lane.b32.xlu0 %v4149_v62, %s2878_s21 }
 0x6fc   :  { %1687 = vrot.lane.b32.xlu1 %v4154_v50, %s2878_s21 }
 0x6fe   :  { %1691 = vrot.lane.b32.xlu0 %v4158_v29, %s2878_s21 }
 0x700   :  { %1647 = vrot.lane.b32.xlu1 %v4144_v23, %s2879_s22 }
 0x702   :  { %1651 = vrot.lane.b32.xlu0 %v4149_v62, %s2879_s22 }
 0x704   :  { %1655 = vrot.lane.b32.xlu1 %v4154_v50, %s2879_s22 }
 0x706   :  { %1659 = vrot.lane.b32.xlu0 %v4158_v29, %s2879_s22 }
 0x708   :  { %1615 = vrot.lane.b32.xlu1 %v4144_v23, %s2880_s23 }
 0x70a   :  { %1619 = vrot.lane.b32.xlu0 %v4149_v62, %s2880_s23 }
 0x70c   :  { %1623 = vrot.lane.b32.xlu1 %v4154_v50, %s2880_s23 }
 0x70e   :  { %1627 = vrot.lane.b32.xlu0 %v4158_v29, %s2880_s23 }
 0x710   :  { %1583 = vrot.lane.b32.xlu1 %v4144_v23, %s2881_s24 }
 0x712   :  { %1587 = vrot.lane.b32.xlu0 %v4149_v62, %s2881_s24 }
 0x714   :  { %1591 = vrot.lane.b32.xlu1 %v4154_v50, %s2881_s24 }
 0x716   :  { %1595 = vrot.lane.b32.xlu0 %v4158_v29, %s2881_s24 }
 0x718   :  { %1551 = vrot.lane.b32.xlu1 %v4144_v23, %s2882_s25 }
 0x71a   :  { %1555 = vrot.lane.b32.xlu0 %v4149_v62, %s2882_s25 }
 0x71c   :  { %1559 = vrot.lane.b32.xlu1 %v4154_v50, %s2882_s25 }
 0x71e   :  { %1563 = vrot.lane.b32.xlu0 %v4158_v29, %s2882_s25  ;;  %v1742_v9 = vpop.permute.xlu1 %1741 }
 0x720   :  { %v1746_v57 = vpop.permute.xlu0 %1745  ;;  %1775 = vrot.lane.b32.xlu1 %v4144_v23, %s2883_s26 }
 0x722   :  { %1779 = vrot.lane.b32.xlu0 %v4149_v62, %s2883_s26  ;;  %v1750_v59 = vpop.permute.xlu1 %1749 }
 0x724   :  { %v1754_v56 = vpop.permute.xlu0 %1753  ;;  %1783 = vrot.lane.b32.xlu1 %v4154_v50, %s2883_s26 }
 0x726   :  { %1787 = vrot.lane.b32.xlu0 %v4158_v29, %s2883_s26  ;;  %v4220_v47 = vpop.permute.xlu1 %1709 }
 0x728   :  { %v1714_v4 = vpop.permute.xlu0 %1713  ;;  %1781 = vrot.lane.b32.xlu1 %v4076_v39, %s2883_s26 }
 0x72a   :  { %1785 = vrot.lane.b32.xlu0 %v4080_v38, %s2883_s26  ;;  %v4226_v5 = vpop.permute.xlu1 %1717 }
 0x72c   :  { %v4228_v42 = vpop.permute.xlu0 %1721 }
 0x72e   :  { %v4230_v35 = vpop.permute.xlu1 %1677 }
 0x730   :  { %v4232_v10 = vpop.permute.xlu0 %1681 }
 0x732   :  { %v4234_v8 = vpop.permute.xlu1 %1685 }
 0x734   :  { %v4236_v40 = vpop.permute.xlu0 %1689 }
 0x736   :  { %v4238_v15 = vpop.permute.xlu1 %1645 }
 0x738   :  { %v4240_v16 = vpop.permute.xlu0 %1649 }
 0x73a   :  { %v4242_v14 = vpop.permute.xlu1 %1653 }
 0x73c   :  { %v4244_v44 = vpop.permute.xlu0 %1657 }
 0x73e   :  { %v4246_v36 = vpop.permute.xlu1 %1613 }
 0x740   :  { %v4248_v60 = vpop.permute.xlu0 %1617 }
 0x742   :  { %v4250_v61 = vpop.permute.xlu1 %1621 }
 0x744   :  { %v4252_v22 = vpop.permute.xlu0 %1625 }
 0x746   :  { %v4254_v63 = vpop.permute.xlu1 %1581 }
 0x747   :  { %5212 = vst [vmem:[#allocation13_spill] sm:$0xff] %v4254_v63 }
 0x748   :  { %v4256_v6 = vpop.permute.xlu0 %1585 }
 0x749   :  { %5213 = vst [vmem:[#allocation14_spill] sm:$0xff] %v4256_v6 }
 0x74a   :  { %v4258_v28 = vpop.permute.xlu1 %1589 }
 0x74b   :  { %5214 = vst [vmem:[#allocation15_spill] sm:$0xff] %v4258_v28  ;;  %v1759_v28 = vsel %vm474_vm0, %v1746_v57, %v1750_v59 }
 0x74c   :  { %v4260_v45 = vpop.permute.xlu0 %1593 }
 0x74d   :  { %5215 = vst [vmem:[#allocation16_spill] sm:$0xff] %v4260_v45 }
 0x74e   :  { %v4262_v12 = vpop.permute.xlu1 %1549 }
 0x74f   :  { %5216 = vst [vmem:[#allocation17_spill] sm:$0xff] %v4262_v12 }
 0x750   :  { %v4264_v7 = vpop.permute.xlu0 %1553 }
 0x751   :  { %5217 = vst [vmem:[#allocation18_spill] sm:$0xff] %v4264_v7 }
 0x752   :  { %v4266_v46 = vpop.permute.xlu1 %1557 }
 0x753   :  { %5218 = vst [vmem:[#allocation19_spill] sm:$0xff] %v4266_v46  ;;  %v1761_v46 = vsel %vm474_vm0, %v1742_v9, %v1746_v57 }
 0x754   :  { %v4268_v34 = vpop.permute.xlu0 %1561 }
 0x755   :  { %5219 = vst [vmem:[#allocation20_spill] sm:$0xff] %v4268_v34 }
 0x756   :  { %v4270_v30 = vpop.permute.xlu1 %1773 }
 0x757   :  { %5220 = vst [vmem:[#allocation21_spill] sm:$0xff] %v4270_v30 }
 0x758   :  { %v4272_v21 = vpop.permute.xlu0 %1777 }
 0x759   :  { %5221 = vst [vmem:[#allocation22_spill] sm:$0xff] %v4272_v21  ;;  %v1763_v21 = vsel %vm474_vm0, %v1754_v56, %v1742_v9  ;;  %v1765_v9 = vmul.f32 %v1761_v46, %v3156_v55 }
 0x75a   :  { %v1744_v11 = vpop.permute.xlu1 %1743 }
 0x75c   :  { %v1748_v27 = vpop.permute.xlu0 %1747 }
 0x75d   :  { %v1762_v26 = vsel %vm474_vm0, %v1744_v11, %v1748_v27 }
 0x75e   :  { %v1752_v25 = vpop.permute.xlu1 %1751  ;;  %v1769_v7 = vmul.f32 %v1762_v26, %v3156_v55 }
 0x75f   :  { %v1760_v12 = vsel %vm474_vm0, %v1748_v27, %v1752_v25  ;;  %v1757_v27 = vsel %vm474_vm0, %v1750_v59, %v1754_v56  ;;  %v1731_v59 = vsel %vm441_vm2, %v4228_v42, %v4220_v47 }
 0x760   :  { %v1756_v34 = vpop.permute.xlu0 %1755  ;;  %v1770_v30 = vmul.f32 %v1760_v12, %v3147_v52  ;;  %v1766_v12 = vmul.f32 %v1759_v28, %v3147_v52 }
 0x761   :  { %v1758_v45 = vsel %vm474_vm0, %v1752_v25, %v1756_v34  ;;  %v1764_v63 = vsel %vm474_vm0, %v1756_v34, %v1744_v11  ;;  %v1768_v25 = vmul.f32 %v1763_v21, %v3150_v53  ;;  %v1767_v11 = vmul.f32 %v1757_v27, %v3153_v54 }
 0x762   :  { %v1771_v6 = vmul.f32 %v1758_v45, %v3153_v54  ;;  %1805 = vmatprep.subr.mxu0 %v1770_v30  ;;  %v1712_v57 = vpop.permute.xlu1 %1711  ;;  %v1772_v13 = vmul.f32 %v1764_v63, %v3150_v53  ;;  %v1727_v45 = vsel %vm441_vm2, %v1714_v4, %v4226_v5 }
 0x763   :  { %1806 = vmatpush1.msra.mxu0 %v1769_v7 }
 0x764   :  { %v1716_v26 = vpop.permute.xlu0 %1715  ;;  %1807 = vmatprep.subr.mxu0 %v1766_v12  ;;  %1876 = vmatprep.subr.mxu1 %v1772_v13  ;;  %v1729_v13 = vsel %vm441_vm2, %v4220_v47, %v1714_v4  ;;  %v1725_v4 = vsel %vm441_vm2, %v4226_v5, %v4228_v42  ;;  %v1734_v12 = vmul.f32 %v1727_v45, %v3195_v17 }
 0x765   :  { %1808 = vmatpush1.msra.mxu0 %v1765_v9  ;;  %1877 = vmatpush1.msra.mxu1 %v1771_v6  ;;  %v1730_v30 = vsel %vm441_vm2, %v1712_v57, %v1716_v26  ;;  %v1733_v9 = vmul.f32 %v1729_v13, %v3204_v20  ;;  %v1699_v13 = vsel %vm408_vm3, %v4236_v40, %v4230_v35 }
 0x766   :  { %1878 = vmatprep.subr.mxu1 %v1768_v25  ;;  %v1720_v34 = vpop.permute.xlu1 %1719  ;;  %v1737_v56 = vmul.f32 %v1730_v30, %v3204_v20  ;;  %v1735_v25 = vmul.f32 %v1725_v4, %v3201_v19 }
 0x767   :  { %v1728_v46 = vsel %vm441_vm2, %v1716_v26, %v1720_v34  ;;  %1879 = vmatpush1.msra.mxu1 %v1767_v11  ;;  %v1695_v11 = vsel %vm408_vm3, %v4232_v10, %v4234_v8 }
 0x768   :  { %v1724_v21 = vpop.permute.xlu0 %1723  ;;  %v1738_v7 = vmul.f32 %v1728_v46, %v3195_v17 }
 0x769   :  { %v1726_v63 = vsel %vm441_vm2, %v1720_v34, %v1724_v21  ;;  %v1732_v6 = vsel %vm441_vm2, %v1724_v21, %v1712_v57  ;;  %v1736_v57 = vmul.f32 %v1731_v59, %v3198_v18  ;;  %v1697_v34 = vsel %vm408_vm3, %v4230_v35, %v4232_v10 }
 0x76a   :  { %v1739_v28 = vmul.f32 %v1726_v63, %v3201_v19  ;;  %1809 = vmatprep.subr.mxu0 %v1738_v7  ;;  %v1680_v27 = vpop.permute.xlu1 %1679  ;;  %v1740_v47 = vmul.f32 %v1732_v6, %v3198_v18  ;;  %v1693_v10 = vsel %vm408_vm3, %v4234_v8, %v4236_v40  ;;  %v1702_v6 = vmul.f32 %v1695_v11, %v3233_v0 }
 0x76b   :  { %1810 = vmatpush1.msra.mxu0 %v1737_v56  ;;  %v1701_v4 = vmul.f32 %v1697_v34, %v3242_v3 }
 0x76c   :  { %v1684_v26 = vpop.permute.xlu0 %1683  ;;  %1811 = vmatprep.subr.mxu0 %v1734_v12  ;;  %1880 = vmatprep.subr.mxu1 %v1740_v47  ;;  %v1703_v12 = vmul.f32 %v1693_v10, %v3239_v2  ;;  %v1665_v47 = vsel %vm375_vm4, %v4238_v15, %v4240_v16 }
 0x76d   :  { %1812 = vmatpush1.msra.mxu0 %v1733_v9  ;;  %1881 = vmatpush1.msra.mxu1 %v1739_v28  ;;  %v1698_v5 = vsel %vm408_vm3, %v1680_v27, %v1684_v26  ;;  %v1661_v9 = vsel %vm375_vm4, %v4242_v14, %v4244_v44 }
 0x76e   :  { %1882 = vmatprep.subr.mxu1 %v1736_v57  ;;  %v1688_v42 = vpop.permute.xlu1 %1687  ;;  %v1705_v21 = vmul.f32 %v1698_v5, %v3242_v3  ;;  %v1667_v5 = vsel %vm375_vm4, %v4244_v44, %v4238_v15 }
 0x76f   :  { %v1696_v30 = vsel %vm408_vm3, %v1684_v26, %v1688_v42  ;;  %1883 = vmatpush1.msra.mxu1 %v1735_v25 }
 0x770   :  { %v1692_v45 = vpop.permute.xlu0 %1691  ;;  %v1706_v46 = vmul.f32 %v1696_v30, %v3233_v0  ;;  %v1663_v30 = vsel %vm375_vm4, %v4240_v16, %v4242_v14  ;;  %v1672_v16 = vmul.f32 %v1661_v9, %v3281_v49 }
 0x771   :  { %v1694_v7 = vsel %vm408_vm3, %v1688_v42, %v1692_v45  ;;  %v1700_v59 = vsel %vm408_vm3, %v1692_v45, %v1680_v27  ;;  %v1704_v27 = vmul.f32 %v1699_v13, %v3236_v1  ;;  %v1669_v13 = vmul.f32 %v1667_v5, %v3278_v48  ;;  %v5222_v5 = vld [vmem:[#allocation2_spill] sm:$0xff] }
 0x772   :  { %v1707_v56 = vmul.f32 %v1694_v7, %v3239_v2  ;;  %1813 = vmatprep.subr.mxu0 %v1706_v46  ;;  %v1648_v63 = vpop.permute.xlu1 %1647  ;;  %v1708_v35 = vmul.f32 %v1700_v59, %v3236_v1  ;;  %v1670_v46 = vmul.f32 %v1665_v47, %v3271_v41  ;;  %v1671_v14 = vmul.f32 %v1663_v30, %v3284_v51  ;;  %v5224_v30 = vld [vmem:[#allocation13_spill] sm:$0xff] }
 0x773   :  { %1814 = vmatpush1.msra.mxu0 %v1705_v21 }
 0x774   :  { %v1652_v28 = vpop.permute.xlu0 %1651  ;;  %1815 = vmatprep.subr.mxu0 %v1702_v6  ;;  %1884 = vmatprep.subr.mxu1 %v1708_v35  ;;  %v1629_v35 = vsel %vm342_vm5, %v4250_v61, %v4252_v22 }
 0x775   :  { %v1666_v8 = vsel %vm375_vm4, %v1648_v63, %v1652_v28  ;;  %1816 = vmatpush1.msra.mxu0 %v1701_v4  ;;  %1885 = vmatpush1.msra.mxu1 %v1707_v56  ;;  %v1633_v56 = vsel %vm342_vm5, %v4246_v36, %v4248_v60  ;;  %v1635_v4 = vsel %vm342_vm5, %v4252_v22, %v4246_v36 }
 0x776   :  { %1817 = vmatprep.subr.mxu0 %v4149_v62  ;;  %1886 = vmatprep.subr.mxu1 %v1704_v27  ;;  %v1656_v40 = vpop.permute.xlu1 %1655  ;;  %v1674_v25 = vmul.f32 %v1666_v8, %v3271_v41  ;;  %v1638_v36 = vmul.f32 %v1633_v56, %v3317_v24  ;;  %v1637_v22 = vmul.f32 %v1635_v4, %v3323_v31 }
 0x777   :  { %1818 = vmatpush1.msra.mxu0 %v4144_v23  ;;  %1887 = vmatpush1.msra.mxu1 %v1703_v12  ;;  %v1664_v26 = vsel %vm375_vm4, %v1652_v28, %v1656_v40  ;;  %v1631_v12 = vsel %vm342_vm5, %v4248_v60, %v4250_v61 }
 0x778   :  { %v1660_v57 = vpop.permute.xlu0 %1659  ;;  %1819 = vmatprep.subr.mxu0 %v4071_v37  ;;  %1888 = vmatprep.subr.mxu1 %v4158_v29  ;;  %v1675_v45 = vmul.f32 %v1664_v26, %v3284_v51 }
 0x779   :  { %v1662_v42 = vsel %vm375_vm4, %v1656_v40, %v1660_v57  ;;  %v1668_v11 = vsel %vm375_vm4, %v1660_v57, %v1648_v63  ;;  %1820 = vmatpush1.msra.mxu0 %v4067_v58  ;;  %1889 = vmatpush1.msra.mxu1 %v4154_v50  ;;  %v1640_v57 = vmul.f32 %v1629_v35, %v3326_v32  ;;  %v5229_v35 = vld [vmem:[#allocation5_spill] sm:$0xff] }
 0x77a   :  { %v1673_v34 = vmul.f32 %v1668_v11, %v3278_v48  ;;  %1821 = vmatprep.subr.mxu0 %v1674_v25  ;;  %1890 = vmatprep.subr.mxu1 %v4080_v38  ;;  %v1616_v15 = vpop.permute.xlu1 %1615  ;;  %v1676_v44 = vmul.f32 %v1662_v42, %v3281_v49  ;;  %v1639_v25 = vmul.f32 %v1631_v12, %v3329_v33  ;;  %v5223_v11 = vld [vmem:[#allocation14_spill] sm:$0xff] }
 0x77b   :  { %1891 = vmatpush1.msra.mxu1 %v4076_v39 }
 0x77c   :  { %v1620_v21 = vpop.permute.xlu0 %1619  ;;  %1822 = vmatpush1.msra.mxu0 %v1673_v34  ;;  %1892 = vmatprep.subr.mxu1 %v1676_v44  ;;  %v1601_v34 = vsel %vm309_vm6, %v5224_v30, %v5223_v11 }
 0x77d   :  { %v1634_v7 = vsel %vm342_vm5, %v1616_v15, %v1620_v21  ;;  %1823 = vmatprep.subr.mxu0 %v1670_v46  ;;  %1893 = vmatpush1.msra.mxu1 %v1675_v45  ;;  %v5225_v45 = vld [vmem:[#allocation16_spill] sm:$0xff]  ;;  %v5226_v46 = vld [vmem:[#allocation15_spill] sm:$0xff] }
 0x77e   :  { %1824 = vmatpush1.msra.mxu0 %v1669_v13  ;;  %1894 = vmatprep.subr.mxu1 %v1672_v16  ;;  %v1624_v59 = vpop.permute.xlu1 %1623  ;;  %v1642_v10 = vmul.f32 %v1634_v7, %v3317_v24  ;;  %v1597_v13 = vsel %vm309_vm6, %v5226_v46, %v5225_v45  ;;  %v1599_v7 = vsel %vm309_vm6, %v5223_v11, %v5226_v46  ;;  %v5234_v11 = vld [vmem:[#allocation19_spill] sm:$0xff] }
 0x77f   :  { %1895 = vmatpush1.msra.mxu1 %v1671_v14  ;;  %v1632_v63 = vsel %vm342_vm5, %v1620_v21, %v1624_v59  ;;  %v1603_v21 = vsel %vm309_vm6, %v5225_v45, %v5224_v30  ;;  %v5235_v46 = vld [vmem:[#allocation7_spill] sm:$0xff] }
 0x780   :  { %v1628_v6 = vpop.permute.xlu0 %1627  ;;  %1825 = vmatprep.subr.mxu0 %v1642_v10  ;;  %v1643_v9 = vmul.f32 %v1632_v63, %v3329_v33  ;;  %v5228_v63 = vld [vmem:[#allocation4_spill] sm:$0xff] }
 0x781   :  { %v1630_v28 = vsel %vm342_vm5, %v1624_v59, %v1628_v6  ;;  %v1636_v27 = vsel %vm342_vm5, %v1628_v6, %v1616_v15  ;;  %v5227_v59 = vld [vmem:[#allocation3_spill] sm:$0xff] }
 0x782   :  { %v1641_v8 = vmul.f32 %v1636_v27, %v3323_v31  ;;  %v1584_v40 = vpop.permute.xlu1 %1583  ;;  %v1644_v47 = vmul.f32 %v1630_v28, %v3326_v32  ;;  %v1606_v28 = vmul.f32 %v1601_v34, %v5222_v5  ;;  %v1605_v27 = vmul.f32 %v1603_v21, %v5227_v59 }
 0x784   :  { %v1588_v26 = vpop.permute.xlu0 %1587  ;;  %1826 = vmatpush1.msra.mxu0 %v1641_v8  ;;  %1896 = vmatprep.subr.mxu1 %v1644_v47  ;;  %v1608_v8 = vmul.f32 %v1597_v13, %v5228_v63 }
 0x785   :  { %v1602_v60 = vsel %vm309_vm6, %v1584_v40, %v1588_v26  ;;  %1827 = vmatprep.subr.mxu0 %v1638_v36  ;;  %1897 = vmatpush1.msra.mxu1 %v1643_v9  ;;  %v5230_v36 = vld [vmem:[#allocation6_spill] sm:$0xff] }
 0x786   :  { %1828 = vmatpush1.msra.mxu0 %v1637_v22  ;;  %1898 = vmatprep.subr.mxu1 %v1640_v57  ;;  %v1592_v61 = vpop.permute.xlu1 %1591  ;;  %v1610_v42 = vmul.f32 %v1602_v60, %v5222_v5  ;;  %v5232_v57 = vld [vmem:[#allocation17_spill] sm:$0xff] }
 0x787   :  { %1899 = vmatpush1.msra.mxu1 %v1639_v25  ;;  %v1600_v15 = vsel %vm309_vm6, %v1588_v26, %v1592_v61  ;;  %v5231_v26 = vld [vmem:[#allocation18_spill] sm:$0xff] }
 0x788   :  { %v1596_v44 = vpop.permute.xlu0 %1595  ;;  %1829 = vmatprep.subr.mxu0 %v1610_v42  ;;  %v1611_v4 = vmul.f32 %v1600_v15, %v5229_v35  ;;  %v1569_v25 = vsel %vm276_vm7, %v5232_v57, %v5231_v26  ;;  %v5233_v42 = vld [vmem:[#allocation20_spill] sm:$0xff]  ;;  %v1567_v45 = vsel %vm276_vm7, %v5231_v26, %v5234_v11  ;;  %v4509_v26 = vld [vmem:[%s5158_s10 + $0x20] ss:$0 sm:$0xff] }
 0x789   :  { %v1598_v16 = vsel %vm309_vm6, %v1592_v61, %v1596_v44  ;;  %v1604_v14 = vsel %vm309_vm6, %v1596_v44, %v1584_v40  ;;  %v1607_v40 = vmul.f32 %v1599_v7, %v5229_v35  ;;  %v1565_v30 = vsel %vm276_vm7, %v5234_v11, %v5233_v42  ;;  %v5237_v7 = vld [vmem:[#allocation9_spill] sm:$0xff] }
 0x78a   :  { %v1609_v10 = vmul.f32 %v1604_v14, %v5227_v59  ;;  %v1552_v56 = vpop.permute.xlu1 %1551  ;;  %v1612_v6 = vmul.f32 %v1598_v16, %v5228_v63  ;;  %v1571_v34 = vsel %vm276_vm7, %v5233_v42, %v5232_v57  ;;  %v5236_v16 = vld [vmem:[#allocation8_spill] sm:$0xff]  ;;  %v5239_v42 = vld [vmem:[#allocation21_spill] sm:$0xff] }
 0x78c   :  { %v1556_v12 = vpop.permute.xlu0 %1555  ;;  %1830 = vmatpush1.msra.mxu0 %v1609_v10  ;;  %1900 = vmatprep.subr.mxu1 %v1612_v6  ;;  %v1574_v6 = vmul.f32 %v1569_v25, %v5230_v36 }
 0x78d   :  { %v1570_v47 = vsel %vm276_vm7, %v1552_v56, %v1556_v12  ;;  %1831 = vmatprep.subr.mxu0 %v1606_v28  ;;  %1901 = vmatpush1.msra.mxu1 %v1611_v4  ;;  %v1573_v4 = vmul.f32 %v1571_v34, %v5235_v46 }
 0x78e   :  { %1832 = vmatpush1.msra.mxu0 %v1605_v27  ;;  %1902 = vmatprep.subr.mxu1 %v1608_v8  ;;  %v1560_v9 = vpop.permute.xlu1 %1559  ;;  %v1578_v22 = vmul.f32 %v1570_v47, %v5230_v36  ;;  %v1575_v27 = vmul.f32 %v1567_v45, %v5237_v7 }
 0x78f   :  { %1903 = vmatpush1.msra.mxu1 %v1607_v40  ;;  %v1568_v60 = vsel %vm276_vm7, %v1556_v12, %v1560_v9 }
 0x790   :  { %v1564_v61 = vpop.permute.xlu0 %1563  ;;  %1833 = vmatprep.subr.mxu0 %v1578_v22  ;;  %v1579_v10 = vmul.f32 %v1568_v60, %v5237_v7 }
 0x791   :  { %v1566_v15 = vsel %vm276_vm7, %v1560_v9, %v1564_v61  ;;  %v1572_v44 = vsel %vm276_vm7, %v1564_v61, %v1552_v56  ;;  %v1576_v56 = vmul.f32 %v1565_v30, %v5236_v16  ;;  %v4503_v9 = vld [vmem:[%s5158_s10 + $0x28] ss:$0 sm:$0xff]  ;;  %v5238_v61 = vld [vmem:[#allocation22_spill] sm:$0xff]  ;;  %v4523_v30 = vld [vmem:[%s5158_s10 + $0x30] ss:$0 sm:$0xff] }
 0x792   :  { %v1577_v13 = vmul.f32 %v1572_v44, %v5235_v46  ;;  %v1776_v21 = vpop.permute.xlu1 %1775  ;;  %v1580_v14 = vmul.f32 %v1566_v15, %v5236_v16  ;;  %v1793_v11 = vsel %vm507_vm8, %v5239_v42, %v5238_v61  ;;  %v4529_v44 = vld [vmem:[%s5158_s10 + $0x38] ss:$0 sm:$0xff] }
 0x794   :  { %v1780_v28 = vpop.permute.xlu0 %1779  ;;  %1834 = vmatpush1.msra.mxu0 %v1577_v13  ;;  %1904 = vmatprep.subr.mxu1 %v1580_v14 }
 0x795   :  { %1835 = vmatprep.subr.mxu0 %v1574_v6  ;;  %1905 = vmatpush1.msra.mxu1 %v1579_v10  ;;  %v1794_v12 = vsel %vm507_vm8, %v1776_v21, %v1780_v28  ;;  %v1797_v10 = vmul.f32 %v4509_v26, %v1793_v11 }
 0x796   :  { %1836 = vmatpush1.msra.mxu0 %v1573_v4  ;;  %1906 = vmatprep.subr.mxu1 %v1576_v56  ;;  %v1784_v8 = vpop.permute.xlu1 %1783  ;;  %v1801_v57 = vmul.f32 %v4509_v26, %v1794_v12  ;;  %v5240_v12 = vmov 0.0  }
 0x797   :  { %v1792_v40 = vsel %vm507_vm8, %v1780_v28, %v1784_v8  ;;  %1907 = vmatpush1.msra.mxu1 %v1575_v27  ;;  %v2866_v27 = vld [vmem:[%s5159_s5] sm:$0xff] }
 0x798   :  { %v1788_v47 = vpop.permute.xlu0 %1787  ;;  %v1802_v22 = vmul.f32 %v4503_v9, %v1792_v40 }
 0x799   :  { %v1790_v25 = vsel %vm507_vm8, %v1784_v8, %v1788_v47  ;;  %v1796_v60 = vsel %vm507_vm8, %v1788_v47, %v1776_v21 }
 0x79a   :  { %v1803_v34 = vmul.f32 %v4523_v30, %v1790_v25  ;;  %1865 = vmatprep.subr.mxu0 %v1802_v22  ;;  %v1782_v15 = vpop.permute.xlu1 %1781  ;;  %v1804_v45 = vmul.f32 %v4529_v44, %v1796_v60 }
 0x79b   :  { %v1791_v13 = vsel %vm507_vm8, %v5238_v61, %v1782_v15  ;;  %1866 = vmatpush2.msra.mxu0 %v1801_v57 }
 0x79c   :  { %v1798_v21 = vmul.f32 %v4503_v9, %v1791_v13  ;;  %v1786_v14 = vpop.permute.xlu0 %1785  ;;  %1936 = vmatprep.subr.mxu1 %v1804_v45 }
 0x79d   :  { %v1789_v6 = vsel %vm507_vm8, %v1782_v15, %v1786_v14  ;;  %v1795_v4 = vsel %vm507_vm8, %v1786_v14, %v5239_v42  ;;  %1937 = vmatpush2.msra.mxu1 %v1803_v34 }
 0x79e   :  { %v1799_v28 = vmul.f32 %v4523_v30, %v1789_v6  ;;  %v1800_v56 = vmul.f32 %v4529_v44, %v1795_v4  ;;  %1867 = vmatprep.subr.mxu0 %v1798_v21 }
 0x79f   :  { %1868 = vmatpush2.msra.mxu0 %v1797_v10 }
 0x7a0   :  { %1870 = vmatmul.mubr.f32.vlgmr.msra.gmra.mxu0 %v2866_v27  ;;  %1938 = vmatprep.subr.mxu1 %v1800_v56 }
 0x7a1   :  { %1939 = vmatpush2.msra.mxu1 %v1799_v28  ;;  %2139 = vmatprep.mubr.f32.mxu0 %v5240_v12 }
 0x7a2   :  { %1941 = vmatmul.mubr.f32.vlgmr.msra.gmra.mxu1 %v2866_v27 }
 0x7a3   :  { %2210 = vmatprep.mubr.f32.mxu1 %v5240_v12 }
 0x860   :  { %v4549_v8 = vpop.f32.mrf.mxu0 }
 0x861   :  { %2059 = vrot.lane.b32.xlu1 %v4549_v8, %s2883_s26 }
 0x862   :  { %v4553_v40 = vpop.f32.mrf.mxu0  ;;  %v4555_v47 = vpop.f32.mrf.mxu1 }
 0x863   :  { %2061 = vrot.lane.b32.xlu0 %v4553_v40, %s2883_s26 }
 0x864   :  { %v4561_v22 = vpop.f32.mrf.mxu1 }
 0x865   :  { %2063 = vrot.lane.b32.xlu1 %v4555_v47, %s2883_s26 }
 0x867   :  { %2065 = vrot.lane.b32.xlu0 %v4561_v22, %s2883_s26 }
 0x869   :  { %2043 = vrot.lane.b32.xlu1 %v4549_v8, %s2876_s20 }
 0x86b   :  { %2045 = vrot.lane.b32.xlu0 %v4553_v40, %s2876_s20 }
 0x86d   :  { %2047 = vrot.lane.b32.xlu1 %v4555_v47, %s2876_s20 }
 0x86f   :  { %2049 = vrot.lane.b32.xlu0 %v4561_v22, %s2876_s20 }
 0x871   :  { %2027 = vrot.lane.b32.xlu1 %v4549_v8, %s2877_s1 }
 0x873   :  { %2029 = vrot.lane.b32.xlu0 %v4553_v40, %s2877_s1 }
 0x875   :  { %2031 = vrot.lane.b32.xlu1 %v4555_v47, %s2877_s1 }
 0x877   :  { %2033 = vrot.lane.b32.xlu0 %v4561_v22, %s2877_s1 }
 0x879   :  { %2011 = vrot.lane.b32.xlu1 %v4549_v8, %s2878_s21 }
 0x87b   :  { %2013 = vrot.lane.b32.xlu0 %v4553_v40, %s2878_s21 }
 0x87d   :  { %2015 = vrot.lane.b32.xlu1 %v4555_v47, %s2878_s21 }
 0x87f   :  { %2017 = vrot.lane.b32.xlu0 %v4561_v22, %s2878_s21 }
 0x881   :  { %1995 = vrot.lane.b32.xlu1 %v4549_v8, %s2879_s22 }
 0x883   :  { %1997 = vrot.lane.b32.xlu0 %v4553_v40, %s2879_s22 }
 0x885   :  { %1999 = vrot.lane.b32.xlu1 %v4555_v47, %s2879_s22 }
 0x887   :  { %2001 = vrot.lane.b32.xlu0 %v4561_v22, %s2879_s22 }
 0x889   :  { %1979 = vrot.lane.b32.xlu1 %v4549_v8, %s2880_s23 }
 0x88b   :  { %1981 = vrot.lane.b32.xlu0 %v4553_v40, %s2880_s23 }
 0x88d   :  { %1983 = vrot.lane.b32.xlu1 %v4555_v47, %s2880_s23 }
 0x88f   :  { %1985 = vrot.lane.b32.xlu0 %v4561_v22, %s2880_s23 }
 0x891   :  { %1963 = vrot.lane.b32.xlu1 %v4549_v8, %s2881_s24 }
 0x893   :  { %1965 = vrot.lane.b32.xlu0 %v4553_v40, %s2881_s24 }
 0x895   :  { %1967 = vrot.lane.b32.xlu1 %v4555_v47, %s2881_s24 }
 0x897   :  { %1969 = vrot.lane.b32.xlu0 %v4561_v22, %s2881_s24 }
 0x899   :  { %1947 = vrot.lane.b32.xlu1 %v4549_v8, %s2882_s25 }
 0x89b   :  { %1949 = vrot.lane.b32.xlu0 %v4553_v40, %s2882_s25 }
 0x89d   :  { %1951 = vrot.lane.b32.xlu1 %v4555_v47, %s2882_s25 }
 0x89f   :  { %1953 = vrot.lane.b32.xlu0 %v4561_v22, %s2882_s25 }
 0x8d3   :  { %v2060_v57 = vpop.permute.xlu1 %2059 }
 0x8d5   :  { %v2062_v25 = vpop.permute.xlu0 %2061 }
 0x8d6   :  { %v2069_v60 = vsel %vm507_vm8, %v2060_v57, %v2062_v25 }
 0x8d7   :  { %v2064_v61 = vpop.permute.xlu1 %2063  ;;  %v2071_v15 = vmul.f32 %v4509_v26, %v2069_v60 }
 0x8d8   :  { %v2068_v42 = vsel %vm507_vm8, %v2062_v25, %v2064_v61 }
 0x8d9   :  { %v2072_v11 = vmul.f32 %v4503_v9, %v2068_v42  ;;  %v2066_v34 = vpop.permute.xlu0 %2065 }
 0x8da   :  { %v2067_v45 = vsel %vm507_vm8, %v2064_v61, %v2066_v34  ;;  %v2070_v13 = vsel %vm507_vm8, %v2066_v34, %v2060_v57 }
 0x8db   :  { %v2073_v21 = vmul.f32 %v4523_v30, %v2067_v45  ;;  %v2074_v14 = vmul.f32 %v4529_v44, %v2070_v13  ;;  %2089 = vmatprep.subr.mxu0 %v2072_v11  ;;  %v2044_v10 = vpop.permute.xlu1 %2043 }
 0x8dc   :  { %2090 = vmatpush1.msra.mxu0 %v2071_v15 }
 0x8dd   :  { %2160 = vmatprep.subr.mxu1 %v2074_v14  ;;  %v2046_v6 = vpop.permute.xlu0 %2045 }
 0x8de   :  { %2161 = vmatpush1.msra.mxu1 %v2073_v21  ;;  %v2053_v4 = vsel %vm474_vm0, %v2044_v10, %v2046_v6 }
 0x8df   :  { %v2048_v28 = vpop.permute.xlu1 %2047  ;;  %v2055_v25 = vmul.f32 %v2053_v4, %v3156_v55 }
 0x8e0   :  { %v2052_v56 = vsel %vm474_vm0, %v2046_v6, %v2048_v28 }
 0x8e1   :  { %v2056_v27 = vmul.f32 %v2052_v56, %v3147_v52  ;;  %v2050_v57 = vpop.permute.xlu0 %2049 }
 0x8e2   :  { %v2051_v60 = vsel %vm474_vm0, %v2048_v28, %v2050_v57  ;;  %v2054_v61 = vsel %vm474_vm0, %v2050_v57, %v2044_v10 }
 0x8e3   :  { %v2057_v42 = vmul.f32 %v2051_v60, %v3153_v54  ;;  %v2058_v11 = vmul.f32 %v2054_v61, %v3150_v53  ;;  %v2028_v34 = vpop.permute.xlu1 %2027  ;;  %2091 = vmatprep.subr.mxu0 %v2056_v27 }
 0x8e4   :  { %2092 = vmatpush1.msra.mxu0 %v2055_v25 }
 0x8e5   :  { %2162 = vmatprep.subr.mxu1 %v2058_v11  ;;  %v2030_v15 = vpop.permute.xlu0 %2029 }
 0x8e6   :  { %2163 = vmatpush1.msra.mxu1 %v2057_v42  ;;  %v2037_v45 = vsel %vm441_vm2, %v2028_v34, %v2030_v15 }
 0x8e7   :  { %v2032_v13 = vpop.permute.xlu1 %2031  ;;  %v2039_v6 = vmul.f32 %v2037_v45, %v3204_v20 }
 0x8e8   :  { %v2036_v21 = vsel %vm441_vm2, %v2030_v15, %v2032_v13 }
 0x8e9   :  { %v2040_v14 = vmul.f32 %v2036_v21, %v3195_v17  ;;  %v2034_v10 = vpop.permute.xlu0 %2033 }
 0x8ea   :  { %v2035_v4 = vsel %vm441_vm2, %v2032_v13, %v2034_v10  ;;  %v2038_v28 = vsel %vm441_vm2, %v2034_v10, %v2028_v34 }
 0x8eb   :  { %v2041_v56 = vmul.f32 %v2035_v4, %v3201_v19  ;;  %v2042_v27 = vmul.f32 %v2038_v28, %v3198_v18  ;;  %v2012_v57 = vpop.permute.xlu1 %2011  ;;  %2093 = vmatprep.subr.mxu0 %v2040_v14 }
 0x8ec   :  { %2094 = vmatpush1.msra.mxu0 %v2039_v6 }
 0x8ed   :  { %2164 = vmatprep.subr.mxu1 %v2042_v27  ;;  %v2014_v25 = vpop.permute.xlu0 %2013 }
 0x8ee   :  { %2165 = vmatpush1.msra.mxu1 %v2041_v56  ;;  %v2021_v60 = vsel %vm408_vm3, %v2012_v57, %v2014_v25 }
 0x8ef   :  { %v2016_v61 = vpop.permute.xlu1 %2015  ;;  %v2023_v15 = vmul.f32 %v2021_v60, %v3242_v3 }
 0x8f0   :  { %v2020_v42 = vsel %vm408_vm3, %v2014_v25, %v2016_v61 }
 0x8f1   :  { %v2024_v11 = vmul.f32 %v2020_v42, %v3233_v0  ;;  %v2018_v34 = vpop.permute.xlu0 %2017 }
 0x8f2   :  { %v2019_v45 = vsel %vm408_vm3, %v2016_v61, %v2018_v34  ;;  %v2022_v13 = vsel %vm408_vm3, %v2018_v34, %v2012_v57 }
 0x8f3   :  { %v2025_v21 = vmul.f32 %v2019_v45, %v3239_v2  ;;  %v2026_v14 = vmul.f32 %v2022_v13, %v3236_v1  ;;  %v1996_v10 = vpop.permute.xlu1 %1995  ;;  %2095 = vmatprep.subr.mxu0 %v2024_v11 }
 0x8f4   :  { %2096 = vmatpush1.msra.mxu0 %v2023_v15 }
 0x8f5   :  { %2097 = vmatprep.subr.mxu0 %v4553_v40  ;;  %2166 = vmatprep.subr.mxu1 %v2026_v14  ;;  %v1998_v6 = vpop.permute.xlu0 %1997 }
 0x8f6   :  { %v2005_v4 = vsel %vm375_vm4, %v1996_v10, %v1998_v6  ;;  %2098 = vmatpush1.msra.mxu0 %v4549_v8  ;;  %2167 = vmatpush1.msra.mxu1 %v2025_v21 }
 0x8f7   :  { %v2008_v28 = vmul.f32 %v2005_v4, %v3271_v41  ;;  %v2000_v56 = vpop.permute.xlu1 %1999  ;;  %2168 = vmatprep.subr.mxu1 %v4561_v22 }
 0x8f8   :  { %2169 = vmatpush1.msra.mxu1 %v4555_v47  ;;  %v2004_v27 = vsel %vm375_vm4, %v1998_v6, %v2000_v56 }
 0x8f9   :  { %2099 = vmatprep.subr.mxu0 %v2008_v28  ;;  %v2002_v57 = vpop.permute.xlu0 %2001  ;;  %v2009_v34 = vmul.f32 %v2004_v27, %v3284_v51 }
 0x8fa   :  { %v2003_v25 = vsel %vm375_vm4, %v2000_v56, %v2002_v57  ;;  %v2006_v60 = vsel %vm375_vm4, %v2002_v57, %v1996_v10 }
 0x8fb   :  { %v2007_v61 = vmul.f32 %v2006_v60, %v3278_v48  ;;  %v2010_v42 = vmul.f32 %v2003_v25, %v3281_v49  ;;  %v1980_v11 = vpop.permute.xlu1 %1979 }
 0x8fd   :  { %2100 = vmatpush1.msra.mxu0 %v2007_v61  ;;  %2170 = vmatprep.subr.mxu1 %v2010_v42  ;;  %v1982_v15 = vpop.permute.xlu0 %1981 }
 0x8fe   :  { %v1989_v45 = vsel %vm342_vm5, %v1980_v11, %v1982_v15  ;;  %2171 = vmatpush1.msra.mxu1 %v2009_v34 }
 0x8ff   :  { %v1992_v13 = vmul.f32 %v1989_v45, %v3317_v24  ;;  %v1984_v21 = vpop.permute.xlu1 %1983 }
 0x900   :  { %v1988_v14 = vsel %vm342_vm5, %v1982_v15, %v1984_v21 }
 0x901   :  { %2101 = vmatprep.subr.mxu0 %v1992_v13  ;;  %v1986_v10 = vpop.permute.xlu0 %1985  ;;  %v1993_v57 = vmul.f32 %v1988_v14, %v3329_v33 }
 0x902   :  { %v1987_v6 = vsel %vm342_vm5, %v1984_v21, %v1986_v10  ;;  %v1990_v4 = vsel %vm342_vm5, %v1986_v10, %v1980_v11 }
 0x903   :  { %v1991_v28 = vmul.f32 %v1990_v4, %v3323_v31  ;;  %v1994_v56 = vmul.f32 %v1987_v6, %v3326_v32  ;;  %v1964_v27 = vpop.permute.xlu1 %1963 }
 0x905   :  { %2102 = vmatpush1.msra.mxu0 %v1991_v28  ;;  %2172 = vmatprep.subr.mxu1 %v1994_v56  ;;  %v1966_v25 = vpop.permute.xlu0 %1965 }
 0x906   :  { %v1973_v60 = vsel %vm309_vm6, %v1964_v27, %v1966_v25  ;;  %2173 = vmatpush1.msra.mxu1 %v1993_v57 }
 0x907   :  { %v1976_v61 = vmul.f32 %v1973_v60, %v5222_v5  ;;  %v1968_v42 = vpop.permute.xlu1 %1967 }
 0x908   :  { %v1972_v11 = vsel %vm309_vm6, %v1966_v25, %v1968_v42 }
 0x909   :  { %2103 = vmatprep.subr.mxu0 %v1976_v61  ;;  %v1970_v34 = vpop.permute.xlu0 %1969  ;;  %v1977_v10 = vmul.f32 %v1972_v11, %v5229_v35 }
 0x90a   :  { %v1971_v15 = vsel %vm309_vm6, %v1968_v42, %v1970_v34  ;;  %v1974_v45 = vsel %vm309_vm6, %v1970_v34, %v1964_v27  ;;  %v2867_v34 = vld [vmem:[%s5160_s4] sm:$0xff] }
 0x90b   :  { %v1975_v13 = vmul.f32 %v1974_v45, %v5227_v59  ;;  %v1978_v21 = vmul.f32 %v1971_v15, %v5228_v63  ;;  %v1948_v14 = vpop.permute.xlu1 %1947  ;;  %v2868_v45 = vld [vmem:[%s5161_s0] sm:$0xff] }
 0x90d   :  { %2104 = vmatpush1.msra.mxu0 %v1975_v13  ;;  %2174 = vmatprep.subr.mxu1 %v1978_v21  ;;  %v1950_v6 = vpop.permute.xlu0 %1949 }
 0x90e   :  { %v1957_v4 = vsel %vm276_vm7, %v1948_v14, %v1950_v6  ;;  %2175 = vmatpush1.msra.mxu1 %v1977_v10  ;;  %v2869_v10 = vld [vmem:[%s5161_s0 + $0x8] sm:$0xff] }
 0x90f   :  { %v1960_v28 = vmul.f32 %v1957_v4, %v5230_v36  ;;  %v1952_v56 = vpop.permute.xlu1 %1951  ;;  %v2870_v4 = vld [vmem:[%s5161_s0 + $0x10] sm:$0xff] }
 0x910   :  { %v1956_v27 = vsel %vm276_vm7, %v1950_v6, %v1952_v56 }
 0x911   :  { %2105 = vmatprep.subr.mxu0 %v1960_v28  ;;  %v1954_v57 = vpop.permute.xlu0 %1953  ;;  %v1961_v11 = vmul.f32 %v1956_v27, %v5237_v7  ;;  %v2871_v27 = vld [vmem:[%s5161_s0 + $0x18] sm:$0xff] }
 0x912   :  { %v1955_v25 = vsel %vm276_vm7, %v1952_v56, %v1954_v57  ;;  %v1958_v60 = vsel %vm276_vm7, %v1954_v57, %v1948_v14 }
 0x913   :  { %v1959_v61 = vmul.f32 %v1958_v60, %v5235_v46  ;;  %v1962_v42 = vmul.f32 %v1955_v25, %v5236_v16 }
 0x915   :  { %2106 = vmatpush1.msra.mxu0 %v1959_v61  ;;  %2176 = vmatprep.subr.mxu1 %v1962_v42 }
 0x916   :  { %2841 = vmatmul.mubr.msk.f32.vlgmr.msra.gmra.mxu0 %vm798_vm9, %v2867_v34  ;;  %2177 = vmatpush1.msra.mxu1 %v1961_v11 }
 0x917   :  { %2842 = vmatmul.mubr.msk.f32.vlgmr.msra.gmra.mxu1 %vm798_vm9, %v2867_v34  ;;  %2413 = vmatprep.mubr.f32.mxu0 %v5240_v12 }
 0x918   :  { %2484 = vmatprep.mubr.f32.mxu1 %v5240_v12 }
 0x9d6   :  { %v2141_v15 = vpop.f32.mrf.mxu0 }
 0x9d7   :  { %v4731_v13 = vsub.f32 %v2141_v15, %v2868_v45  ;;  %v2212_v21 = vpop.f32.mrf.mxu1 }
 0x9d8   :  { %v2143_v14 = vpop.f32.mrf.mxu0  ;;  %v4741_v28 = vsub.f32 %v2212_v21, %v2870_v4 }
 0x9d9   :  { %v4736_v6 = vsub.f32 %v2143_v14, %v2869_v10  ;;  %2333 = vrot.lane.b32.xlu1 %v4731_v13, %s2883_s26  ;;  %v2214_v56 = vpop.f32.mrf.mxu1 }
 0x9da   :  { %v4750_v57 = vsub.f32 %v2214_v56, %v2871_v27 }
 0x9db   :  { %2335 = vrot.lane.b32.xlu0 %v4736_v6, %s2883_s26 }
 0x9dd   :  { %2337 = vrot.lane.b32.xlu1 %v4741_v28, %s2883_s26 }
 0x9df   :  { %2339 = vrot.lane.b32.xlu0 %v4750_v57, %s2883_s26 }
 0x9e1   :  { %2317 = vrot.lane.b32.xlu1 %v4731_v13, %s2876_s20 }
 0x9e3   :  { %2319 = vrot.lane.b32.xlu0 %v4736_v6, %s2876_s20 }
 0x9e5   :  { %2321 = vrot.lane.b32.xlu1 %v4741_v28, %s2876_s20 }
 0x9e7   :  { %2323 = vrot.lane.b32.xlu0 %v4750_v57, %s2876_s20 }
 0x9e9   :  { %2301 = vrot.lane.b32.xlu1 %v4731_v13, %s2877_s1 }
 0x9eb   :  { %2303 = vrot.lane.b32.xlu0 %v4736_v6, %s2877_s1 }
 0x9ed   :  { %2305 = vrot.lane.b32.xlu1 %v4741_v28, %s2877_s1 }
 0x9ef   :  { %2307 = vrot.lane.b32.xlu0 %v4750_v57, %s2877_s1 }
 0x9f1   :  { %2285 = vrot.lane.b32.xlu1 %v4731_v13, %s2878_s21 }
 0x9f3   :  { %2287 = vrot.lane.b32.xlu0 %v4736_v6, %s2878_s21 }
 0x9f5   :  { %2289 = vrot.lane.b32.xlu1 %v4741_v28, %s2878_s21 }
 0x9f7   :  { %2291 = vrot.lane.b32.xlu0 %v4750_v57, %s2878_s21 }
 0x9f9   :  { %2269 = vrot.lane.b32.xlu1 %v4731_v13, %s2879_s22 }
 0x9fb   :  { %2271 = vrot.lane.b32.xlu0 %v4736_v6, %s2879_s22 }
 0x9fd   :  { %2273 = vrot.lane.b32.xlu1 %v4741_v28, %s2879_s22 }
 0x9ff   :  { %2275 = vrot.lane.b32.xlu0 %v4750_v57, %s2879_s22 }
 0xa01   :  { %2253 = vrot.lane.b32.xlu1 %v4731_v13, %s2880_s23 }
 0xa03   :  { %2255 = vrot.lane.b32.xlu0 %v4736_v6, %s2880_s23 }
 0xa05   :  { %2257 = vrot.lane.b32.xlu1 %v4741_v28, %s2880_s23 }
 0xa07   :  { %2259 = vrot.lane.b32.xlu0 %v4750_v57, %s2880_s23 }
 0xa09   :  { %2237 = vrot.lane.b32.xlu1 %v4731_v13, %s2881_s24 }
 0xa0b   :  { %2239 = vrot.lane.b32.xlu0 %v4736_v6, %s2881_s24 }
 0xa0d   :  { %2241 = vrot.lane.b32.xlu1 %v4741_v28, %s2881_s24 }
 0xa0f   :  { %2243 = vrot.lane.b32.xlu0 %v4750_v57, %s2881_s24 }
 0xa11   :  { %2221 = vrot.lane.b32.xlu1 %v4731_v13, %s2882_s25 }
 0xa13   :  { %2223 = vrot.lane.b32.xlu0 %v4736_v6, %s2882_s25 }
 0xa15   :  { %2225 = vrot.lane.b32.xlu1 %v4741_v28, %s2882_s25 }
 0xa17   :  { %2227 = vrot.lane.b32.xlu0 %v4750_v57, %s2882_s25 }
 0xa4b   :  { %v2334_v25 = vpop.permute.xlu1 %2333 }
 0xa4d   :  { %v2336_v60 = vpop.permute.xlu0 %2335 }
 0xa4e   :  { %v2343_v61 = vsel %vm507_vm8, %v2334_v25, %v2336_v60 }
 0xa4f   :  { %v2338_v42 = vpop.permute.xlu1 %2337  ;;  %v2345_v45 = vmul.f32 %v4509_v26, %v2343_v61 }
 0xa50   :  { %v2342_v11 = vsel %vm507_vm8, %v2336_v60, %v2338_v42 }
 0xa51   :  { %v2346_v34 = vmul.f32 %v4503_v9, %v2342_v11  ;;  %v2340_v15 = vpop.permute.xlu0 %2339 }
 0xa52   :  { %v2341_v21 = vsel %vm507_vm8, %v2338_v42, %v2340_v15  ;;  %v2344_v14 = vsel %vm507_vm8, %v2340_v15, %v2334_v25 }
 0xa53   :  { %v2347_v10 = vmul.f32 %v4523_v30, %v2341_v21  ;;  %v2348_v4 = vmul.f32 %v4529_v44, %v2344_v14  ;;  %2363 = vmatprep.subr.mxu0 %v2346_v34  ;;  %v2318_v56 = vpop.permute.xlu1 %2317 }
 0xa54   :  { %2364 = vmatpush1.msra.mxu0 %v2345_v45 }
 0xa55   :  { %2434 = vmatprep.subr.mxu1 %v2348_v4  ;;  %v2320_v27 = vpop.permute.xlu0 %2319 }
 0xa56   :  { %2435 = vmatpush1.msra.mxu1 %v2347_v10  ;;  %v2327_v60 = vsel %vm474_vm0, %v2318_v56, %v2320_v27 }
 0xa57   :  { %v2322_v61 = vpop.permute.xlu1 %2321  ;;  %v2329_v15 = vmul.f32 %v2327_v60, %v3156_v55 }
 0xa58   :  { %v2326_v42 = vsel %vm474_vm0, %v2320_v27, %v2322_v61 }
 0xa59   :  { %v2330_v11 = vmul.f32 %v2326_v42, %v3147_v52  ;;  %v2324_v25 = vpop.permute.xlu0 %2323 }
 0xa5a   :  { %v2325_v34 = vsel %vm474_vm0, %v2322_v61, %v2324_v25  ;;  %v2328_v45 = vsel %vm474_vm0, %v2324_v25, %v2318_v56 }
 0xa5b   :  { %v2331_v21 = vmul.f32 %v2325_v34, %v3153_v54  ;;  %v2332_v14 = vmul.f32 %v2328_v45, %v3150_v53  ;;  %v2302_v10 = vpop.permute.xlu1 %2301  ;;  %2365 = vmatprep.subr.mxu0 %v2330_v11 }
 0xa5c   :  { %2366 = vmatpush1.msra.mxu0 %v2329_v15 }
 0xa5d   :  { %2436 = vmatprep.subr.mxu1 %v2332_v14  ;;  %v2304_v4 = vpop.permute.xlu0 %2303 }
 0xa5e   :  { %2437 = vmatpush1.msra.mxu1 %v2331_v21  ;;  %v2311_v27 = vsel %vm441_vm2, %v2302_v10, %v2304_v4 }
 0xa5f   :  { %v2306_v60 = vpop.permute.xlu1 %2305  ;;  %v2313_v25 = vmul.f32 %v2311_v27, %v3204_v20 }
 0xa60   :  { %v2310_v61 = vsel %vm441_vm2, %v2304_v4, %v2306_v60 }
 0xa61   :  { %v2314_v42 = vmul.f32 %v2310_v61, %v3195_v17  ;;  %v2308_v56 = vpop.permute.xlu0 %2307 }
 0xa62   :  { %v2309_v34 = vsel %vm441_vm2, %v2306_v60, %v2308_v56  ;;  %v2312_v11 = vsel %vm441_vm2, %v2308_v56, %v2302_v10 }
 0xa63   :  { %v2315_v15 = vmul.f32 %v2309_v34, %v3201_v19  ;;  %v2316_v45 = vmul.f32 %v2312_v11, %v3198_v18  ;;  %v2286_v21 = vpop.permute.xlu1 %2285  ;;  %2367 = vmatprep.subr.mxu0 %v2314_v42 }
 0xa64   :  { %2368 = vmatpush1.msra.mxu0 %v2313_v25 }
 0xa65   :  { %2438 = vmatprep.subr.mxu1 %v2316_v45  ;;  %v2288_v14 = vpop.permute.xlu0 %2287 }
 0xa66   :  { %2439 = vmatpush1.msra.mxu1 %v2315_v15  ;;  %v2295_v4 = vsel %vm408_vm3, %v2286_v21, %v2288_v14 }
 0xa67   :  { %v2290_v27 = vpop.permute.xlu1 %2289  ;;  %v2297_v56 = vmul.f32 %v2295_v4, %v3242_v3 }
 0xa68   :  { %v2294_v60 = vsel %vm408_vm3, %v2288_v14, %v2290_v27 }
 0xa69   :  { %v2298_v61 = vmul.f32 %v2294_v60, %v3233_v0  ;;  %v2292_v10 = vpop.permute.xlu0 %2291 }
 0xa6a   :  { %v2293_v34 = vsel %vm408_vm3, %v2290_v27, %v2292_v10  ;;  %v2296_v42 = vsel %vm408_vm3, %v2292_v10, %v2286_v21 }
 0xa6b   :  { %v2299_v25 = vmul.f32 %v2293_v34, %v3239_v2  ;;  %v2300_v11 = vmul.f32 %v2296_v42, %v3236_v1  ;;  %v2270_v15 = vpop.permute.xlu1 %2269  ;;  %2369 = vmatprep.subr.mxu0 %v2298_v61 }
 0xa6c   :  { %2370 = vmatpush1.msra.mxu0 %v2297_v56 }
 0xa6d   :  { %2371 = vmatprep.subr.mxu0 %v4736_v6  ;;  %2440 = vmatprep.subr.mxu1 %v2300_v11  ;;  %v2272_v45 = vpop.permute.xlu0 %2271 }
 0xa6e   :  { %v2279_v14 = vsel %vm375_vm4, %v2270_v15, %v2272_v45  ;;  %2372 = vmatpush1.msra.mxu0 %v4731_v13  ;;  %2441 = vmatpush1.msra.mxu1 %v2299_v25 }
 0xa6f   :  { %v2282_v4 = vmul.f32 %v2279_v14, %v3271_v41  ;;  %v2274_v21 = vpop.permute.xlu1 %2273  ;;  %2442 = vmatprep.subr.mxu1 %v4750_v57 }
 0xa70   :  { %2443 = vmatpush1.msra.mxu1 %v4741_v28  ;;  %v2278_v27 = vsel %vm375_vm4, %v2272_v45, %v2274_v21 }
 0xa71   :  { %2373 = vmatprep.subr.mxu0 %v2282_v4  ;;  %v2276_v6 = vpop.permute.xlu0 %2275  ;;  %v2283_v57 = vmul.f32 %v2278_v27, %v3284_v51 }
 0xa72   :  { %v2277_v60 = vsel %vm375_vm4, %v2274_v21, %v2276_v6  ;;  %v2280_v61 = vsel %vm375_vm4, %v2276_v6, %v2270_v15 }
 0xa73   :  { %v2281_v13 = vmul.f32 %v2280_v61, %v3278_v48  ;;  %v2284_v10 = vmul.f32 %v2277_v60, %v3281_v49  ;;  %v2254_v56 = vpop.permute.xlu1 %2253 }
 0xa75   :  { %2374 = vmatpush1.msra.mxu0 %v2281_v13  ;;  %2444 = vmatprep.subr.mxu1 %v2284_v10  ;;  %v2256_v28 = vpop.permute.xlu0 %2255 }
 0xa76   :  { %v2263_v34 = vsel %vm342_vm5, %v2254_v56, %v2256_v28  ;;  %2445 = vmatpush1.msra.mxu1 %v2283_v57 }
 0xa77   :  { %v2266_v42 = vmul.f32 %v2263_v34, %v3317_v24  ;;  %v2258_v25 = vpop.permute.xlu1 %2257 }
 0xa78   :  { %v2262_v11 = vsel %vm342_vm5, %v2256_v28, %v2258_v25 }
 0xa79   :  { %2375 = vmatprep.subr.mxu0 %v2266_v42  ;;  %v2260_v15 = vpop.permute.xlu0 %2259  ;;  %v2267_v6 = vmul.f32 %v2262_v11, %v3329_v33 }
 0xa7a   :  { %v2261_v45 = vsel %vm342_vm5, %v2258_v25, %v2260_v15  ;;  %v2264_v14 = vsel %vm342_vm5, %v2260_v15, %v2254_v56 }
 0xa7b   :  { %v2265_v4 = vmul.f32 %v2264_v14, %v3323_v31  ;;  %v2268_v21 = vmul.f32 %v2261_v45, %v3326_v32  ;;  %v2238_v27 = vpop.permute.xlu1 %2237 }
 0xa7d   :  { %2376 = vmatpush1.msra.mxu0 %v2265_v4  ;;  %2446 = vmatprep.subr.mxu1 %v2268_v21  ;;  %v2240_v60 = vpop.permute.xlu0 %2239 }
 0xa7e   :  { %v2247_v61 = vsel %vm309_vm6, %v2238_v27, %v2240_v60  ;;  %2447 = vmatpush1.msra.mxu1 %v2267_v6 }
 0xa7f   :  { %v2250_v13 = vmul.f32 %v2247_v61, %v5222_v5  ;;  %v2242_v10 = vpop.permute.xlu1 %2241 }
 0xa80   :  { %v2246_v56 = vsel %vm309_vm6, %v2240_v60, %v2242_v10 }
 0xa81   :  { %2377 = vmatprep.subr.mxu0 %v2250_v13  ;;  %v2244_v57 = vpop.permute.xlu0 %2243  ;;  %v2251_v15 = vmul.f32 %v2246_v56, %v5229_v35 }
 0xa82   :  { %v2245_v28 = vsel %vm309_vm6, %v2242_v10, %v2244_v57  ;;  %v2248_v34 = vsel %vm309_vm6, %v2244_v57, %v2238_v27  ;;  %v2872_v57 = vld [vmem:[%s5163_s6] sm:$0xff] }
 0xa83   :  { %v2249_v42 = vmul.f32 %v2248_v34, %v5227_v59  ;;  %v2252_v25 = vmul.f32 %v2245_v28, %v5228_v63  ;;  %v2222_v11 = vpop.permute.xlu1 %2221 }
 0xa85   :  { %2378 = vmatpush1.msra.mxu0 %v2249_v42  ;;  %2448 = vmatprep.subr.mxu1 %v2252_v25  ;;  %v2224_v45 = vpop.permute.xlu0 %2223 }
 0xa86   :  { %v2231_v14 = vsel %vm276_vm7, %v2222_v11, %v2224_v45  ;;  %2449 = vmatpush1.msra.mxu1 %v2251_v15  ;;  %v5241_v15 = vld [vmem:[#allocation10_spill] sm:$0xff] }
 0xa87   :  { %v2234_v4 = vmul.f32 %v2231_v14, %v5230_v36  ;;  %v2226_v21 = vpop.permute.xlu1 %2225 }
 0xa88   :  { %v2230_v27 = vsel %vm276_vm7, %v2224_v45, %v2226_v21 }
 0xa89   :  { %2379 = vmatprep.subr.mxu0 %v2234_v4  ;;  %v2228_v6 = vpop.permute.xlu0 %2227  ;;  %v2235_v56 = vmul.f32 %v2230_v27, %v5237_v7 }
 0xa8a   :  { %v2229_v60 = vsel %vm276_vm7, %v2226_v21, %v2228_v6  ;;  %v2232_v61 = vsel %vm276_vm7, %v2228_v6, %v2222_v11 }
 0xa8b   :  { %v2233_v13 = vmul.f32 %v2232_v61, %v5235_v46  ;;  %v2236_v10 = vmul.f32 %v2229_v60, %v5236_v16 }
 0xa8d   :  { %2380 = vmatpush1.msra.mxu0 %v2233_v13  ;;  %2450 = vmatprep.subr.mxu1 %v2236_v10 }
 0xa8e   :  { %2843 = vmatmul.mubr.msk.f32.vlgmr.msra.gmra.mxu0 %vm798_vm9, %v2872_v57  ;;  %2451 = vmatpush1.msra.mxu1 %v2235_v56 }
 0xa8f   :  { %2844 = vmatmul.mubr.msk.f32.vlgmr.msra.gmra.mxu1 %vm798_vm9, %v2872_v57  ;;  %2699 = vmatprep.mubr.f32.mxu0 %v5240_v12 }
 0xa90   :  { %2776 = vmatprep.mubr.f32.mxu1 %v5240_v12 }
 0xb4e   :  { %v2415_v28 = vpop.f32.mrf.mxu0 }
 0xb4f   :  { %v2491_v34 = vsub.f32 %v4549_v8, %v2415_v28  ;;  %v2486_v42 = vpop.f32.mrf.mxu1 }
 0xb50   :  { %v2493_v25 = vsub.f32 %v4555_v47, %v2486_v42  ;;  %v2417_v11 = vpop.f32.mrf.mxu0 }
 0xb51   :  { %v2495_v45 = vadd.f32 %v2491_v34, %v5241_v15  ;;  %v2492_v14 = vsub.f32 %v4553_v40, %v2417_v11  ;;  %v2488_v4 = vpop.f32.mrf.mxu1 }
 0xb52   :  { %v2497_v21 = vadd.f32 %v2493_v25, %v5241_v15  ;;  %v2494_v27 = vsub.f32 %v4561_v22, %v2488_v4 }
 0xb53   :  { %v2499_v6 = vmax.f32 %v2495_v45, 0.0  ;;  %v2496_v60 = vadd.f32 %v2492_v14, %v5241_v15 }
 0xb54   :  { %v2498_v61 = vadd.f32 %v2494_v27, %v5241_v15  ;;  %v2501_v10 = vmax.f32 %v2497_v21, 0.0 }
 0xb55   :  { %v4928_v13 = vsub.f32 %v4549_v8, %v2499_v6  ;;  %v2500_v56 = vmax.f32 %v2496_v60, 0.0 }
 0xb56   :  { %v2502_v28 = vmax.f32 %v2498_v61, 0.0  ;;  %v4936_v34 = vsub.f32 %v4555_v47, %v2501_v10 }
 0xb57   :  { %v4931_v57 = vsub.f32 %v4553_v40, %v2500_v56  ;;  %2619 = vrot.lane.b32.xlu1 %v4928_v13, %s2883_s26 }
 0xb58   :  { %v4941_v42 = vsub.f32 %v4561_v22, %v2502_v28 }
 0xb59   :  { %2621 = vrot.lane.b32.xlu0 %v4931_v57, %s2883_s26 }
 0xb5b   :  { %2623 = vrot.lane.b32.xlu1 %v4936_v34, %s2883_s26 }
 0xb5d   :  { %2625 = vrot.lane.b32.xlu0 %v4941_v42, %s2883_s26 }
 0xb5f   :  { %2603 = vrot.lane.b32.xlu1 %v4928_v13, %s2876_s20 }
 0xb61   :  { %2605 = vrot.lane.b32.xlu0 %v4931_v57, %s2876_s20 }
 0xb63   :  { %2607 = vrot.lane.b32.xlu1 %v4936_v34, %s2876_s20 }
 0xb65   :  { %2609 = vrot.lane.b32.xlu0 %v4941_v42, %s2876_s20 }
 0xb67   :  { %2587 = vrot.lane.b32.xlu1 %v4928_v13, %s2877_s1 }
 0xb69   :  { %2589 = vrot.lane.b32.xlu0 %v4931_v57, %s2877_s1 }
 0xb6b   :  { %2591 = vrot.lane.b32.xlu1 %v4936_v34, %s2877_s1 }
 0xb6d   :  { %2593 = vrot.lane.b32.xlu0 %v4941_v42, %s2877_s1 }
 0xb6f   :  { %2571 = vrot.lane.b32.xlu1 %v4928_v13, %s2878_s21 }
 0xb71   :  { %2573 = vrot.lane.b32.xlu0 %v4931_v57, %s2878_s21 }
 0xb73   :  { %2575 = vrot.lane.b32.xlu1 %v4936_v34, %s2878_s21 }
 0xb75   :  { %2577 = vrot.lane.b32.xlu0 %v4941_v42, %s2878_s21 }
 0xb77   :  { %2555 = vrot.lane.b32.xlu1 %v4928_v13, %s2879_s22 }
 0xb79   :  { %2557 = vrot.lane.b32.xlu0 %v4931_v57, %s2879_s22 }
 0xb7b   :  { %2559 = vrot.lane.b32.xlu1 %v4936_v34, %s2879_s22 }
 0xb7d   :  { %2561 = vrot.lane.b32.xlu0 %v4941_v42, %s2879_s22 }
 0xb7f   :  { %2539 = vrot.lane.b32.xlu1 %v4928_v13, %s2880_s23 }
 0xb81   :  { %2541 = vrot.lane.b32.xlu0 %v4931_v57, %s2880_s23 }
 0xb83   :  { %2543 = vrot.lane.b32.xlu1 %v4936_v34, %s2880_s23 }
 0xb85   :  { %2545 = vrot.lane.b32.xlu0 %v4941_v42, %s2880_s23 }
 0xb87   :  { %2523 = vrot.lane.b32.xlu1 %v4928_v13, %s2881_s24 }
 0xb89   :  { %2525 = vrot.lane.b32.xlu0 %v4931_v57, %s2881_s24 }
 0xb8b   :  { %2527 = vrot.lane.b32.xlu1 %v4936_v34, %s2881_s24 }
 0xb8d   :  { %2529 = vrot.lane.b32.xlu0 %v4941_v42, %s2881_s24 }
 0xb8f   :  { %2507 = vrot.lane.b32.xlu1 %v4928_v13, %s2882_s25 }
 0xb91   :  { %2509 = vrot.lane.b32.xlu0 %v4931_v57, %s2882_s25 }
 0xb93   :  { %2511 = vrot.lane.b32.xlu1 %v4936_v34, %s2882_s25 }
 0xb95   :  { %2513 = vrot.lane.b32.xlu0 %v4941_v42, %s2882_s25 }
 0xbc9   :  { %v2620_v8 = vpop.permute.xlu1 %2619 }
 0xbcb   :  { %v2622_v40 = vpop.permute.xlu0 %2621 }
 0xbcc   :  { %v2629_v47 = vsel %vm507_vm8, %v2620_v8, %v2622_v40 }
 0xbcd   :  { %v2624_v22 = vpop.permute.xlu1 %2623  ;;  %v2631_v45 = vmul.f32 %v4509_v26, %v2629_v47 }
 0xbce   :  { %v2628_v25 = vsel %vm507_vm8, %v2622_v40, %v2624_v22 }
 0xbcf   :  { %v2632_v11 = vmul.f32 %v4503_v9, %v2628_v25  ;;  %v2626_v15 = vpop.permute.xlu0 %2625 }
 0xbd0   :  { %v2627_v14 = vsel %vm507_vm8, %v2624_v22, %v2626_v15  ;;  %v2630_v4 = vsel %vm507_vm8, %v2626_v15, %v2620_v8 }
 0xbd1   :  { %v2633_v21 = vmul.f32 %v4523_v30, %v2627_v14  ;;  %v2634_v27 = vmul.f32 %v4529_v44, %v2630_v4  ;;  %2649 = vmatprep.subr.mxu0 %v2632_v11  ;;  %v2604_v6 = vpop.permute.xlu1 %2603 }
 0xbd2   :  { %2650 = vmatpush1.msra.mxu0 %v2631_v45 }
 0xbd3   :  { %2726 = vmatprep.subr.mxu1 %v2634_v27  ;;  %v2606_v60 = vpop.permute.xlu0 %2605 }
 0xbd4   :  { %2727 = vmatpush1.msra.mxu1 %v2633_v21  ;;  %v2613_v9 = vsel %vm474_vm0, %v2604_v6, %v2606_v60 }
 0xbd5   :  { %v2608_v26 = vpop.permute.xlu1 %2607  ;;  %v2615_v30 = vmul.f32 %v2613_v9, %v3156_v55 }
 0xbd6   :  { %v2612_v61 = vsel %vm474_vm0, %v2606_v60, %v2608_v26 }
 0xbd7   :  { %v2616_v10 = vmul.f32 %v2612_v61, %v3147_v52  ;;  %v2610_v56 = vpop.permute.xlu0 %2609 }
 0xbd8   :  { %v2611_v44 = vsel %vm474_vm0, %v2608_v26, %v2610_v56  ;;  %v2614_v28 = vsel %vm474_vm0, %v2610_v56, %v2604_v6 }
 0xbd9   :  { %v2617_v8 = vmul.f32 %v2611_v44, %v3153_v54  ;;  %v2618_v40 = vmul.f32 %v2614_v28, %v3150_v53  ;;  %v2588_v47 = vpop.permute.xlu1 %2587  ;;  %2651 = vmatprep.subr.mxu0 %v2616_v10 }
 0xbda   :  { %2652 = vmatpush1.msra.mxu0 %v2615_v30 }
 0xbdb   :  { %2728 = vmatprep.subr.mxu1 %v2618_v40  ;;  %v2590_v22 = vpop.permute.xlu0 %2589 }
 0xbdc   :  { %2729 = vmatpush1.msra.mxu1 %v2617_v8  ;;  %v2597_v52 = vsel %vm441_vm2, %v2588_v47, %v2590_v22 }
 0xbdd   :  { %v2592_v55 = vpop.permute.xlu1 %2591  ;;  %v2599_v54 = vmul.f32 %v2597_v52, %v3204_v20 }
 0xbde   :  { %v2596_v25 = vsel %vm441_vm2, %v2590_v22, %v2592_v55 }
 0xbdf   :  { %v2600_v11 = vmul.f32 %v2596_v25, %v3195_v17  ;;  %v2594_v15 = vpop.permute.xlu0 %2593 }
 0xbe0   :  { %v2595_v53 = vsel %vm441_vm2, %v2592_v55, %v2594_v15  ;;  %v2598_v45 = vsel %vm441_vm2, %v2594_v15, %v2588_v47 }
 0xbe1   :  { %v2601_v14 = vmul.f32 %v2595_v53, %v3201_v19  ;;  %v2602_v4 = vmul.f32 %v2598_v45, %v3198_v18  ;;  %v2572_v21 = vpop.permute.xlu1 %2571  ;;  %2653 = vmatprep.subr.mxu0 %v2600_v11 }
 0xbe2   :  { %2654 = vmatpush1.msra.mxu0 %v2599_v54 }
 0xbe3   :  { %2730 = vmatprep.subr.mxu1 %v2602_v4  ;;  %v2574_v27 = vpop.permute.xlu0 %2573 }
 0xbe4   :  { %2731 = vmatpush1.msra.mxu1 %v2601_v14  ;;  %v2581_v17 = vsel %vm408_vm3, %v2572_v21, %v2574_v27 }
 0xbe5   :  { %v2576_v20 = vpop.permute.xlu1 %2575  ;;  %v2583_v19 = vmul.f32 %v2581_v17, %v3242_v3 }
 0xbe6   :  { %v2580_v6 = vsel %vm408_vm3, %v2574_v27, %v2576_v20 }
 0xbe7   :  { %v2584_v60 = vmul.f32 %v2580_v6, %v3233_v0  ;;  %v2578_v9 = vpop.permute.xlu0 %2577 }
 0xbe8   :  { %v2579_v18 = vsel %vm408_vm3, %v2576_v20, %v2578_v9  ;;  %v2582_v26 = vsel %vm408_vm3, %v2578_v9, %v2572_v21 }
 0xbe9   :  { %v2585_v61 = vmul.f32 %v2579_v18, %v3239_v2  ;;  %v2586_v10 = vmul.f32 %v2582_v26, %v3236_v1  ;;  %v2556_v56 = vpop.permute.xlu1 %2555  ;;  %2655 = vmatprep.subr.mxu0 %v2584_v60 }
 0xbea   :  { %2656 = vmatpush1.msra.mxu0 %v2583_v19 }
 0xbeb   :  { %2657 = vmatprep.subr.mxu0 %v4931_v57  ;;  %2732 = vmatprep.subr.mxu1 %v2586_v10  ;;  %v2558_v0 = vpop.permute.xlu0 %2557 }
 0xbec   :  { %v2565_v3 = vsel %vm375_vm4, %v2556_v56, %v2558_v0  ;;  %2658 = vmatpush1.msra.mxu0 %v4928_v13  ;;  %2733 = vmatpush1.msra.mxu1 %v2585_v61 }
 0xbed   :  { %v2568_v30 = vmul.f32 %v2565_v3, %v3271_v41  ;;  %v2560_v44 = vpop.permute.xlu1 %2559  ;;  %2734 = vmatprep.subr.mxu1 %v4941_v42 }
 0xbee   :  { %2735 = vmatpush1.msra.mxu1 %v4936_v34  ;;  %v2564_v1 = vsel %vm375_vm4, %v2558_v0, %v2560_v44 }
 0xbef   :  { %2659 = vmatprep.subr.mxu0 %v2568_v30  ;;  %v2562_v2 = vpop.permute.xlu0 %2561  ;;  %v2569_v42 = vmul.f32 %v2564_v1, %v3284_v51 }
 0xbf0   :  { %v2563_v57 = vsel %vm375_vm4, %v2560_v44, %v2562_v2  ;;  %v2566_v28 = vsel %vm375_vm4, %v2562_v2, %v2556_v56  ;;  %v5242_v56 = vld [vmem:[#allocation11_spill] sm:$0xff] }
 0xbf1   :  { %v2567_v13 = vmul.f32 %v2566_v28, %v3278_v48  ;;  %v2570_v41 = vmul.f32 %v2563_v57, %v3281_v49  ;;  %v2540_v8 = vpop.permute.xlu1 %2539 }
 0xbf3   :  { %2660 = vmatpush1.msra.mxu0 %v2567_v13  ;;  %2736 = vmatprep.subr.mxu1 %v2570_v41  ;;  %v2542_v34 = vpop.permute.xlu0 %2541 }
 0xbf4   :  { %v2549_v40 = vsel %vm342_vm5, %v2540_v8, %v2542_v34  ;;  %2737 = vmatpush1.msra.mxu1 %v2569_v42  ;;  %v5243_v42 = vld [vmem:[#allocation12_spill] sm:$0xff] }
 0xbf5   :  { %v2552_v47 = vmul.f32 %v2549_v40, %v3317_v24  ;;  %v2544_v22 = vpop.permute.xlu1 %2543 }
 0xbf6   :  { %v2548_v52 = vsel %vm342_vm5, %v2542_v34, %v2544_v22 }
 0xbf7   :  { %2661 = vmatprep.subr.mxu0 %v2552_v47  ;;  %v2546_v48 = vpop.permute.xlu0 %2545  ;;  %v2553_v15 = vmul.f32 %v2548_v52, %v3329_v33 }
 0xbf8   :  { %v2547_v49 = vsel %vm342_vm5, %v2544_v22, %v2546_v48  ;;  %v2550_v51 = vsel %vm342_vm5, %v2546_v48, %v2540_v8 }
 0xbf9   :  { %v2551_v55 = vmul.f32 %v2550_v51, %v3323_v31  ;;  %v2554_v25 = vmul.f32 %v2547_v49, %v3326_v32  ;;  %v2524_v11 = vpop.permute.xlu1 %2523 }
 0xbfb   :  { %2662 = vmatpush1.msra.mxu0 %v2551_v55  ;;  %2738 = vmatprep.subr.mxu1 %v2554_v25  ;;  %v2526_v24 = vpop.permute.xlu0 %2525 }
 0xbfc   :  { %v2533_v54 = vsel %vm309_vm6, %v2524_v11, %v2526_v24  ;;  %2739 = vmatpush1.msra.mxu1 %v2553_v15 }
 0xbfd   :  { %v2536_v53 = vmul.f32 %v2533_v54, %v5222_v5  ;;  %v2528_v45 = vpop.permute.xlu1 %2527 }
 0xbfe   :  { %v2532_v14 = vsel %vm309_vm6, %v2526_v24, %v2528_v45 }
 0xbff   :  { %2663 = vmatprep.subr.mxu0 %v2536_v53  ;;  %v2530_v31 = vpop.permute.xlu0 %2529  ;;  %v2537_v17 = vmul.f32 %v2532_v14, %v5229_v35 }
 0xc00   :  { %v2531_v32 = vsel %vm309_vm6, %v2528_v45, %v2530_v31  ;;  %v2534_v33 = vsel %vm309_vm6, %v2530_v31, %v2524_v11 }
 0xc01   :  { %v2535_v4 = vmul.f32 %v2534_v33, %v5227_v59  ;;  %v2538_v21 = vmul.f32 %v2531_v32, %v5228_v63  ;;  %v2508_v27 = vpop.permute.xlu1 %2507 }
 0xc03   :  { %2664 = vmatpush1.msra.mxu0 %v2535_v4  ;;  %2740 = vmatprep.subr.mxu1 %v2538_v21  ;;  %v2510_v5 = vpop.permute.xlu0 %2509 }
 0xc04   :  { %v2517_v20 = vsel %vm276_vm7, %v2508_v27, %v2510_v5  ;;  %2741 = vmatpush1.msra.mxu1 %v2537_v17 }
 0xc05   :  { %v2520_v6 = vmul.f32 %v2517_v20, %v5230_v36  ;;  %v2512_v60 = vpop.permute.xlu1 %2511  ;;  %v2873_v36 = vld [vmem:[%s5165_s7] sm:$0xff] }
 0xc06   :  { %v2516_v9 = vsel %vm276_vm7, %v2510_v5, %v2512_v60 }
 0xc07   :  { %2665 = vmatprep.subr.mxu0 %v2520_v6  ;;  %v2514_v59 = vpop.permute.xlu0 %2513  ;;  %v2521_v26 = vmul.f32 %v2516_v9, %v5237_v7 }
 0xc08   :  { %v2515_v63 = vsel %vm276_vm7, %v2512_v60, %v2514_v59  ;;  %v2518_v35 = vsel %vm276_vm7, %v2514_v59, %v2508_v27 }
 0xc09   :  { %v2519_v19 = vmul.f32 %v2518_v35, %v5235_v46  ;;  %v2522_v18 = vmul.f32 %v2515_v63, %v5236_v16 }
 0xc0b   :  { %2666 = vmatpush1.msra.mxu0 %v2519_v19  ;;  %2742 = vmatprep.subr.mxu1 %v2522_v18 }
 0xc0c   :  { %2845 = vmatmul.mubr.msk.f32.vlgmr.msra.gmra.mxu0 %vm798_vm9, %v2873_v36  ;;  %2743 = vmatpush1.msra.mxu1 %v2521_v26 }
 0xc0d   :  { %2847 = vmatmul.mubr.msk.f32.vlgmr.msra.gmra.mxu1 %vm798_vm9, %v2873_v36  ;;  %2705 = vmatprep.mubr.f32.mxu0 %v5240_v12 }
 0xc0e   :  { %2782 = vmatprep.mubr.f32.mxu1 %v5240_v12 }
 0xc10   :  { %2846 = vmatmul.mubr.msk.f32.gmra.mxu0 %vm798_vm9, %v2874_v43 }
 0xc11   :  { %2848 = vmatmul.mubr.msk.f32.gmra.mxu1 %vm798_vm9, %v2874_v43 }
 0xccc   :  { %v2701_v46 = vpop.f32.mrf.mxu0 }
 0xccd   :  { %v2789_v16 = vsub.f32 %v4067_v58, %v2701_v46  ;;  %v2778_v7 = vpop.f32.mrf.mxu1 }
 0xcce   :  { %v2791_v61 = vsub.f32 %v4076_v39, %v2778_v7  ;;  %v2703_v10 = vpop.f32.mrf.mxu0 }
 0xccf   :  { %v2797_v0 = vadd.f32 %v2789_v16, %v5242_v56  ;;  %v2790_v3 = vsub.f32 %v4071_v37, %v2703_v10  ;;  %v2780_v12 = vpop.f32.mrf.mxu1 }
 0xcd0   :  { %v2799_v30 = vadd.f32 %v2791_v61, %v5242_v56  ;;  %v2792_v44 = vsub.f32 %v4080_v38, %v2780_v12  ;;  %v2707_v1 = vpop.f32.mrf.mxu0 }
 0xcd1   :  { %v2805_v2 = vmax.f32 %v2797_v0, 0.0  ;;  %v2798_v57 = vadd.f32 %v2790_v3, %v5242_v56  ;;  %v2793_v28 = vsub.f32 %v4144_v23, %v2707_v1  ;;  %v2784_v58 = vpop.f32.mrf.mxu1 }
 0xcd2   :  { %v2807_v13 = vmax.f32 %v2799_v30, 0.0  ;;  %v2800_v39 = vadd.f32 %v2792_v44, %v5242_v56  ;;  %v2795_v41 = vsub.f32 %v4154_v50, %v2784_v58  ;;  %v2709_v8 = vpop.f32.mrf.mxu0 }
 0xcd3   :  { %2813 = vst [vmem:[%s5166_s11] sm:$0xff] %v2805_v2  ;;  %v2806_v37 = vmax.f32 %v2798_v57, 0.0  ;;  %v2801_v38 = vadd.f32 %v2793_v28, %v5243_v42  ;;  %v2794_v34 = vsub.f32 %v4149_v62, %v2709_v8  ;;  %v2786_v40 = vpop.f32.mrf.mxu1 }
 0xcd4   :  { %2815 = vst [vmem:[%s5166_s11 + $0x10] sm:$0xff] %v2807_v13  ;;  %v2808_v23 = vmax.f32 %v2800_v39, 0.0  ;;  %v2803_v47 = vadd.f32 %v2795_v41, %v5243_v42  ;;  %v2796_v50 = vsub.f32 %v4158_v29, %v2786_v40 }
 0xcd5   :  { %2814 = vst [vmem:[%s5166_s11 + $0x8] sm:$0xff] %v2806_v37  ;;  %v2809_v22 = vmax.f32 %v2801_v38, 0.0  ;;  %v2802_v52 = vadd.f32 %v2794_v34, %v5243_v42 }
 0xcd6   :  { %2816 = vst [vmem:[%s5166_s11 + $0x18] sm:$0xff] %v2808_v23  ;;  %v2811_v62 = vmax.f32 %v2803_v47, 0.0  ;;  %v2804_v48 = vadd.f32 %v2796_v50, %v5243_v42 }
 0xcd7   :  { %2817 = vst [vmem:[%s5166_s11 + $0x20] sm:$0xff] %v2809_v22  ;;  %v2810_v49 = vmax.f32 %v2802_v52, 0.0 }
 0xcd8   :  { %2819 = vst [vmem:[%s5166_s11 + $0x30] sm:$0xff] %v2811_v62  ;;  %v2812_v29 = vmax.f32 %v2804_v48, 0.0 }
 0xcd9   :  { %2818 = vst [vmem:[%s5166_s11 + $0x28] sm:$0xff] %v2810_v49 }
 0xcda   :  { %2820 = vst [vmem:[%s5166_s11 + $0x38] sm:$0xff] %v2812_v29 }

</bundles_post_ra>
